<compile_context>
chip_gen: v6e
topology: v6e:2x2x1
jax: 0.10.0
libtpu: 0.0.40
codegen_flags: <defaults>
</compile_context>

<pallas_src>
import jax
import jax.numpy as jnp
from jax.experimental import pallas as pl
from jax.experimental.pallas import tpu as pltpu

K_IN = 150 * 150          # 22500
K_PAD = 22528             # next multiple of 128
TK = 11264                # K tile -> 2 reduction steps
H1 = 200
H1_PAD = 256              # lane-aligned fc1 width (2 x 128)
N_SPLIT = H1_PAD // 128   # 2 column slabs -> 'parallel' grid axis
H2 = 120
H_OUT = 1


def fc1_kernel(x_ref, w1_ref, b1_ref, o_ref, acc_ref):
    """h1 = relu(x @ W1 + b1) for one 128-wide column slab of W1.

    grid = (N_SPLIT, K_PAD // TK): axis 0 ('parallel') selects the column slab,
    axis 1 ('arbitrary') is the fc1 reduction over K tiles.
    """
    k = pl.program_id(1)

    @pl.when(k == 0)
    def _():
        acc_ref[...] = jnp.zeros_like(acc_ref)

    # bf16 x bf16 -> f32 accumulation on the MXU.
    acc_ref[...] += jnp.dot(x_ref[...], w1_ref[0],
                            preferred_element_type=jnp.float32)

    @pl.when(k == pl.num_programs(1) - 1)
    def _():
        o_ref[...] = jnp.maximum(acc_ref[...] + b1_ref[...], 0.0)


def _fc1_pallas(xp, w1_packed, b1_pad):
    B = xp.shape[0]
    grid = (N_SPLIT, K_PAD // TK)
    return pl.pallas_call(
        fc1_kernel,
        out_shape=jax.ShapeDtypeStruct((B, H1_PAD), jnp.float32),
        grid_spec=pltpu.PrefetchScalarGridSpec(
            num_scalar_prefetch=0,
            grid=grid,
            in_specs=[
                pl.BlockSpec((B, TK), lambda j, k: (0, k)),          # x K-tile
                pl.BlockSpec((1, TK, 128), lambda j, k: (j, k, 0)),  # W1 slab
                pl.BlockSpec((1, 128), lambda j, k: (0, j)),         # b1 slice
            ],
            out_specs=pl.BlockSpec((B, 128), lambda j, k: (0, j)),
            scratch_shapes=[pltpu.VMEM((B, 128), jnp.float32)],      # fc1 acc
        ),
        compiler_params=pltpu.CompilerParams(
            dimension_semantics=("parallel", "arbitrary"),
            vmem_limit_bytes=32 << 20,
        ),
    )(xp, w1_packed, b1_pad)


@jax.jit
def net_linear_forward(x, params):
    """params must come from prepare_params (packing done once, not per call)."""
    w1_packed, b1_pad, w2_pad, b2, wp, bp = params
    B = x.shape[0]
    # torch: x.view(-1, 150*150); stream x to the MXU in bf16.
    xf = x.reshape(B, K_IN).astype(jnp.bfloat16)
    xp = jnp.pad(xf, ((0, 0), (0, K_PAD - K_IN)))       # tiny (~360 KB @ B=8)

    h1 = _fc1_pallas(xp, w1_packed, b1_pad)             # (B, 256); cols 200: are 0
    # fc2 + predict are microscopic -> plain XLA epilogue (f32 throughout).
    h2 = jnp.maximum(h1 @ w2_pad + b2, 0.0)
    return h2 @ wp + bp


def prepare_params(w1, b1, w2, b2, wp, bp):
    """One-time re-packing (at init, NOT inside the per-call forward):
      - W1 (22500, 200) -> zero-pad to (22528, 256), split into two contiguous
        128-wide column slabs (2, 22528, 128), cast to bf16.
      - b1 -> (1, 256) f32; W2 -> (256, 120) f32 (extra zero rows are inert)."""
    w1p = jnp.pad(w1, ((0, K_PAD - K_IN), (0, H1_PAD - H1)))
    w1_packed = jnp.transpose(
        w1p.reshape(K_PAD, N_SPLIT, 128), (1, 0, 2)).astype(jnp.bfloat16)
    b1_pad = jnp.pad(b1, ((0, 0), (0, H1_PAD - H1))).astype(jnp.float32)
    w2_pad = jnp.pad(w2, ((0, H1_PAD - H1), (0, 0))).astype(jnp.float32)
    return (w1_packed, b1_pad, w2_pad,
            b2.astype(jnp.float32), wp.astype(jnp.float32), bp.astype(jnp.float32))


def init_params(key):
    """Deterministic init mimicking nn.Linear (uniform +-1/sqrt(fan_in)).
    Weights stored as (in, out) = torch_weight.T."""
    ks = jax.random.split(key, 6)

    def lin(kw, kb, fan_in, fan_out):
        bound = 1.0 / jnp.sqrt(jnp.float32(fan_in))
        w = jax.random.uniform(kw, (fan_in, fan_out), jnp.float32, -bound, bound)
        b = jax.random.uniform(kb, (1, fan_out), jnp.float32, -bound, bound)
        return w, b

    w1, b1 = lin(ks[0], ks[1], K_IN, H1)      # fc1
    w2, b2 = lin(ks[2], ks[3], H1, H2)        # fc2
    wp, bp = lin(ks[4], ks[5], H2, H_OUT)     # predict
    # TODO(synk): fc3 (120 -> 60) exists in __init__ but is unused in forward; omitted.
    return w1, b1, w2, b2, wp, bp


def reference_forward(x, w1, b1, w2, b2, wp, bp):
    """Pure-JAX reference matching the kernel's bf16 weight/input stream with
    f32 accumulation."""
    xf = x.reshape(x.shape[0], K_IN)
    h1 = jnp.maximum(
        jnp.dot(xf.astype(jnp.bfloat16), w1.astype(jnp.bfloat16),
                preferred_element_type=jnp.float32) + b1, 0.0)
    h2 = jnp.maximum(h1 @ w2 + b2, 0.0)
    return h2 @ wp + bp


if __name__ == "__main__":
    key = jax.random.PRNGKey(0)
    kx, kp = jax.random.split(key)
    B = 8
    # Input image must be 150x150 (fixed by fc1's in_features), NCHW like torch.
    x = jax.random.normal(kx, (B, 1, 150, 150), dtype=jnp.float32)
    natural = init_params(kp)
    params = prepare_params(*natural)        # one-time weight packing

    out = jax.block_until_ready(net_linear_forward(x, params))
    ref = reference_forward(x, *natural)

    assert out.shape == (B, H_OUT)
    assert jnp.allclose(out, ref, atol=1e-2, rtol=1e-2), "mismatch vs reference"
    print("KERNEL_OK")
</pallas_src>

<mosaic_0001>
module attributes {stable_mosaic.version = 11 : i64} {
  func.func @fc1_kernel(%arg0: i32, %arg1: i32, %arg2: memref<8x11264xbf16, #tpu.memory_space<vmem>>, %arg3: memref<1x11264x128xbf16, #tpu.memory_space<vmem>>, %arg4: memref<1x128xf32, #tpu.memory_space<vmem>>, %arg5: memref<8x128xf32, #tpu.memory_space<vmem>>, %arg6: memref<8x128xf32, #tpu.memory_space<vmem>>) attributes {dimension_semantics = [#tpu.dimension_semantics<parallel>, #tpu.dimension_semantics<arbitrary>], iteration_bounds = array<i64: 2, 2>, scalar_prefetch = 0 : i64, scratch_operands = 1 : i64, tpu.core_type = #tpu.core_type<tc>, window_params = [{transform_indices = @transform_0, window_bounds = array<i64: 8, 11264>}, {transform_indices = @transform_1, window_bounds = array<i64: 1, 11264, 128>}, {transform_indices = @transform_2, window_bounds = array<i64: 1, 128>}, {transform_indices = @transform_3, window_bounds = array<i64: 8, 128>}]} {
    %c0_i32 = arith.constant 0 : i32
    %0 = arith.cmpi eq, %arg1, %c0_i32 : i32
    %1 = arith.extui %0 : i1 to i32
    %c0_i32_0 = arith.constant 0 : i32
    %2 = arith.cmpi ne, %1, %c0_i32_0 : i32
    scf.if %2 {
      %cst_10 = arith.constant 0.000000e+00 : f32
      %13 = vector.broadcast %cst_10 : f32 to vector<8x128xf32>
      %c0_11 = arith.constant 0 : index
      %c0_12 = arith.constant 0 : index
      %14 = vector.load %arg6[%c0_11, %c0_12] : memref<8x128xf32, #tpu.memory_space<vmem>>, vector<8x128xf32>
      tpu.vector_store %arg6[%c0_11, %c0_12], %13 {strides = array<i32>} : memref<8x128xf32, #tpu.memory_space<vmem>>, vector<8x128xf32>,
    } else {
    }
    %c0 = arith.constant 0 : index
    %c0_1 = arith.constant 0 : index
    %3 = vector.load %arg6[%c0, %c0_1] : memref<8x128xf32, #tpu.memory_space<vmem>>, vector<8x128xf32>
    %c0_2 = arith.constant 0 : index
    %c0_3 = arith.constant 0 : index
    %4 = vector.load %arg2[%c0_2, %c0_3] : memref<8x11264xbf16, #tpu.memory_space<vmem>>, vector<8x11264xbf16>
    %c0_4 = arith.constant 0 : index
    %c0_5 = arith.constant 0 : index
    %c0_6 = arith.constant 0 : index
    %5 = vector.load %arg3[%c0_4, %c0_5, %c0_6] : memref<1x11264x128xbf16, #tpu.memory_space<vmem>>, vector<1x11264x128xbf16>
    %6 = vector.shape_cast %5 : vector<1x11264x128xbf16> to vector<11264x128xbf16>
    %cst = arith.constant dense<0.000000e+00> : vector<8x128xf32>
    %7 = tpu.matmul %4, %6, %cst {dimension_numbers = #tpu.dot_dimension_numbers<[1], [0], [0], [1], [0, 0, 1, 1], [], []>} : vector<8x11264xbf16>, vector<11264x128xbf16>, vector<8x128xf32> -> vector<8x128xf32>
    %8 = arith.addf %3, %7 : vector<8x128xf32>
    %c0_7 = arith.constant 0 : index
    %c0_8 = arith.constant 0 : index
    %9 = vector.load %arg6[%c0_7, %c0_8] : memref<8x128xf32, #tpu.memory_space<vmem>>, vector<8x128xf32>
    tpu.vector_store %arg6[%c0_7, %c0_8], %8 {strides = array<i32>} : memref<8x128xf32, #tpu.memory_space<vmem>>, vector<8x128xf32>,
    %c1_i32 = arith.constant 1 : i32
    %10 = arith.cmpi eq, %arg1, %c1_i32 : i32
    %11 = arith.extui %10 : i1 to i32
    %c0_i32_9 = arith.constant 0 : i32
    %12 = arith.cmpi ne, %11, %c0_i32_9 : i32
    scf.if %12 {
      %c0_10 = arith.constant 0 : index
      %c0_11 = arith.constant 0 : index
      %13 = vector.load %arg6[%c0_10, %c0_11] : memref<8x128xf32, #tpu.memory_space<vmem>>, vector<8x128xf32>
      %c0_12 = arith.constant 0 : index
      %c0_13 = arith.constant 0 : index
      %14 = vector.load %arg4[%c0_12, %c0_13] : memref<1x128xf32, #tpu.memory_space<vmem>>, vector<1x128xf32>
      %15 = vector.broadcast %14 : vector<1x128xf32> to vector<8x128xf32>
      %16 = arith.addf %13, %15 : vector<8x128xf32>
      %cst_14 = arith.constant 0.000000e+00 : f32
      %17 = vector.broadcast %cst_14 : f32 to vector<8x128xf32>
      %18 = arith.maximumf %16, %17 : vector<8x128xf32>
      %c0_15 = arith.constant 0 : index
      %c0_16 = arith.constant 0 : index
      %19 = vector.load %arg5[%c0_15, %c0_16] : memref<8x128xf32, #tpu.memory_space<vmem>>, vector<8x128xf32>
      tpu.vector_store %arg5[%c0_15, %c0_16], %18 {strides = array<i32>} : memref<8x128xf32, #tpu.memory_space<vmem>>, vector<8x128xf32>,
    } else {
    }
    return
  }
  func.func @transform_0(%arg0: i32, %arg1: i32) -> (i32, i32) {
    %c0_i32 = arith.constant 0 : i32
    %c0_i32_0 = arith.constant 0 : i32
    return %c0_i32, %arg1 : i32, i32
  }
  func.func @transform_1(%arg0: i32, %arg1: i32) -> (i32, i32, i32) {
    %c0_i32 = arith.constant 0 : i32
    %c0_i32_0 = arith.constant 0 : i32
    return %arg0, %arg1, %c0_i32 : i32, i32, i32
  }
  func.func @transform_2(%arg0: i32, %arg1: i32) -> (i32, i32) {
    %c0_i32 = arith.constant 0 : i32
    %c0_i32_0 = arith.constant 0 : i32
    return %c0_i32, %arg0 : i32, i32
  }
  func.func @transform_3(%arg0: i32, %arg1: i32) -> (i32, i32) {
    %c0_i32 = arith.constant 0 : i32
    %c0_i32_0 = arith.constant 0 : i32
    return %c0_i32, %arg0 : i32, i32
  }
}

</mosaic_0001>

<bundles_post_ra>
// kernel: net_linear_forward.1
= control target key start
LH: loop header
LB: loop body
LE: loop exit
PB: predicated region body
PF: predicated region fallthrough
CT: control target
= control target key end

     0   :  { %8 = vsyncpa [#allocation4], 0  ;;  %s11805_s0 = inlined_call_operand.vmem [shape: bf16[8,22528], index: 0, kind: input, shape index: {}]   ;;  %s11806_s1 = inlined_call_operand.hbm [shape: bf16[2,22528,128], index: 1, kind: input, shape index: {}]   ;;  %s11807_s2 = inlined_call_operand.vmem [shape: f32[1,256], index: 2, kind: input, shape index: {}]   ;;  %s11808_s3 = inlined_call_operand.vmem [shape: f32[8,256], index: 3, kind: output, shape index: {}]  }
   0x1   :  { %10 = vsyncpa [#allocation4 + $0x1], 0  ;;  %s10872_s12 = smov 0   ;;  %s10874_s13 = smov 0  }
   0x2   :  { %s10876_s14 = smov 0   ;;  %s10878_s15 = smov 0  }
   0x3   :  { %s10880_s16 = smov 0   ;;  %s10882_s17 = smov 0  }
   0x4   :  { %s10884_s18 = smov 0   ;;  %s10886_s19 = smov 0  }
   0x5 LB: > { %s8110_s20 = sadd.s32 4294967295, %s10846_s19   ;;  %s25_s21 = sadd.s32 1, %s10838_s17  ;;  %s10846_s19 = sphi %s10886_s19, %s16_s19   ;;  %s10842_s18 = sphi %s10884_s18, %s11817_s18   ;;  %s10838_s17 = sphi %s10882_s17, %s11816_s17   ;;  %s10834_s16 = sphi %s10880_s16, %s11815_s16   ;;  %s10830_s15 = sphi %s10878_s15, %s11814_s15   ;;  %s10826_s14 = sphi %s10876_s14, %s11813_s14   ;;  %s10822_s13 = sphi %s10874_s13, %s11812_s13   ;;  %s10818_s12 = sphi %s10872_s12, %s11811_s12  }
   0x6   : > { %p26_p0 = scmp.ge.s32.totalorder %s25_s21, 2  ;;  %s28_s22 = sadd.s32 1, %s10842_s18 }
   0x7   : > { %s63_s23 = sadd.s32 1, %s10826_s14  ;;  %p70_p1 = scmp.ne.s32.totalorder %s10826_s14, %s10822_s13 }
   0x8   : > { %s11819_s21 = smov (%p26_p0, %s25_s21), 0  ;;  %s11821_s22 = smov (!%p26_p0, %s28_s22), %s10842_s18 }
   0x9   : > { %s59_s24 = ssub.s32 %s10838_s17, %s11819_s21  ;;  %p71_p2 = scmp.eq.s32.totalorder %s10846_s19, 0 }
   0xa   : > { %p30_p3 = scmp.ge.s32.totalorder %s11821_s22, 2  ;;  %p76_p4 = scmp.ne.s32.totalorder %s10822_s13, %s10818_s12 }
   0xb   : > { %p72_p5 = por %p71_p2, %p70_p1  ;;  %p77_p6 = scmp.eq.s32.totalorder %s8110_s20, 0 }
   0xc   : > { %s11823_s22 = smov (%p30_p3, %s11821_s22), 0  ;;  %p9892_p8 = scmp.lt.s32.totalorder %s10846_s19, 4 }
   0xd   : > { %p10925_p7 = por %p77_p6, %p76_p4  ;;  %s58_s26 = ssub.s32 %s10842_s18, %s11823_s22 }
   0xe   : > { %s60_s27 = sor.u32 %s59_s24, %s58_s26  ;;  %s161_s28 = sand.u32 1, %s10826_s14  }
   0xf   : > { %p61_p9 = scmp.eq.s32.totalorder %s60_s27, 0  ;;  %s9883_s29 = smul.u32 5632, %s161_s28 }
  0x10   : > { %p10933_p10 = pnand %p9892_p8, %p72_p5  ;;  %s166_s5 = smul.u32 1408, %s10838_s17 }
  0x11   : > { %s10938_s4 = scalar_select %p61_p9, %s10826_s14, %s63_s23  }
  0x12   : > { %s9884_s6 = smul.u32 2816, %s10842_s18  ;;  %s165_s7 = scalar_lea.vmem [#allocation3], %s9883_s29 }
  0x13   : > { %s174_s8 = sshll.u32 %s165_s7, 4  ;;  %p8115_p11 = scmp.ge.s32.totalorder %s10846_s19, 1  ;;  %s175_s8 = int_to_ptr.vmem [resolvable:$true] %s174_s8 }
  0x14   : > { %s171_s9 = sadd.s32 %s9884_s6, %s166_s5  ;;  %s162_s24 = scalar_lea.sflag [#allocation4], %s161_s28 }
  0x15   : > { %s8114_s10 = sshll.u32 %s171_s9, 6  ;;  %p10754_p12 = pneg %p10933_p10 }
  0x16   : > { %s173_s20 = scalar_lea.hbm %s11806_s1, %s8114_s10  ;;  %s10765_s26 = scalar_lea.vmem %s175_s8, 90112 }
  0x17   : > { %p10766_p13 = scmp.ne.s32.totalorder %s175_s8, %s10765_s26  ;;  %s10848_s23 = smov [#allocation3]  }
  0x18   : > { %s10770_s27 = sshll.u32 %s10848_s23, 4  ;;  %s10771_s27 = int_to_ptr.vmem [resolvable:$false] %s10770_s27 }
  0x19   : > { %p10768_p0 = pnand %p10766_p13, %p10754_p12  ;;  %s10772_s29 = scalar_lea.vmem %s10771_s27, 180224 }
  0x1a   : > { %p10773_p2 = scmp.lt.s32.totalorder %s175_s8, %s10771_s27  ;;  %p10774_p3 = scmp.lt.s32.totalorder %s10772_s29, %s10765_s26 }
  0x1b   : > { %p10769_p1 = pneg %p10768_p0 }
  0x1c   : > { %p10775_p4 = por %p10774_p3, %p10773_p2 }
  0x1e   : > { %p10776_p5 = pnand %p10775_p4, %p10769_p1 }
  0x20   : > { %10779 = shalt.err (!%p10776_p5)
}
  0x21   : > { %s10849_s5 = smov 64   ;;  %s10850_s28 = smov 4  }
  0x22   : > { %9891 = dma.hbm_to_vmem [thread:$0]  (!%p10933_p10), %s173_s20, 90112, %s175_s8, %s162_s24, %s10849_s5, %s10849_s5, %s10850_s28  }
  0x23   : > { %p188_p6 = scmp.lt.s32.totalorder %s10846_s19, 5 }
  0x25   : > { %p189_p8 = pnand %p8115_p11, %p188_p6 }
  0x26   : > { %s194_s6 = sand.u32 (!%p189_p8), 1, %s10822_s13  }
  0x27   : > { %192 = sbr.rel (%p189_p8) target bundleno = 979 (0x3d3), region = 32  ;;  %s195_s9 = scalar_lea.sflag (!%p189_p8), [#allocation4], %s194_s6 }
  0x28   : > { %s9885_s7 = smul.u32 (!%p189_p8), 5632, %s194_s6 }
  0x2a   : > { %s10954_s10 = scalar_lea.vmem (!%p189_p8), [#allocation3], %s9885_s7 }
  0x2c   : > { %10813 = dma.done.wait (%p10925_p7), %s195_s9, 90112  }
  0x2d   : > { %10815 = vsyncadd (%p10925_p7), %s195_s9, 4294877184  ;;  %s228_s30 = smul.u32 88, %s10830_s15  ;;  %p235_p9 = scmp.lt.s32.totalorder %s10834_s16, 1 }
  0x2e   : > { %p8118_p7 = scmp.ne.s32.totalorder %s10830_s15, 0 }
  0x2f   : > { %p229_p10 = scmp.lt.s32.totalorder %s228_s30, 175  ;;  %s11825_s16 = smov (!%p235_p9, %s10834_s16), 1 }
  0x30   : > { %s237_s12 = scalar_lea.vmem %s11807_s2, %s11825_s16  ;;  %s8117_s20 = sshll.u32 %s11825_s16, 3 }
  0x31   : > { %s11827_s30 = smov (!%p229_p10, %s228_s30), 175  ;;  %s10973_s23 = scalar_lea.vmem %s11808_s3, %s8117_s20 }
  0x32   : > { %s8116_s24 = sshll.u32 %s11827_s30, 2  ;;  %246 = sbr.rel (%p8118_p7) target bundleno = 57 (0x39), region = 40 }
  0x33   : > { %s10978_s5 = scalar_lea.vmem %s11805_s0, %s8116_s24 }
  0x37   : > { %v10851_v0 = vmov 0.0  }
  0x38   : > { %247 = vst [vmem:[#allocation2] sm:$0xff] %v10851_v0 }
  0x39 PF: > { %v9960_v1 = vld [vmem:[%s10954_s10 + $0x78] sm:$0xff]   ;;  %v9964_v5 = vld [vmem:[%s10954_s10 + $0x70] sm:$0xff]   ;;  %v9968_v9 = vld [vmem:[%s10954_s10 + $0x68] sm:$0xff]   ;;  %p8911_p11 = scmp.ne.s32.totalorder %s10830_s15, 1 }
  0x3a   : > { %v9961_v2 = vld [vmem:[%s10954_s10 + $0xf8] sm:$0xff]   ;;  %8915 = vmatprep.subr.bf16.mxu0 %v9960_v1  ;;  %v9965_v6 = vld [vmem:[%s10954_s10 + $0xf0] sm:$0xff]   ;;  %v9969_v10 = vld [vmem:[%s10954_s10 + $0xe8] sm:$0xff]  }
  0x3b   : > { %v9962_v3 = vld [vmem:[%s10954_s10 + $0x38] sm:$0xff]   ;;  %8937 = vmatprep.subr.bf16.mxu1 %v9961_v2  ;;  %v9966_v7 = vld [vmem:[%s10954_s10 + $0x30] sm:$0xff]   ;;  %v9970_v11 = vld [vmem:[%s10954_s10 + $0x28] sm:$0xff]  }
  0x3c   : > { %v9963_v4 = vld [vmem:[%s10954_s10 + $0xb8] sm:$0xff]   ;;  %8916 = vmatpush3.bf16.msra.mxu0 %v9962_v3  ;;  %v9967_v8 = vld [vmem:[%s10954_s10 + $0xb0] sm:$0xff]   ;;  %v9971_v12 = vld [vmem:[%s10954_s10 + $0xa8] sm:$0xff]  }
  0x3d   : > { %8938 = vmatpush3.bf16.msra.mxu1 %v9963_v4  ;;  %8917 = vmatprep.subr.bf16.mxu0 %v9964_v5  ;;  %v9972_v13 = vld [vmem:[%s10954_s10 + $0x60] sm:$0xff]   ;;  %v9976_v17 = vld [vmem:[%s10954_s10 + $0x58] sm:$0xff]   ;;  %v9980_v21 = vld [vmem:[%s10954_s10 + $0x50] sm:$0xff]  }
  0x3e   : > { %8939 = vmatprep.subr.bf16.mxu1 %v9965_v6  ;;  %v9973_v14 = vld [vmem:[%s10954_s10 + $0xe0] sm:$0xff]   ;;  %v9977_v18 = vld [vmem:[%s10954_s10 + $0xd8] sm:$0xff]   ;;  %v9981_v22 = vld [vmem:[%s10954_s10 + $0xd0] sm:$0xff]  }
  0x3f   : > { %v9974_v15 = vld [vmem:[%s10954_s10 + $0x20] sm:$0xff]   ;;  %v9978_v19 = vld [vmem:[%s10954_s10 + $0x18] sm:$0xff]   ;;  %v9982_v23 = vld [vmem:[%s10954_s10 + $0x10] sm:$0xff]  }
  0x40   : > { %8918 = vmatpush3.bf16.msra.mxu0 %v9966_v7  ;;  %v9975_v16 = vld [vmem:[%s10954_s10 + $0xa0] sm:$0xff]   ;;  %v9979_v20 = vld [vmem:[%s10954_s10 + $0x98] sm:$0xff]   ;;  %v9983_v24 = vld [vmem:[%s10954_s10 + $0x90] sm:$0xff]  }
  0x41   : > { %8940 = vmatpush3.bf16.msra.mxu1 %v9967_v8  ;;  %8919 = vmatprep.subr.bf16.mxu0 %v9968_v9  ;;  %v9984_v25 = vld [vmem:[%s10954_s10 + $0x48] sm:$0xff]   ;;  %v9988_v29 = vld [vmem:[%s10954_s10 + $0x40] sm:$0xff]   ;;  %v249_v33 = vld [vmem:[%s10978_s5] sm:$0xff] }
  0x42   : > { %8941 = vmatprep.subr.bf16.mxu1 %v9969_v10  ;;  %v9985_v26 = vld [vmem:[%s10954_s10 + $0xc8] sm:$0xff]   ;;  %v9989_v30 = vld [vmem:[%s10954_s10 + $0xc0] sm:$0xff]   ;;  %v8119_v35 = vcombine.low %v249_v33, %v249_v33  ;;  %v8120_v36 = vcombine.high %v249_v33, %v249_v33  ;;  %v9996_v39 = vld [vmem:[%s10954_s10 + $0x178] sm:$0xff]  }
  0x43   : > { %v9986_v27 = vld [vmem:[%s10954_s10 + $0x8] sm:$0xff]   ;;  %v9990_v31 = vld [vmem:[%s10954_s10] sm:$0xff]   ;;  %v9997_v40 = vld [vmem:[%s10954_s10 + $0x1f8] sm:$0xff]  }
  0x44   : > { %8920 = vmatpush3.bf16.msra.mxu0 %v9970_v11  ;;  %v9987_v28 = vld [vmem:[%s10954_s10 + $0x88] sm:$0xff]   ;;  %v9991_v32 = vld [vmem:[%s10954_s10 + $0x80] sm:$0xff]   ;;  %6265 = vmatprep.mubr.bf16.mxu0 %v8120_v36  ;;  %v9998_v41 = vld [vmem:[%s10954_s10 + $0x138] sm:$0xff]  }
  0x45   : > { %8942 = vmatpush3.bf16.msra.mxu1 %v9971_v12  ;;  %8921 = vmatprep.subr.bf16.mxu0 %v9972_v13  ;;  %v250_v34 = vld [vmem:[%s10978_s5 + $0x8] sm:$0xff]  ;;  %v9999_v42 = vld [vmem:[%s10954_s10 + $0x1b8] sm:$0xff]   ;;  %v10000_v43 = vld [vmem:[%s10954_s10 + $0x170] sm:$0xff]  }
  0x46   : > { %8943 = vmatprep.subr.bf16.mxu1 %v9973_v14  ;;  %v8121_v37 = vcombine.low %v250_v34, %v250_v34  ;;  %v8122_v38 = vcombine.high %v250_v34, %v250_v34  ;;  %v10001_v44 = vld [vmem:[%s10954_s10 + $0x1f0] sm:$0xff]   ;;  %v10004_v47 = vld [vmem:[%s10954_s10 + $0x168] sm:$0xff]   ;;  %v10008_v51 = vld [vmem:[%s10954_s10 + $0x160] sm:$0xff]  }
  0x47   : > { %v10002_v45 = vld [vmem:[%s10954_s10 + $0x130] sm:$0xff]   ;;  %v10005_v48 = vld [vmem:[%s10954_s10 + $0x1e8] sm:$0xff]   ;;  %v10009_v52 = vld [vmem:[%s10954_s10 + $0x1e0] sm:$0xff]  }
  0x48   : > { %8922 = vmatpush3.bf16.msra.mxu0 %v9974_v15  ;;  %6305 = vmatprep.mubr.bf16.mxu1 %v8122_v38  ;;  %v10003_v46 = vld [vmem:[%s10954_s10 + $0x1b0] sm:$0xff]   ;;  %v10006_v49 = vld [vmem:[%s10954_s10 + $0x128] sm:$0xff]   ;;  %v10010_v53 = vld [vmem:[%s10954_s10 + $0x120] sm:$0xff]  }
  0x49   : > { %8944 = vmatpush3.bf16.msra.mxu1 %v9975_v16  ;;  %8923 = vmatprep.subr.bf16.mxu0 %v9976_v17  ;;  %v10007_v50 = vld [vmem:[%s10954_s10 + $0x1a8] sm:$0xff]   ;;  %v10011_v54 = vld [vmem:[%s10954_s10 + $0x1a0] sm:$0xff]   ;;  %v10012_v55 = vld [vmem:[%s10954_s10 + $0x158] sm:$0xff]  }
  0x4a   : > { %8945 = vmatprep.subr.bf16.mxu1 %v9977_v18  ;;  %v10013_v56 = vld [vmem:[%s10954_s10 + $0x1d8] sm:$0xff]   ;;  %v10016_v59 = vld [vmem:[%s10954_s10 + $0x150] sm:$0xff]   ;;  %v10020_v63 = vld [vmem:[%s10954_s10 + $0x148] sm:$0xff]  }
  0x4b   : > { %v10014_v57 = vld [vmem:[%s10954_s10 + $0x118] sm:$0xff]   ;;  %v10017_v60 = vld [vmem:[%s10954_s10 + $0x1d0] sm:$0xff]   ;;  %v10021_v0 = vld [vmem:[%s10954_s10 + $0x1c8] sm:$0xff]  }
  0x4c   : > { %8924 = vmatpush3.bf16.msra.mxu0 %v9978_v19  ;;  %v10015_v58 = vld [vmem:[%s10954_s10 + $0x198] sm:$0xff]   ;;  %v10018_v61 = vld [vmem:[%s10954_s10 + $0x110] sm:$0xff]   ;;  %v10022_v1 = vld [vmem:[%s10954_s10 + $0x108] sm:$0xff]  }
  0x4d   : > { %8946 = vmatpush3.bf16.msra.mxu1 %v9979_v20  ;;  %8925 = vmatprep.subr.bf16.mxu0 %v9980_v21  ;;  %v10019_v62 = vld [vmem:[%s10954_s10 + $0x190] sm:$0xff]   ;;  %v10023_v2 = vld [vmem:[%s10954_s10 + $0x188] sm:$0xff]   ;;  %v10024_v3 = vld [vmem:[%s10954_s10 + $0x140] sm:$0xff]  }
  0x4e   : > { %8947 = vmatprep.subr.bf16.mxu1 %v9981_v22  ;;  %v10025_v4 = vld [vmem:[%s10954_s10 + $0x1c0] sm:$0xff]   ;;  %v251_v7 = vld [vmem:[%s10978_s5 + $0x10] sm:$0xff]  ;;  %v252_v10 = vld [vmem:[%s10978_s5 + $0x18] sm:$0xff] }
  0x4f   : > { %v10026_v5 = vld [vmem:[%s10954_s10 + $0x100] sm:$0xff]   ;;  %v8123_v8 = vcombine.low %v251_v7, %v251_v7  ;;  %v8124_v9 = vcombine.high %v251_v7, %v251_v7  ;;  %v8125_v11 = vcombine.low %v252_v10, %v252_v10  ;;  %v8126_v12 = vcombine.high %v252_v10, %v252_v10  ;;  %v10032_v13 = vld [vmem:[%s10954_s10 + $0x278] sm:$0xff]   ;;  %v10036_v17 = vld [vmem:[%s10954_s10 + $0x270] sm:$0xff]  }
  0x50   : > { %8926 = vmatpush3.bf16.msra.mxu0 %v9982_v23  ;;  %v10027_v6 = vld [vmem:[%s10954_s10 + $0x180] sm:$0xff]   ;;  %v10033_v14 = vld [vmem:[%s10954_s10 + $0x2f8] sm:$0xff]   ;;  %v10037_v18 = vld [vmem:[%s10954_s10 + $0x2f0] sm:$0xff]  }
  0x51   : > { %8948 = vmatpush3.bf16.msra.mxu1 %v9983_v24  ;;  %8927 = vmatprep.subr.bf16.mxu0 %v9984_v25  ;;  %v10034_v15 = vld [vmem:[%s10954_s10 + $0x238] sm:$0xff]   ;;  %v10038_v19 = vld [vmem:[%s10954_s10 + $0x230] sm:$0xff]   ;;  %v10040_v21 = vld [vmem:[%s10954_s10 + $0x268] sm:$0xff]  }
  0x52   : > { %8949 = vmatprep.subr.bf16.mxu1 %v9985_v26  ;;  %v10035_v16 = vld [vmem:[%s10954_s10 + $0x2b8] sm:$0xff]   ;;  %v10039_v20 = vld [vmem:[%s10954_s10 + $0x2b0] sm:$0xff]   ;;  %v10041_v22 = vld [vmem:[%s10954_s10 + $0x2e8] sm:$0xff]  }
  0x53   : > { %v10042_v23 = vld [vmem:[%s10954_s10 + $0x228] sm:$0xff]   ;;  %v10044_v25 = vld [vmem:[%s10954_s10 + $0x260] sm:$0xff]   ;;  %v10052_v33 = vld [vmem:[%s10954_s10 + $0x250] sm:$0xff]  }
  0x54   : > { %8928 = vmatpush3.bf16.msra.mxu0 %v9986_v27  ;;  %v10043_v24 = vld [vmem:[%s10954_s10 + $0x2a8] sm:$0xff]   ;;  %v10045_v26 = vld [vmem:[%s10954_s10 + $0x2e0] sm:$0xff]   ;;  %v10053_v34 = vld [vmem:[%s10954_s10 + $0x2d0] sm:$0xff]  }
  0x55   : > { %8950 = vmatpush3.bf16.msra.mxu1 %v9987_v28  ;;  %8929 = vmatprep.subr.bf16.mxu0 %v9988_v29  ;;  %v10046_v27 = vld [vmem:[%s10954_s10 + $0x220] sm:$0xff]   ;;  %v10048_v29 = vld [vmem:[%s10954_s10 + $0x258] sm:$0xff]   ;;  %v10055_v36 = vld [vmem:[%s10954_s10 + $0x290] sm:$0xff]  }
  0x56   : > { %8951 = vmatprep.subr.bf16.mxu1 %v9989_v30  ;;  %v10047_v28 = vld [vmem:[%s10954_s10 + $0x2a0] sm:$0xff]   ;;  %v10049_v30 = vld [vmem:[%s10954_s10 + $0x2d8] sm:$0xff]   ;;  %v10057_v38 = vld [vmem:[%s10954_s10 + $0x2c8] sm:$0xff]  }
  0x57   : > { %v10088_v7 = vld [vmem:[%s10954_s10 + $0x350] sm:$0xff]  }
  0x58   : > { %8930 = vmatpush3.bf16.msra.mxu0 %v9990_v31  ;;  %v10050_v31 = vld [vmem:[%s10954_s10 + $0x218] sm:$0xff]   ;;  %v10091_v10 = vld [vmem:[%s10954_s10 + $0x390] sm:$0xff]  }
  0x59   : > { %8952 = vmatpush3.bf16.msra.mxu1 %v9991_v32  ;;  %8959 = vmatprep.subr.bf16.mxu0 %v9996_v39  ;;  %v10051_v32 = vld [vmem:[%s10954_s10 + $0x298] sm:$0xff]   ;;  %v10058_v39 = vld [vmem:[%s10954_s10 + $0x208] sm:$0xff]  }
  0x5a   : > { %8981 = vmatprep.subr.bf16.mxu1 %v9997_v40  ;;  %v10059_v40 = vld [vmem:[%s10954_s10 + $0x288] sm:$0xff]  }
  0x5b   : > { %6266 = vmatmul.mubr.bf16.vlgmr.msra.gmra.mxu0 %v8119_v35  ;;  %v10054_v35 = vld [vmem:[%s10954_s10 + $0x210] sm:$0xff]  }
  0x5c   : > { %6306 = vmatmul.mubr.bf16.vlgmr.msra.gmra.mxu1 %v8121_v37  ;;  %8960 = vmatpush3.bf16.msra.mxu0 %v9998_v41  ;;  %v10056_v37 = vld [vmem:[%s10954_s10 + $0x248] sm:$0xff]   ;;  %v10060_v41 = vld [vmem:[%s10954_s10 + $0x240] sm:$0xff]  }
  0x5d   : > { %8982 = vmatpush3.bf16.msra.mxu1 %v9999_v42  ;;  %8961 = vmatprep.subr.bf16.mxu0 %v10000_v43  ;;  %v10061_v42 = vld [vmem:[%s10954_s10 + $0x2c0] sm:$0xff]  }
  0x5e   : > { %8983 = vmatprep.subr.bf16.mxu1 %v10001_v44  ;;  %6345 = vmatprep.mubr.bf16.mxu0 %v8124_v9  ;;  %v10062_v43 = vld [vmem:[%s10954_s10 + $0x200] sm:$0xff]   ;;  %v10090_v9 = vld [vmem:[%s10954_s10 + $0x310] sm:$0xff]  }
  0x5f   : > { %6385 = vmatprep.mubr.bf16.mxu1 %v8126_v12  ;;  %v10063_v44 = vld [vmem:[%s10954_s10 + $0x280] sm:$0xff]   ;;  %v10093_v12 = vld [vmem:[%s10954_s10 + $0x3c8] sm:$0xff]  }
  0x60   : > { %8962 = vmatpush3.bf16.msra.mxu0 %v10002_v45  ;;  %v253_v45 = vld [vmem:[%s10978_s5 + $0x20] sm:$0xff] }
  0x61   : > { %8984 = vmatpush3.bf16.msra.mxu1 %v10003_v46  ;;  %8963 = vmatprep.subr.bf16.mxu0 %v10004_v47  ;;  %v254_v46 = vld [vmem:[%s10978_s5 + $0x28] sm:$0xff]  ;;  %v8127_v47 = vcombine.low %v253_v45, %v253_v45 }
  0x62   : > { %8985 = vmatprep.subr.bf16.mxu1 %v10005_v48  ;;  %v8128_v48 = vcombine.high %v253_v45, %v253_v45  ;;  %v10124_v45 = vld [vmem:[%s10954_s10 + $0x450] sm:$0xff]  }
  0x64   : > { %8964 = vmatpush3.bf16.msra.mxu0 %v10006_v49  ;;  %v8129_v49 = vcombine.low %v254_v46, %v254_v46 }
  0x65   : > { %8986 = vmatpush3.bf16.msra.mxu1 %v10007_v50  ;;  %8965 = vmatprep.subr.bf16.mxu0 %v10008_v51  ;;  %v8130_v50 = vcombine.high %v254_v46, %v254_v46  ;;  %v10068_v51 = vld [vmem:[%s10954_s10 + $0x378] sm:$0xff]   ;;  %v10125_v46 = vld [vmem:[%s10954_s10 + $0x4d0] sm:$0xff]  }
  0x66   : > { %8987 = vmatprep.subr.bf16.mxu1 %v10009_v52  ;;  %v10069_v52 = vld [vmem:[%s10954_s10 + $0x3f8] sm:$0xff]  }
  0x68   : > { %8966 = vmatpush3.bf16.msra.mxu0 %v10010_v53  ;;  %v10070_v53 = vld [vmem:[%s10954_s10 + $0x338] sm:$0xff]  }
  0x69   : > { %8988 = vmatpush3.bf16.msra.mxu1 %v10011_v54  ;;  %8967 = vmatprep.subr.bf16.mxu0 %v10012_v55  ;;  %v10071_v54 = vld [vmem:[%s10954_s10 + $0x3b8] sm:$0xff]   ;;  %v10072_v55 = vld [vmem:[%s10954_s10 + $0x370] sm:$0xff]  }
  0x6a   : > { %8989 = vmatprep.subr.bf16.mxu1 %v10013_v56  ;;  %v10073_v56 = vld [vmem:[%s10954_s10 + $0x3f0] sm:$0xff]  }
  0x6c   : > { %8968 = vmatpush3.bf16.msra.mxu0 %v10014_v57  ;;  %v10074_v57 = vld [vmem:[%s10954_s10 + $0x330] sm:$0xff]  }
  0x6d   : > { %8990 = vmatpush3.bf16.msra.mxu1 %v10015_v58  ;;  %8969 = vmatprep.subr.bf16.mxu0 %v10016_v59  ;;  %v10075_v58 = vld [vmem:[%s10954_s10 + $0x3b0] sm:$0xff]   ;;  %v10076_v59 = vld [vmem:[%s10954_s10 + $0x368] sm:$0xff]  }
  0x6e   : > { %8991 = vmatprep.subr.bf16.mxu1 %v10017_v60  ;;  %v10077_v60 = vld [vmem:[%s10954_s10 + $0x3e8] sm:$0xff]  }
  0x70   : > { %8970 = vmatpush3.bf16.msra.mxu0 %v10018_v61  ;;  %v10078_v61 = vld [vmem:[%s10954_s10 + $0x328] sm:$0xff]  }
  0x71   : > { %8992 = vmatpush3.bf16.msra.mxu1 %v10019_v62  ;;  %8971 = vmatprep.subr.bf16.mxu0 %v10020_v63  ;;  %v10079_v62 = vld [vmem:[%s10954_s10 + $0x3a8] sm:$0xff]   ;;  %v10080_v63 = vld [vmem:[%s10954_s10 + $0x360] sm:$0xff]  }
  0x72   : > { %8993 = vmatprep.subr.bf16.mxu1 %v10021_v0  ;;  %v10081_v0 = vld [vmem:[%s10954_s10 + $0x3e0] sm:$0xff]  }
  0x74   : > { %8972 = vmatpush3.bf16.msra.mxu0 %v10022_v1  ;;  %v10082_v1 = vld [vmem:[%s10954_s10 + $0x320] sm:$0xff]  }
  0x75   : > { %8994 = vmatpush3.bf16.msra.mxu1 %v10023_v2  ;;  %8973 = vmatprep.subr.bf16.mxu0 %v10024_v3  ;;  %v10083_v2 = vld [vmem:[%s10954_s10 + $0x3a0] sm:$0xff]   ;;  %v10084_v3 = vld [vmem:[%s10954_s10 + $0x358] sm:$0xff]  }
  0x76   : > { %8995 = vmatprep.subr.bf16.mxu1 %v10025_v4  ;;  %v10085_v4 = vld [vmem:[%s10954_s10 + $0x3d8] sm:$0xff]  }
  0x78   : > { %8974 = vmatpush3.bf16.msra.mxu0 %v10026_v5  ;;  %v10086_v5 = vld [vmem:[%s10954_s10 + $0x318] sm:$0xff]  }
  0x79   : > { %8996 = vmatpush3.bf16.msra.mxu1 %v10027_v6  ;;  %9003 = vmatprep.subr.bf16.mxu0 %v10032_v13  ;;  %v10087_v6 = vld [vmem:[%s10954_s10 + $0x398] sm:$0xff]   ;;  %v10094_v13 = vld [vmem:[%s10954_s10 + $0x308] sm:$0xff]  }
  0x7a   : > { %9025 = vmatprep.subr.bf16.mxu1 %v10033_v14  ;;  %v10095_v14 = vld [vmem:[%s10954_s10 + $0x388] sm:$0xff]  }
  0x7b   : > { %6346 = vmatmul.mubr.bf16.vlgmr.msra.gmra.mxu0 %v8123_v8  ;;  %v10089_v8 = vld [vmem:[%s10954_s10 + $0x3d0] sm:$0xff]  }
  0x7c   : > { %6386 = vmatmul.mubr.bf16.vlgmr.msra.gmra.mxu1 %v8125_v11  ;;  %9004 = vmatpush3.bf16.msra.mxu0 %v10034_v15  ;;  %v10092_v11 = vld [vmem:[%s10954_s10 + $0x348] sm:$0xff]   ;;  %v10096_v15 = vld [vmem:[%s10954_s10 + $0x340] sm:$0xff]  }
  0x7d   : > { %9026 = vmatpush3.bf16.msra.mxu1 %v10035_v16  ;;  %9005 = vmatprep.subr.bf16.mxu0 %v10036_v17  ;;  %v10097_v16 = vld [vmem:[%s10954_s10 + $0x3c0] sm:$0xff]  }
  0x7e   : > { %9027 = vmatprep.subr.bf16.mxu1 %v10037_v18  ;;  %6425 = vmatprep.mubr.bf16.mxu0 %v8128_v48  ;;  %v10098_v17 = vld [vmem:[%s10954_s10 + $0x300] sm:$0xff]   ;;  %v10127_v48 = vld [vmem:[%s10954_s10 + $0x490] sm:$0xff]  }
  0x7f   : > { %6465 = vmatprep.mubr.bf16.mxu1 %v8130_v50  ;;  %v10099_v18 = vld [vmem:[%s10954_s10 + $0x380] sm:$0xff]   ;;  %v10129_v50 = vld [vmem:[%s10954_s10 + $0x4c8] sm:$0xff]  }
  0x80   : > { %9006 = vmatpush3.bf16.msra.mxu0 %v10038_v19  ;;  %v255_v19 = vld [vmem:[%s10978_s5 + $0x30] sm:$0xff] }
  0x81   : > { %9028 = vmatpush3.bf16.msra.mxu1 %v10039_v20  ;;  %9007 = vmatprep.subr.bf16.mxu0 %v10040_v21  ;;  %v256_v20 = vld [vmem:[%s10978_s5 + $0x38] sm:$0xff]  ;;  %v8131_v21 = vcombine.low %v255_v19, %v255_v19 }
  0x82   : > { %9029 = vmatprep.subr.bf16.mxu1 %v10041_v22  ;;  %v8132_v22 = vcombine.high %v255_v19, %v255_v19  ;;  %v10160_v19 = vld [vmem:[%s10954_s10 + $0x550] sm:$0xff]  }
  0x84   : > { %9008 = vmatpush3.bf16.msra.mxu0 %v10042_v23  ;;  %v8133_v23 = vcombine.low %v256_v20, %v256_v20 }
  0x85   : > { %9030 = vmatpush3.bf16.msra.mxu1 %v10043_v24  ;;  %9009 = vmatprep.subr.bf16.mxu0 %v10044_v25  ;;  %v10104_v24 = vld [vmem:[%s10954_s10 + $0x478] sm:$0xff]   ;;  %v8134_v25 = vcombine.high %v256_v20, %v256_v20  ;;  %v10161_v20 = vld [vmem:[%s10954_s10 + $0x5d0] sm:$0xff]  }
  0x86   : > { %9031 = vmatprep.subr.bf16.mxu1 %v10045_v26  ;;  %v10105_v26 = vld [vmem:[%s10954_s10 + $0x4f8] sm:$0xff]  }
  0x88   : > { %9010 = vmatpush3.bf16.msra.mxu0 %v10046_v27  ;;  %v10106_v27 = vld [vmem:[%s10954_s10 + $0x438] sm:$0xff]  }
  0x89   : > { %9032 = vmatpush3.bf16.msra.mxu1 %v10047_v28  ;;  %9011 = vmatprep.subr.bf16.mxu0 %v10048_v29  ;;  %v10107_v28 = vld [vmem:[%s10954_s10 + $0x4b8] sm:$0xff]   ;;  %v10108_v29 = vld [vmem:[%s10954_s10 + $0x470] sm:$0xff]  }
  0x8a   : > { %9033 = vmatprep.subr.bf16.mxu1 %v10049_v30  ;;  %v10109_v30 = vld [vmem:[%s10954_s10 + $0x4f0] sm:$0xff]  }
  0x8c   : > { %9012 = vmatpush3.bf16.msra.mxu0 %v10050_v31  ;;  %v10110_v31 = vld [vmem:[%s10954_s10 + $0x430] sm:$0xff]  }
  0x8d   : > { %9034 = vmatpush3.bf16.msra.mxu1 %v10051_v32  ;;  %9013 = vmatprep.subr.bf16.mxu0 %v10052_v33  ;;  %v10111_v32 = vld [vmem:[%s10954_s10 + $0x4b0] sm:$0xff]   ;;  %v10112_v33 = vld [vmem:[%s10954_s10 + $0x468] sm:$0xff]  }
  0x8e   : > { %9035 = vmatprep.subr.bf16.mxu1 %v10053_v34  ;;  %v10113_v34 = vld [vmem:[%s10954_s10 + $0x4e8] sm:$0xff]  }
  0x90   : > { %9014 = vmatpush3.bf16.msra.mxu0 %v10054_v35  ;;  %v10114_v35 = vld [vmem:[%s10954_s10 + $0x428] sm:$0xff]  }
  0x91   : > { %9036 = vmatpush3.bf16.msra.mxu1 %v10055_v36  ;;  %9015 = vmatprep.subr.bf16.mxu0 %v10056_v37  ;;  %v10115_v36 = vld [vmem:[%s10954_s10 + $0x4a8] sm:$0xff]   ;;  %v10116_v37 = vld [vmem:[%s10954_s10 + $0x460] sm:$0xff]  }
  0x92   : > { %9037 = vmatprep.subr.bf16.mxu1 %v10057_v38  ;;  %v10117_v38 = vld [vmem:[%s10954_s10 + $0x4e0] sm:$0xff]  }
  0x94   : > { %9016 = vmatpush3.bf16.msra.mxu0 %v10058_v39  ;;  %v10118_v39 = vld [vmem:[%s10954_s10 + $0x420] sm:$0xff]  }
  0x95   : > { %9038 = vmatpush3.bf16.msra.mxu1 %v10059_v40  ;;  %9017 = vmatprep.subr.bf16.mxu0 %v10060_v41  ;;  %v10119_v40 = vld [vmem:[%s10954_s10 + $0x4a0] sm:$0xff]   ;;  %v10120_v41 = vld [vmem:[%s10954_s10 + $0x458] sm:$0xff]  }
  0x96   : > { %9039 = vmatprep.subr.bf16.mxu1 %v10061_v42  ;;  %v10121_v42 = vld [vmem:[%s10954_s10 + $0x4d8] sm:$0xff]  }
  0x98   : > { %9018 = vmatpush3.bf16.msra.mxu0 %v10062_v43  ;;  %v10122_v43 = vld [vmem:[%s10954_s10 + $0x418] sm:$0xff]  }
  0x99   : > { %9040 = vmatpush3.bf16.msra.mxu1 %v10063_v44  ;;  %9047 = vmatprep.subr.bf16.mxu0 %v10068_v51  ;;  %v10123_v44 = vld [vmem:[%s10954_s10 + $0x498] sm:$0xff]   ;;  %v10130_v51 = vld [vmem:[%s10954_s10 + $0x408] sm:$0xff]  }
  0x9a   : > { %9069 = vmatprep.subr.bf16.mxu1 %v10069_v52  ;;  %v10131_v52 = vld [vmem:[%s10954_s10 + $0x488] sm:$0xff]  }
  0x9b   : > { %6426 = vmatmul.mubr.bf16.vlgmr.msra.gmra.mxu0 %v8127_v47  ;;  %v10126_v47 = vld [vmem:[%s10954_s10 + $0x410] sm:$0xff]  }
  0x9c   : > { %6466 = vmatmul.mubr.bf16.vlgmr.msra.gmra.mxu1 %v8129_v49  ;;  %9048 = vmatpush3.bf16.msra.mxu0 %v10070_v53  ;;  %v10128_v49 = vld [vmem:[%s10954_s10 + $0x448] sm:$0xff]   ;;  %v10132_v53 = vld [vmem:[%s10954_s10 + $0x440] sm:$0xff]  }
  0x9d   : > { %9070 = vmatpush3.bf16.msra.mxu1 %v10071_v54  ;;  %9049 = vmatprep.subr.bf16.mxu0 %v10072_v55  ;;  %v10133_v54 = vld [vmem:[%s10954_s10 + $0x4c0] sm:$0xff]  }
  0x9e   : > { %9071 = vmatprep.subr.bf16.mxu1 %v10073_v56  ;;  %6505 = vmatprep.mubr.bf16.mxu0 %v8132_v22  ;;  %v10134_v55 = vld [vmem:[%s10954_s10 + $0x400] sm:$0xff]   ;;  %v10163_v22 = vld [vmem:[%s10954_s10 + $0x590] sm:$0xff]  }
  0x9f   : > { %6545 = vmatprep.mubr.bf16.mxu1 %v8134_v25  ;;  %v10135_v56 = vld [vmem:[%s10954_s10 + $0x480] sm:$0xff]   ;;  %v10166_v25 = vld [vmem:[%s10954_s10 + $0x508] sm:$0xff]  }
  0xa0   : > { %9050 = vmatpush3.bf16.msra.mxu0 %v10074_v57  ;;  %v257_v57 = vld [vmem:[%s10978_s5 + $0x40] sm:$0xff] }
  0xa1   : > { %9072 = vmatpush3.bf16.msra.mxu1 %v10075_v58  ;;  %9051 = vmatprep.subr.bf16.mxu0 %v10076_v59  ;;  %v8135_v58 = vcombine.low %v257_v57, %v257_v57  ;;  %v8136_v59 = vcombine.high %v257_v57, %v257_v57  ;;  %v10196_v57 = vld [vmem:[%s10954_s10 + $0x650] sm:$0xff]  }
  0xa2   : > { %9073 = vmatprep.subr.bf16.mxu1 %v10077_v60  ;;  %v258_v60 = vld [vmem:[%s10978_s5 + $0x48] sm:$0xff] }
  0xa4   : > { %9052 = vmatpush3.bf16.msra.mxu0 %v10078_v61  ;;  %v8137_v61 = vcombine.low %v258_v60, %v258_v60 }
  0xa5   : > { %9074 = vmatpush3.bf16.msra.mxu1 %v10079_v62  ;;  %9053 = vmatprep.subr.bf16.mxu0 %v10080_v63  ;;  %v8138_v62 = vcombine.high %v258_v60, %v258_v60  ;;  %v10140_v63 = vld [vmem:[%s10954_s10 + $0x578] sm:$0xff]   ;;  %v10199_v60 = vld [vmem:[%s10954_s10 + $0x690] sm:$0xff]  }
  0xa6   : > { %9075 = vmatprep.subr.bf16.mxu1 %v10081_v0  ;;  %v10141_v0 = vld [vmem:[%s10954_s10 + $0x5f8] sm:$0xff]  }
  0xa8   : > { %9054 = vmatpush3.bf16.msra.mxu0 %v10082_v1  ;;  %v10142_v1 = vld [vmem:[%s10954_s10 + $0x538] sm:$0xff]  }
  0xa9   : > { %9076 = vmatpush3.bf16.msra.mxu1 %v10083_v2  ;;  %9055 = vmatprep.subr.bf16.mxu0 %v10084_v3  ;;  %v10143_v2 = vld [vmem:[%s10954_s10 + $0x5b8] sm:$0xff]   ;;  %v10144_v3 = vld [vmem:[%s10954_s10 + $0x570] sm:$0xff]  }
  0xaa   : > { %9077 = vmatprep.subr.bf16.mxu1 %v10085_v4  ;;  %v10145_v4 = vld [vmem:[%s10954_s10 + $0x5f0] sm:$0xff]  }
  0xac   : > { %9056 = vmatpush3.bf16.msra.mxu0 %v10086_v5  ;;  %v10146_v5 = vld [vmem:[%s10954_s10 + $0x530] sm:$0xff]  }
  0xad   : > { %9078 = vmatpush3.bf16.msra.mxu1 %v10087_v6  ;;  %9057 = vmatprep.subr.bf16.mxu0 %v10088_v7  ;;  %v10147_v6 = vld [vmem:[%s10954_s10 + $0x5b0] sm:$0xff]   ;;  %v10148_v7 = vld [vmem:[%s10954_s10 + $0x568] sm:$0xff]  }
  0xae   : > { %9079 = vmatprep.subr.bf16.mxu1 %v10089_v8  ;;  %v10149_v8 = vld [vmem:[%s10954_s10 + $0x5e8] sm:$0xff]  }
  0xb0   : > { %9058 = vmatpush3.bf16.msra.mxu0 %v10090_v9  ;;  %v10150_v9 = vld [vmem:[%s10954_s10 + $0x528] sm:$0xff]  }
  0xb1   : > { %9080 = vmatpush3.bf16.msra.mxu1 %v10091_v10  ;;  %9059 = vmatprep.subr.bf16.mxu0 %v10092_v11  ;;  %v10151_v10 = vld [vmem:[%s10954_s10 + $0x5a8] sm:$0xff]   ;;  %v10152_v11 = vld [vmem:[%s10954_s10 + $0x560] sm:$0xff]  }
  0xb2   : > { %9081 = vmatprep.subr.bf16.mxu1 %v10093_v12  ;;  %v10153_v12 = vld [vmem:[%s10954_s10 + $0x5e0] sm:$0xff]  }
  0xb4   : > { %9060 = vmatpush3.bf16.msra.mxu0 %v10094_v13  ;;  %v10154_v13 = vld [vmem:[%s10954_s10 + $0x520] sm:$0xff]  }
  0xb5   : > { %9082 = vmatpush3.bf16.msra.mxu1 %v10095_v14  ;;  %9061 = vmatprep.subr.bf16.mxu0 %v10096_v15  ;;  %v10155_v14 = vld [vmem:[%s10954_s10 + $0x5a0] sm:$0xff]   ;;  %v10156_v15 = vld [vmem:[%s10954_s10 + $0x558] sm:$0xff]  }
  0xb6   : > { %9083 = vmatprep.subr.bf16.mxu1 %v10097_v16  ;;  %v10157_v16 = vld [vmem:[%s10954_s10 + $0x5d8] sm:$0xff]  }
  0xb8   : > { %9062 = vmatpush3.bf16.msra.mxu0 %v10098_v17  ;;  %v10158_v17 = vld [vmem:[%s10954_s10 + $0x518] sm:$0xff]  }
  0xb9   : > { %9084 = vmatpush3.bf16.msra.mxu1 %v10099_v18  ;;  %9091 = vmatprep.subr.bf16.mxu0 %v10104_v24  ;;  %v10159_v18 = vld [vmem:[%s10954_s10 + $0x598] sm:$0xff]   ;;  %v10165_v24 = vld [vmem:[%s10954_s10 + $0x5c8] sm:$0xff]  }
  0xba   : > { %9113 = vmatprep.subr.bf16.mxu1 %v10105_v26  ;;  %v10167_v26 = vld [vmem:[%s10954_s10 + $0x588] sm:$0xff]  }
  0xbb   : > { %6506 = vmatmul.mubr.bf16.vlgmr.msra.gmra.mxu0 %v8131_v21  ;;  %v10162_v21 = vld [vmem:[%s10954_s10 + $0x510] sm:$0xff]  }
  0xbc   : > { %6546 = vmatmul.mubr.bf16.vlgmr.msra.gmra.mxu1 %v8133_v23  ;;  %9092 = vmatpush3.bf16.msra.mxu0 %v10106_v27  ;;  %v10164_v23 = vld [vmem:[%s10954_s10 + $0x548] sm:$0xff]   ;;  %v10168_v27 = vld [vmem:[%s10954_s10 + $0x540] sm:$0xff]  }
  0xbd   : > { %9114 = vmatpush3.bf16.msra.mxu1 %v10107_v28  ;;  %9093 = vmatprep.subr.bf16.mxu0 %v10108_v29  ;;  %v10169_v28 = vld [vmem:[%s10954_s10 + $0x5c0] sm:$0xff]  }
  0xbe   : > { %9115 = vmatprep.subr.bf16.mxu1 %v10109_v30  ;;  %6585 = vmatprep.mubr.bf16.mxu0 %v8136_v59  ;;  %v10170_v29 = vld [vmem:[%s10954_s10 + $0x500] sm:$0xff]   ;;  %v10198_v59 = vld [vmem:[%s10954_s10 + $0x610] sm:$0xff]  }
  0xbf   : > { %6625 = vmatprep.mubr.bf16.mxu1 %v8138_v62  ;;  %v10171_v30 = vld [vmem:[%s10954_s10 + $0x580] sm:$0xff]   ;;  %v10201_v62 = vld [vmem:[%s10954_s10 + $0x6c8] sm:$0xff]  }
  0xc0   : > { %9094 = vmatpush3.bf16.msra.mxu0 %v10110_v31  ;;  %v259_v31 = vld [vmem:[%s10978_s5 + $0x50] sm:$0xff] }
  0xc1   : > { %9116 = vmatpush3.bf16.msra.mxu1 %v10111_v32  ;;  %9095 = vmatprep.subr.bf16.mxu0 %v10112_v33  ;;  %v260_v32 = vld [vmem:[%s10978_s5 + $0x58] sm:$0xff]  ;;  %v8139_v33 = vcombine.low %v259_v31, %v259_v31 }
  0xc2   : > { %9117 = vmatprep.subr.bf16.mxu1 %v10113_v34  ;;  %v8140_v34 = vcombine.high %v259_v31, %v259_v31  ;;  %v10221_v31 = vld [vmem:[%s10954_s10 + $0x7e8] sm:$0xff]  }
  0xc4   : > { %9096 = vmatpush3.bf16.msra.mxu0 %v10114_v35  ;;  %v8141_v35 = vcombine.low %v260_v32, %v260_v32 }
  0xc5   : > { %9118 = vmatpush3.bf16.msra.mxu1 %v10115_v36  ;;  %9097 = vmatprep.subr.bf16.mxu0 %v10116_v37  ;;  %v8142_v36 = vcombine.high %v260_v32, %v260_v32  ;;  %v10176_v37 = vld [vmem:[%s10954_s10 + $0x678] sm:$0xff]   ;;  %v10222_v32 = vld [vmem:[%s10954_s10 + $0x728] sm:$0xff]  }
  0xc6   : > { %9119 = vmatprep.subr.bf16.mxu1 %v10117_v38  ;;  %v10177_v38 = vld [vmem:[%s10954_s10 + $0x6f8] sm:$0xff]  }
  0xc8   : > { %9098 = vmatpush3.bf16.msra.mxu0 %v10118_v39  ;;  %v10178_v39 = vld [vmem:[%s10954_s10 + $0x638] sm:$0xff]  }
  0xc9   : > { %9120 = vmatpush3.bf16.msra.mxu1 %v10119_v40  ;;  %9099 = vmatprep.subr.bf16.mxu0 %v10120_v41  ;;  %v10179_v40 = vld [vmem:[%s10954_s10 + $0x6b8] sm:$0xff]   ;;  %v10180_v41 = vld [vmem:[%s10954_s10 + $0x670] sm:$0xff]  }
  0xca   : > { %9121 = vmatprep.subr.bf16.mxu1 %v10121_v42  ;;  %v10181_v42 = vld [vmem:[%s10954_s10 + $0x6f0] sm:$0xff]  }
  0xcc   : > { %9100 = vmatpush3.bf16.msra.mxu0 %v10122_v43  ;;  %v10182_v43 = vld [vmem:[%s10954_s10 + $0x630] sm:$0xff]  }
  0xcd   : > { %9122 = vmatpush3.bf16.msra.mxu1 %v10123_v44  ;;  %9101 = vmatprep.subr.bf16.mxu0 %v10124_v45  ;;  %v10183_v44 = vld [vmem:[%s10954_s10 + $0x6b0] sm:$0xff]   ;;  %v10184_v45 = vld [vmem:[%s10954_s10 + $0x668] sm:$0xff]  }
  0xce   : > { %9123 = vmatprep.subr.bf16.mxu1 %v10125_v46  ;;  %v10185_v46 = vld [vmem:[%s10954_s10 + $0x6e8] sm:$0xff]  }
  0xd0   : > { %9102 = vmatpush3.bf16.msra.mxu0 %v10126_v47  ;;  %v10186_v47 = vld [vmem:[%s10954_s10 + $0x628] sm:$0xff]  }
  0xd1   : > { %9124 = vmatpush3.bf16.msra.mxu1 %v10127_v48  ;;  %9103 = vmatprep.subr.bf16.mxu0 %v10128_v49  ;;  %v10187_v48 = vld [vmem:[%s10954_s10 + $0x6a8] sm:$0xff]   ;;  %v10188_v49 = vld [vmem:[%s10954_s10 + $0x660] sm:$0xff]  }
  0xd2   : > { %9125 = vmatprep.subr.bf16.mxu1 %v10129_v50  ;;  %v10189_v50 = vld [vmem:[%s10954_s10 + $0x6e0] sm:$0xff]  }
  0xd4   : > { %9104 = vmatpush3.bf16.msra.mxu0 %v10130_v51  ;;  %v10190_v51 = vld [vmem:[%s10954_s10 + $0x620] sm:$0xff]  }
  0xd5   : > { %9126 = vmatpush3.bf16.msra.mxu1 %v10131_v52  ;;  %9105 = vmatprep.subr.bf16.mxu0 %v10132_v53  ;;  %v10191_v52 = vld [vmem:[%s10954_s10 + $0x6a0] sm:$0xff]   ;;  %v10192_v53 = vld [vmem:[%s10954_s10 + $0x658] sm:$0xff]  }
  0xd6   : > { %9127 = vmatprep.subr.bf16.mxu1 %v10133_v54  ;;  %v10193_v54 = vld [vmem:[%s10954_s10 + $0x6d8] sm:$0xff]  }
  0xd8   : > { %9106 = vmatpush3.bf16.msra.mxu0 %v10134_v55  ;;  %v10194_v55 = vld [vmem:[%s10954_s10 + $0x618] sm:$0xff]  }
  0xd9   : > { %9128 = vmatpush3.bf16.msra.mxu1 %v10135_v56  ;;  %9135 = vmatprep.subr.bf16.mxu0 %v10140_v63  ;;  %v10195_v56 = vld [vmem:[%s10954_s10 + $0x698] sm:$0xff]   ;;  %v10202_v63 = vld [vmem:[%s10954_s10 + $0x608] sm:$0xff]  }
  0xda   : > { %9157 = vmatprep.subr.bf16.mxu1 %v10141_v0  ;;  %v10203_v0 = vld [vmem:[%s10954_s10 + $0x688] sm:$0xff]  }
  0xdb   : > { %6586 = vmatmul.mubr.bf16.vlgmr.msra.gmra.mxu0 %v8135_v58  ;;  %v10197_v58 = vld [vmem:[%s10954_s10 + $0x6d0] sm:$0xff]  }
  0xdc   : > { %6626 = vmatmul.mubr.bf16.vlgmr.msra.gmra.mxu1 %v8137_v61  ;;  %9136 = vmatpush3.bf16.msra.mxu0 %v10142_v1  ;;  %v10200_v61 = vld [vmem:[%s10954_s10 + $0x648] sm:$0xff]   ;;  %v10204_v1 = vld [vmem:[%s10954_s10 + $0x640] sm:$0xff]  }
  0xdd   : > { %9158 = vmatpush3.bf16.msra.mxu1 %v10143_v2  ;;  %9137 = vmatprep.subr.bf16.mxu0 %v10144_v3  ;;  %v10205_v2 = vld [vmem:[%s10954_s10 + $0x6c0] sm:$0xff]  }
  0xde   : > { %9159 = vmatprep.subr.bf16.mxu1 %v10145_v4  ;;  %6665 = vmatprep.mubr.bf16.mxu0 %v8140_v34  ;;  %v10206_v3 = vld [vmem:[%s10954_s10 + $0x600] sm:$0xff]  }
  0xdf   : > { %6705 = vmatprep.mubr.bf16.mxu1 %v8142_v36  ;;  %v10207_v4 = vld [vmem:[%s10954_s10 + $0x680] sm:$0xff]  }
  0xe0   : > { %9138 = vmatpush3.bf16.msra.mxu0 %v10146_v5  ;;  %v261_v5 = vld [vmem:[%s10978_s5 + $0x60] sm:$0xff]  ;;  %v10224_v34 = vld [vmem:[%s10954_s10 + $0x760] sm:$0xff]  }
  0xe1   : > { %9160 = vmatpush3.bf16.msra.mxu1 %v10147_v6  ;;  %9139 = vmatprep.subr.bf16.mxu0 %v10148_v7  ;;  %v262_v6 = vld [vmem:[%s10978_s5 + $0x68] sm:$0xff] }
  0xe2   : > { %9161 = vmatprep.subr.bf16.mxu1 %v10149_v8  ;;  %v10226_v36 = vld [vmem:[%s10954_s10 + $0x720] sm:$0xff]  }
  0xe4   : > { %9140 = vmatpush3.bf16.msra.mxu0 %v10150_v9  ;;  %v8143_v9 = vcombine.low %v261_v5, %v261_v5 }
  0xe5   : > { %9162 = vmatpush3.bf16.msra.mxu1 %v10151_v10  ;;  %9141 = vmatprep.subr.bf16.mxu0 %v10152_v11  ;;  %v8144_v10 = vcombine.high %v261_v5, %v261_v5  ;;  %v8145_v11 = vcombine.low %v262_v6, %v262_v6  ;;  %v10251_v5 = vld [vmem:[%s10954_s10 + $0x8b8] sm:$0xff]  }
  0xe6   : > { %9163 = vmatprep.subr.bf16.mxu1 %v10153_v12  ;;  %v10212_v12 = vld [vmem:[%s10954_s10 + $0x778] sm:$0xff]  }
  0xe8   : > { %9142 = vmatpush3.bf16.msra.mxu0 %v10154_v13  ;;  %v8146_v13 = vcombine.high %v262_v6, %v262_v6 }
  0xe9   : > { %9164 = vmatpush3.bf16.msra.mxu1 %v10155_v14  ;;  %9143 = vmatprep.subr.bf16.mxu0 %v10156_v15  ;;  %v10213_v14 = vld [vmem:[%s10954_s10 + $0x7f8] sm:$0xff]  }
  0xea   : > { %9165 = vmatprep.subr.bf16.mxu1 %v10157_v16 }
  0xec   : > { %9144 = vmatpush3.bf16.msra.mxu0 %v10158_v17  ;;  %v10214_v17 = vld [vmem:[%s10954_s10 + $0x738] sm:$0xff]  }
  0xed   : > { %9166 = vmatpush3.bf16.msra.mxu1 %v10159_v18  ;;  %9145 = vmatprep.subr.bf16.mxu0 %v10160_v19 }
  0xee   : > { %9167 = vmatprep.subr.bf16.mxu1 %v10161_v20  ;;  %v10215_v20 = vld [vmem:[%s10954_s10 + $0x7b8] sm:$0xff]  }
  0xf0   : > { %9146 = vmatpush3.bf16.msra.mxu0 %v10162_v21 }
  0xf1   : > { %9168 = vmatpush3.bf16.msra.mxu1 %v10163_v22  ;;  %9147 = vmatprep.subr.bf16.mxu0 %v10164_v23 }
  0xf2   : > { %9169 = vmatprep.subr.bf16.mxu1 %v10165_v24  ;;  %v10216_v24 = vld [vmem:[%s10954_s10 + $0x770] sm:$0xff]  }
  0xf4   : > { %9148 = vmatpush3.bf16.msra.mxu0 %v10166_v25  ;;  %v10217_v25 = vld [vmem:[%s10954_s10 + $0x7f0] sm:$0xff]  }
  0xf5   : > { %9170 = vmatpush3.bf16.msra.mxu1 %v10167_v26  ;;  %9149 = vmatprep.subr.bf16.mxu0 %v10168_v27 }
  0xf6   : > { %9171 = vmatprep.subr.bf16.mxu1 %v10169_v28  ;;  %v10218_v28 = vld [vmem:[%s10954_s10 + $0x730] sm:$0xff]  }
  0xf8   : > { %9150 = vmatpush3.bf16.msra.mxu0 %v10170_v29  ;;  %v10219_v29 = vld [vmem:[%s10954_s10 + $0x7b0] sm:$0xff]  }
  0xf9   : > { %9172 = vmatpush3.bf16.msra.mxu1 %v10171_v30  ;;  %9179 = vmatprep.subr.bf16.mxu0 %v10176_v37  ;;  %v10220_v30 = vld [vmem:[%s10954_s10 + $0x768] sm:$0xff]   ;;  %v10227_v37 = vld [vmem:[%s10954_s10 + $0x7a0] sm:$0xff]  }
  0xfa   : > { %9201 = vmatprep.subr.bf16.mxu1 %v10177_v38  ;;  %v10228_v38 = vld [vmem:[%s10954_s10 + $0x758] sm:$0xff]  }
  0xfb   : > { %6666 = vmatmul.mubr.bf16.vlgmr.msra.gmra.mxu0 %v8139_v33  ;;  %v10223_v33 = vld [vmem:[%s10954_s10 + $0x7a8] sm:$0xff]  }
  0xfc   : > { %6706 = vmatmul.mubr.bf16.vlgmr.msra.gmra.mxu1 %v8141_v35  ;;  %9180 = vmatpush3.bf16.msra.mxu0 %v10178_v39  ;;  %v10225_v35 = vld [vmem:[%s10954_s10 + $0x7e0] sm:$0xff]   ;;  %v10229_v39 = vld [vmem:[%s10954_s10 + $0x7d8] sm:$0xff]  }
  0xfd   : > { %9202 = vmatpush3.bf16.msra.mxu1 %v10179_v40  ;;  %9181 = vmatprep.subr.bf16.mxu0 %v10180_v41  ;;  %v10230_v40 = vld [vmem:[%s10954_s10 + $0x718] sm:$0xff]  }
  0xfe   : > { %9203 = vmatprep.subr.bf16.mxu1 %v10181_v42  ;;  %6745 = vmatprep.mubr.bf16.mxu0 %v8144_v10  ;;  %v10231_v41 = vld [vmem:[%s10954_s10 + $0x798] sm:$0xff]   ;;  %v10232_v42 = vld [vmem:[%s10954_s10 + $0x750] sm:$0xff]  }
  0xff   : > { %6785 = vmatprep.mubr.bf16.mxu1 %v8146_v13  ;;  %v10253_v10 = vld [vmem:[%s10954_s10 + $0x8f0] sm:$0xff]  }
 0x100   : > { %9182 = vmatpush3.bf16.msra.mxu0 %v10182_v43  ;;  %v10233_v43 = vld [vmem:[%s10954_s10 + $0x7d0] sm:$0xff]  }
 0x101   : > { %9204 = vmatpush3.bf16.msra.mxu1 %v10183_v44  ;;  %9183 = vmatprep.subr.bf16.mxu0 %v10184_v45  ;;  %v10234_v44 = vld [vmem:[%s10954_s10 + $0x710] sm:$0xff]  }
 0x102   : > { %9205 = vmatprep.subr.bf16.mxu1 %v10185_v46  ;;  %v10235_v45 = vld [vmem:[%s10954_s10 + $0x790] sm:$0xff]   ;;  %v10236_v46 = vld [vmem:[%s10954_s10 + $0x748] sm:$0xff]  }
 0x104   : > { %9184 = vmatpush3.bf16.msra.mxu0 %v10186_v47  ;;  %v10237_v47 = vld [vmem:[%s10954_s10 + $0x7c8] sm:$0xff]  }
 0x105   : > { %9206 = vmatpush3.bf16.msra.mxu1 %v10187_v48  ;;  %9185 = vmatprep.subr.bf16.mxu0 %v10188_v49  ;;  %v10238_v48 = vld [vmem:[%s10954_s10 + $0x708] sm:$0xff]  }
 0x106   : > { %9207 = vmatprep.subr.bf16.mxu1 %v10189_v50  ;;  %v10239_v49 = vld [vmem:[%s10954_s10 + $0x788] sm:$0xff]   ;;  %v10240_v50 = vld [vmem:[%s10954_s10 + $0x740] sm:$0xff]  }
 0x108   : > { %9186 = vmatpush3.bf16.msra.mxu0 %v10190_v51  ;;  %v10241_v51 = vld [vmem:[%s10954_s10 + $0x7c0] sm:$0xff]  }
 0x109   : > { %9208 = vmatpush3.bf16.msra.mxu1 %v10191_v52  ;;  %9187 = vmatprep.subr.bf16.mxu0 %v10192_v53  ;;  %v10242_v52 = vld [vmem:[%s10954_s10 + $0x700] sm:$0xff]  }
 0x10a   : > { %9209 = vmatprep.subr.bf16.mxu1 %v10193_v54  ;;  %v10243_v53 = vld [vmem:[%s10954_s10 + $0x780] sm:$0xff]   ;;  %v263_v54 = vld [vmem:[%s10978_s5 + $0x70] sm:$0xff] }
 0x10c   : > { %9188 = vmatpush3.bf16.msra.mxu0 %v10194_v55  ;;  %v8147_v55 = vcombine.low %v263_v54, %v263_v54 }
 0x10d   : > { %9210 = vmatpush3.bf16.msra.mxu1 %v10195_v56  ;;  %9189 = vmatprep.subr.bf16.mxu0 %v10196_v57  ;;  %v8148_v56 = vcombine.high %v263_v54, %v263_v54  ;;  %v264_v57 = vld [vmem:[%s10978_s5 + $0x78] sm:$0xff]  ;;  %v10287_v54 = vld [vmem:[%s10954_s10 + $0x9b8] sm:$0xff]  }
 0x10e   : > { %9211 = vmatprep.subr.bf16.mxu1 %v10197_v58 }
 0x110   : > { %9190 = vmatpush3.bf16.msra.mxu0 %v10198_v59 }
 0x111   : > { %9212 = vmatpush3.bf16.msra.mxu1 %v10199_v60  ;;  %9191 = vmatprep.subr.bf16.mxu0 %v10200_v61  ;;  %v8149_v60 = vcombine.low %v264_v57, %v264_v57  ;;  %v8150_v61 = vcombine.high %v264_v57, %v264_v57 }
 0x112   : > { %9213 = vmatprep.subr.bf16.mxu1 %v10201_v62  ;;  %v10248_v62 = vld [vmem:[%s10954_s10 + $0x878] sm:$0xff]  }
 0x114   : > { %9192 = vmatpush3.bf16.msra.mxu0 %v10202_v63  ;;  %v10249_v63 = vld [vmem:[%s10954_s10 + $0x8f8] sm:$0xff]  }
 0x115   : > { %9214 = vmatpush3.bf16.msra.mxu1 %v10203_v0  ;;  %9193 = vmatprep.subr.bf16.mxu0 %v10204_v1 }
 0x116   : > { %9215 = vmatprep.subr.bf16.mxu1 %v10205_v2  ;;  %v10250_v2 = vld [vmem:[%s10954_s10 + $0x838] sm:$0xff]  }
 0x118   : > { %9194 = vmatpush3.bf16.msra.mxu0 %v10206_v3 }
 0x119   : > { %9216 = vmatpush3.bf16.msra.mxu1 %v10207_v4  ;;  %9223 = vmatprep.subr.bf16.mxu0 %v10212_v12 }
 0x11a   : > { %9245 = vmatprep.subr.bf16.mxu1 %v10213_v14  ;;  %v10254_v14 = vld [vmem:[%s10954_s10 + $0x830] sm:$0xff]  }
 0x11b   : > { %v8931_v7 = vpop.f32.mrf.mxu0  ;;  %6746 = vmatmul.mubr.bf16.vlgmr.msra.gmra.mxu0 %v8143_v9  ;;  %v10252_v9 = vld [vmem:[%s10954_s10 + $0x870] sm:$0xff]  }
 0x11c   : > { %v8953_v8 = vpop.f32.mrf.mxu1  ;;  %6786 = vmatmul.mubr.bf16.vlgmr.msra.gmra.mxu1 %v8145_v11  ;;  %9224 = vmatpush3.bf16.msra.mxu0 %v10214_v17  ;;  %v10257_v17 = vld [vmem:[%s10954_s10 + $0x8e8] sm:$0xff]  }
 0x11d   : > { %v8932_v15 = vpop.f32.mrf.mxu0  ;;  %9246 = vmatpush3.bf16.msra.mxu1 %v10215_v20  ;;  %9225 = vmatprep.subr.bf16.mxu0 %v10216_v24  ;;  %v10260_v20 = vld [vmem:[%s10954_s10 + $0x860] sm:$0xff]   ;;  %v10264_v24 = vld [vmem:[%s10954_s10 + $0x858] sm:$0xff]  }
 0x11e   : > { %v8954_v16 = vpop.f32.mrf.mxu1  ;;  %v8933_v18 = vadd.f32 %v8932_v15, %v8931_v7  ;;  %9247 = vmatprep.subr.bf16.mxu1 %v10217_v25  ;;  %6825 = vmatprep.mubr.bf16.mxu0 %v8148_v56  ;;  %v10255_v15 = vld [vmem:[%s10954_s10 + $0x8b0] sm:$0xff]   ;;  %v10265_v25 = vld [vmem:[%s10954_s10 + $0x8d8] sm:$0xff]  }
 0x11f   : > { %v8955_v19 = vadd.f32 %v8954_v16, %v8953_v8  ;;  %v8934_v21 = vpop.f32.mrf.mxu0  ;;  %6865 = vmatprep.mubr.bf16.mxu1 %v8150_v61  ;;  %v10256_v16 = vld [vmem:[%s10954_s10 + $0x868] sm:$0xff]  }
 0x120   : > { %v8956_v22 = vpop.f32.mrf.mxu1  ;;  %9226 = vmatpush3.bf16.msra.mxu0 %v10218_v28  ;;  %v10261_v21 = vld [vmem:[%s10954_s10 + $0x8e0] sm:$0xff]   ;;  %v10268_v28 = vld [vmem:[%s10954_s10 + $0x850] sm:$0xff]  }
 0x121   : > { %v11223_v23 = vadd.f32 %v8955_v19, %v8933_v18  ;;  %v8935_v26 = vpop.f32.mrf.mxu0  ;;  %9248 = vmatpush3.bf16.msra.mxu1 %v10219_v29  ;;  %9227 = vmatprep.subr.bf16.mxu0 %v10220_v30  ;;  %v10258_v18 = vld [vmem:[%s10954_s10 + $0x828] sm:$0xff]   ;;  %v10262_v22 = vld [vmem:[%s10954_s10 + $0x820] sm:$0xff]   ;;  %v10269_v29 = vld [vmem:[%s10954_s10 + $0x8d0] sm:$0xff]  }
 0x122   : > { %v8957_v27 = vpop.f32.mrf.mxu1  ;;  %9249 = vmatprep.subr.bf16.mxu1 %v10221_v31  ;;  %v10259_v19 = vld [vmem:[%s10954_s10 + $0x8a8] sm:$0xff]   ;;  %v10266_v26 = vld [vmem:[%s10954_s10 + $0x818] sm:$0xff]   ;;  %v10270_v30 = vld [vmem:[%s10954_s10 + $0x810] sm:$0xff]  }
 0x123   : > { %v10267_v27 = vld [vmem:[%s10954_s10 + $0x898] sm:$0xff]   ;;  %v10271_v31 = vld [vmem:[%s10954_s10 + $0x890] sm:$0xff]  }
 0x124   : > { %9228 = vmatpush3.bf16.msra.mxu0 %v10222_v32  ;;  %v10272_v32 = vld [vmem:[%s10954_s10 + $0x848] sm:$0xff]  }
 0x125   : > { %9250 = vmatpush3.bf16.msra.mxu1 %v10223_v33  ;;  %9229 = vmatprep.subr.bf16.mxu0 %v10224_v34  ;;  %v10273_v33 = vld [vmem:[%s10954_s10 + $0x8c8] sm:$0xff]  }
 0x126   : > { %9251 = vmatprep.subr.bf16.mxu1 %v10225_v35  ;;  %v10274_v34 = vld [vmem:[%s10954_s10 + $0x808] sm:$0xff]  }
 0x127   : > { %v10275_v35 = vld [vmem:[%s10954_s10 + $0x888] sm:$0xff]  }
 0x128   : > { %9230 = vmatpush3.bf16.msra.mxu0 %v10226_v36  ;;  %v10276_v36 = vld [vmem:[%s10954_s10 + $0x840] sm:$0xff]  }
 0x129   : > { %9252 = vmatpush3.bf16.msra.mxu1 %v10227_v37  ;;  %9231 = vmatprep.subr.bf16.mxu0 %v10228_v38  ;;  %v10277_v37 = vld [vmem:[%s10954_s10 + $0x8c0] sm:$0xff]  }
 0x12a   : > { %9253 = vmatprep.subr.bf16.mxu1 %v10229_v39  ;;  %v10278_v38 = vld [vmem:[%s10954_s10 + $0x800] sm:$0xff]  }
 0x12b   : > { %v10279_v39 = vld [vmem:[%s10954_s10 + $0x880] sm:$0xff]  }
 0x12c   : > { %9232 = vmatpush3.bf16.msra.mxu0 %v10230_v40  ;;  %v265_v40 = vld [vmem:[%s10978_s5 + $0x80] sm:$0xff] }
 0x12d   : > { %9254 = vmatpush3.bf16.msra.mxu1 %v10231_v41  ;;  %9233 = vmatprep.subr.bf16.mxu0 %v10232_v42  ;;  %v266_v41 = vld [vmem:[%s10978_s5 + $0x88] sm:$0xff] }
 0x12e   : > { %9255 = vmatprep.subr.bf16.mxu1 %v10233_v43  ;;  %v8151_v43 = vcombine.low %v265_v40, %v265_v40 }
 0x130   : > { %9234 = vmatpush3.bf16.msra.mxu0 %v10234_v44  ;;  %v8152_v44 = vcombine.high %v265_v40, %v265_v40  ;;  %v10323_v40 = vld [vmem:[%s10954_s10 + $0xab8] sm:$0xff]  }
 0x131   : > { %9256 = vmatpush3.bf16.msra.mxu1 %v10235_v45  ;;  %9235 = vmatprep.subr.bf16.mxu0 %v10236_v46  ;;  %v8153_v45 = vcombine.low %v266_v41, %v266_v41  ;;  %v8154_v46 = vcombine.high %v266_v41, %v266_v41 }
 0x132   : > { %9257 = vmatprep.subr.bf16.mxu1 %v10237_v47 }
 0x134   : > { %9236 = vmatpush3.bf16.msra.mxu0 %v10238_v48  ;;  %v10284_v48 = vld [vmem:[%s10954_s10 + $0x978] sm:$0xff]  }
 0x135   : > { %9258 = vmatpush3.bf16.msra.mxu1 %v10239_v49  ;;  %9237 = vmatprep.subr.bf16.mxu0 %v10240_v50  ;;  %v10285_v49 = vld [vmem:[%s10954_s10 + $0x9f8] sm:$0xff]  }
 0x136   : > { %9259 = vmatprep.subr.bf16.mxu1 %v10241_v51  ;;  %v10286_v51 = vld [vmem:[%s10954_s10 + $0x938] sm:$0xff]  }
 0x138   : > { %9238 = vmatpush3.bf16.msra.mxu0 %v10242_v52 }
 0x139   : > { %9260 = vmatpush3.bf16.msra.mxu1 %v10243_v53  ;;  %9267 = vmatprep.subr.bf16.mxu0 %v10248_v62 }
 0x13a   : > { %9289 = vmatprep.subr.bf16.mxu1 %v10249_v63  ;;  %v10290_v63 = vld [vmem:[%s10954_s10 + $0x930] sm:$0xff]  }
 0x13b   : > { %v8975_v58 = vpop.f32.mrf.mxu0  ;;  %6826 = vmatmul.mubr.bf16.vlgmr.msra.gmra.mxu0 %v8147_v55 }
 0x13c   : > { %v8997_v59 = vpop.f32.mrf.mxu1  ;;  %6866 = vmatmul.mubr.bf16.vlgmr.msra.gmra.mxu1 %v8149_v60  ;;  %9268 = vmatpush3.bf16.msra.mxu0 %v10250_v2  ;;  %v10289_v60 = vld [vmem:[%s10954_s10 + $0x9f0] sm:$0xff]   ;;  %v10292_v2 = vld [vmem:[%s10954_s10 + $0x968] sm:$0xff]  }
 0x13d   : > { %v8976_v0 = vpop.f32.mrf.mxu0  ;;  %9290 = vmatpush3.bf16.msra.mxu1 %v10251_v5  ;;  %9269 = vmatprep.subr.bf16.mxu0 %v10252_v9  ;;  %v10295_v5 = vld [vmem:[%s10954_s10 + $0x9a8] sm:$0xff]   ;;  %v10299_v9 = vld [vmem:[%s10954_s10 + $0x9a0] sm:$0xff]  }
 0x13e   : > { %v8998_v1 = vpop.f32.mrf.mxu1  ;;  %v8977_v3 = vadd.f32 %v8976_v0, %v8975_v58  ;;  %9291 = vmatprep.subr.bf16.mxu1 %v10253_v10  ;;  %6905 = vmatprep.mubr.bf16.mxu0 %v8152_v44  ;;  %v10300_v10 = vld [vmem:[%s10954_s10 + $0x958] sm:$0xff]  }
 0x13f   : > { %v8999_v4 = vadd.f32 %v8998_v1, %v8997_v59  ;;  %v8978_v6 = vpop.f32.mrf.mxu0  ;;  %6945 = vmatprep.mubr.bf16.mxu1 %v8154_v46  ;;  %v10288_v59 = vld [vmem:[%s10954_s10 + $0x970] sm:$0xff]  }
 0x140   : > { %v9000_v7 = vpop.f32.mrf.mxu1  ;;  %v6348_v8 = vadd.f32 %v8977_v3, %v11223_v23  ;;  %9270 = vmatpush3.bf16.msra.mxu0 %v10254_v14  ;;  %v10263_v23 = vld [vmem:[%s10954_s10 + $0x8a0] sm:$0xff]   ;;  %v10291_v1 = vld [vmem:[%s10954_s10 + $0x9b0] sm:$0xff]   ;;  %v10293_v3 = vld [vmem:[%s10954_s10 + $0x9e8] sm:$0xff]  }
 0x141   : > { %v8979_v11 = vpop.f32.mrf.mxu0  ;;  %9292 = vmatpush3.bf16.msra.mxu1 %v10255_v15  ;;  %9271 = vmatprep.subr.bf16.mxu0 %v10256_v16  ;;  %v10296_v6 = vld [vmem:[%s10954_s10 + $0x960] sm:$0xff]   ;;  %v10304_v14 = vld [vmem:[%s10954_s10 + $0x950] sm:$0xff]  }
 0x142   : > { %v9001_v12 = vpop.f32.mrf.mxu1  ;;  %v11262_v13 = vadd.f32 %v8999_v4, %v6348_v8  ;;  %9293 = vmatprep.subr.bf16.mxu1 %v10257_v17  ;;  %v10294_v4 = vld [vmem:[%s10954_s10 + $0x928] sm:$0xff]   ;;  %v10297_v7 = vld [vmem:[%s10954_s10 + $0x9e0] sm:$0xff]   ;;  %v10301_v11 = vld [vmem:[%s10954_s10 + $0x9d8] sm:$0xff]  }
 0x143   : > { %v10298_v8 = vld [vmem:[%s10954_s10 + $0x920] sm:$0xff]   ;;  %v10302_v12 = vld [vmem:[%s10954_s10 + $0x918] sm:$0xff]   ;;  %v10305_v15 = vld [vmem:[%s10954_s10 + $0x9d0] sm:$0xff]  }
 0x144   : > { %9272 = vmatpush3.bf16.msra.mxu0 %v10258_v18  ;;  %v10306_v16 = vld [vmem:[%s10954_s10 + $0x910] sm:$0xff]   ;;  %v10308_v18 = vld [vmem:[%s10954_s10 + $0x948] sm:$0xff]  }
 0x145   : > { %9294 = vmatpush3.bf16.msra.mxu1 %v10259_v19  ;;  %9273 = vmatprep.subr.bf16.mxu0 %v10260_v20  ;;  %v10307_v17 = vld [vmem:[%s10954_s10 + $0x990] sm:$0xff]   ;;  %v10309_v19 = vld [vmem:[%s10954_s10 + $0x9c8] sm:$0xff]  }
 0x146   : > { %9295 = vmatprep.subr.bf16.mxu1 %v10261_v21  ;;  %v10310_v20 = vld [vmem:[%s10954_s10 + $0x908] sm:$0xff]   ;;  %v10325_v46 = vld [vmem:[%s10954_s10 + $0xaf0] sm:$0xff]  }
 0x147   : > { %v10311_v21 = vld [vmem:[%s10954_s10 + $0x988] sm:$0xff]  }
 0x148   : > { %9274 = vmatpush3.bf16.msra.mxu0 %v10262_v22  ;;  %v10312_v22 = vld [vmem:[%s10954_s10 + $0x940] sm:$0xff]  }
 0x149   : > { %9296 = vmatpush3.bf16.msra.mxu1 %v10263_v23  ;;  %9275 = vmatprep.subr.bf16.mxu0 %v10264_v24  ;;  %v10313_v23 = vld [vmem:[%s10954_s10 + $0x9c0] sm:$0xff]  }
 0x14a   : > { %9297 = vmatprep.subr.bf16.mxu1 %v10265_v25  ;;  %v10314_v24 = vld [vmem:[%s10954_s10 + $0x900] sm:$0xff]  }
 0x14b   : > { %v10315_v25 = vld [vmem:[%s10954_s10 + $0x980] sm:$0xff]  }
 0x14c   : > { %9276 = vmatpush3.bf16.msra.mxu0 %v10266_v26  ;;  %v267_v26 = vld [vmem:[%s10978_s5 + $0x90] sm:$0xff] }
 0x14d   : > { %9298 = vmatpush3.bf16.msra.mxu1 %v10267_v27  ;;  %9277 = vmatprep.subr.bf16.mxu0 %v10268_v28  ;;  %v268_v27 = vld [vmem:[%s10978_s5 + $0x98] sm:$0xff] }
 0x14e   : > { %9299 = vmatprep.subr.bf16.mxu1 %v10269_v29  ;;  %v8155_v29 = vcombine.low %v267_v26, %v267_v26 }
 0x150   : > { %9278 = vmatpush3.bf16.msra.mxu0 %v10270_v30  ;;  %v8156_v30 = vcombine.high %v267_v26, %v267_v26 }
 0x151   : > { %9300 = vmatpush3.bf16.msra.mxu1 %v10271_v31  ;;  %9279 = vmatprep.subr.bf16.mxu0 %v10272_v32  ;;  %v8157_v31 = vcombine.low %v268_v27, %v268_v27 }
 0x152   : > { %9301 = vmatprep.subr.bf16.mxu1 %v10273_v33  ;;  %v10320_v33 = vld [vmem:[%s10954_s10 + $0xa78] sm:$0xff]  }
 0x154   : > { %9280 = vmatpush3.bf16.msra.mxu0 %v10274_v34  ;;  %v8158_v34 = vcombine.high %v268_v27, %v268_v27  ;;  %v10359_v27 = vld [vmem:[%s10954_s10 + $0xbb8] sm:$0xff]  }
 0x155   : > { %9302 = vmatpush3.bf16.msra.mxu1 %v10275_v35  ;;  %9281 = vmatprep.subr.bf16.mxu0 %v10276_v36  ;;  %v10321_v35 = vld [vmem:[%s10954_s10 + $0xaf8] sm:$0xff]  }
 0x156   : > { %9303 = vmatprep.subr.bf16.mxu1 %v10277_v37  ;;  %v10322_v37 = vld [vmem:[%s10954_s10 + $0xa38] sm:$0xff]  }
 0x158   : > { %9282 = vmatpush3.bf16.msra.mxu0 %v10278_v38 }
 0x159   : > { %9304 = vmatpush3.bf16.msra.mxu1 %v10279_v39  ;;  %9311 = vmatprep.subr.bf16.mxu0 %v10284_v48 }
 0x15a   : > { %9333 = vmatprep.subr.bf16.mxu1 %v10285_v49  ;;  %v10326_v49 = vld [vmem:[%s10954_s10 + $0xa30] sm:$0xff]  }
 0x15b   : > { %v9019_v42 = vpop.f32.mrf.mxu0  ;;  %6906 = vmatmul.mubr.bf16.vlgmr.msra.gmra.mxu0 %v8151_v43 }
 0x15c   : > { %v9041_v47 = vpop.f32.mrf.mxu1  ;;  %6946 = vmatmul.mubr.bf16.vlgmr.msra.gmra.mxu1 %v8153_v45  ;;  %9312 = vmatpush3.bf16.msra.mxu0 %v10286_v51  ;;  %v10324_v45 = vld [vmem:[%s10954_s10 + $0xa70] sm:$0xff]  }
 0x15d   : > { %v9020_v50 = vpop.f32.mrf.mxu0  ;;  %9334 = vmatpush3.bf16.msra.mxu1 %v10287_v54  ;;  %9313 = vmatprep.subr.bf16.mxu0 %v10288_v59  ;;  %v10327_v51 = vld [vmem:[%s10954_s10 + $0xab0] sm:$0xff]   ;;  %v10330_v54 = vld [vmem:[%s10954_s10 + $0xa28] sm:$0xff]   ;;  %v10335_v59 = vld [vmem:[%s10954_s10 + $0xaa0] sm:$0xff]  }
 0x15e   : > { %v9021_v52 = vadd.f32 %v9020_v50, %v9019_v42  ;;  %v9042_v53 = vpop.f32.mrf.mxu1  ;;  %9335 = vmatprep.subr.bf16.mxu1 %v10289_v60  ;;  %6985 = vmatprep.mubr.bf16.mxu0 %v8156_v30  ;;  %v10336_v60 = vld [vmem:[%s10954_s10 + $0xa58] sm:$0xff]  }
 0x15f   : > { %v9043_v55 = vadd.f32 %v9042_v53, %v9041_v47  ;;  %v9022_v56 = vpop.f32.mrf.mxu0  ;;  %7025 = vmatprep.mubr.bf16.mxu1 %v8158_v34  ;;  %v10329_v53 = vld [vmem:[%s10954_s10 + $0xae8] sm:$0xff]  }
 0x160   : > { %v6428_v57 = vadd.f32 %v9021_v52, %v11262_v13  ;;  %v9044_v58 = vpop.f32.mrf.mxu1  ;;  %9314 = vmatpush3.bf16.msra.mxu0 %v10290_v63  ;;  %v10303_v13 = vld [vmem:[%s10954_s10 + $0x998] sm:$0xff]   ;;  %v10328_v52 = vld [vmem:[%s10954_s10 + $0xa68] sm:$0xff]   ;;  %v10332_v56 = vld [vmem:[%s10954_s10 + $0xa60] sm:$0xff]  }
 0x161   : > { %v9023_v61 = vpop.f32.mrf.mxu0  ;;  %9336 = vmatpush3.bf16.msra.mxu1 %v10291_v1  ;;  %9315 = vmatprep.subr.bf16.mxu0 %v10292_v2  ;;  %v10334_v58 = vld [vmem:[%s10954_s10 + $0xa20] sm:$0xff]   ;;  %v10339_v63 = vld [vmem:[%s10954_s10 + $0xa98] sm:$0xff]   ;;  %v10341_v1 = vld [vmem:[%s10954_s10 + $0xad0] sm:$0xff]  }
 0x162   : > { %v11299_v62 = vadd.f32 %v9043_v55, %v6428_v57  ;;  %v9045_v0 = vpop.f32.mrf.mxu1  ;;  %9337 = vmatprep.subr.bf16.mxu1 %v10293_v3  ;;  %v10331_v55 = vld [vmem:[%s10954_s10 + $0xaa8] sm:$0xff]   ;;  %v10333_v57 = vld [vmem:[%s10954_s10 + $0xae0] sm:$0xff]   ;;  %v10337_v61 = vld [vmem:[%s10954_s10 + $0xad8] sm:$0xff]  }
 0x163   : > { %v10340_v0 = vld [vmem:[%s10954_s10 + $0xa50] sm:$0xff]  }
 0x164   : > { %9316 = vmatpush3.bf16.msra.mxu0 %v10294_v4  ;;  %v10342_v2 = vld [vmem:[%s10954_s10 + $0xa10] sm:$0xff]   ;;  %v10344_v4 = vld [vmem:[%s10954_s10 + $0xa48] sm:$0xff]  }
 0x165   : > { %9338 = vmatpush3.bf16.msra.mxu1 %v10295_v5  ;;  %9317 = vmatprep.subr.bf16.mxu0 %v10296_v6  ;;  %v10343_v3 = vld [vmem:[%s10954_s10 + $0xa90] sm:$0xff]   ;;  %v10345_v5 = vld [vmem:[%s10954_s10 + $0xac8] sm:$0xff]  }
 0x166   : > { %9339 = vmatprep.subr.bf16.mxu1 %v10297_v7  ;;  %v10346_v6 = vld [vmem:[%s10954_s10 + $0xa08] sm:$0xff]  }
 0x167   : > { %v10347_v7 = vld [vmem:[%s10954_s10 + $0xa88] sm:$0xff]  }
 0x168   : > { %9318 = vmatpush3.bf16.msra.mxu0 %v10298_v8  ;;  %v10348_v8 = vld [vmem:[%s10954_s10 + $0xa40] sm:$0xff]  }
 0x169   : > { %9340 = vmatpush3.bf16.msra.mxu1 %v10299_v9  ;;  %9319 = vmatprep.subr.bf16.mxu0 %v10300_v10  ;;  %v10349_v9 = vld [vmem:[%s10954_s10 + $0xac0] sm:$0xff]  }
 0x16a   : > { %9341 = vmatprep.subr.bf16.mxu1 %v10301_v11  ;;  %v10350_v10 = vld [vmem:[%s10954_s10 + $0xa00] sm:$0xff]  }
 0x16b   : > { %v10351_v11 = vld [vmem:[%s10954_s10 + $0xa80] sm:$0xff]  }
 0x16c   : > { %9320 = vmatpush3.bf16.msra.mxu0 %v10302_v12  ;;  %v269_v12 = vld [vmem:[%s10978_s5 + $0xa0] sm:$0xff] }
 0x16d   : > { %9342 = vmatpush3.bf16.msra.mxu1 %v10303_v13  ;;  %9321 = vmatprep.subr.bf16.mxu0 %v10304_v14  ;;  %v8159_v13 = vcombine.low %v269_v12, %v269_v12  ;;  %v8160_v14 = vcombine.high %v269_v12, %v269_v12  ;;  %v10395_v12 = vld [vmem:[%s10954_s10 + $0xcb8] sm:$0xff]  }
 0x16e   : > { %9343 = vmatprep.subr.bf16.mxu1 %v10305_v15  ;;  %v270_v15 = vld [vmem:[%s10978_s5 + $0xa8] sm:$0xff] }
 0x170   : > { %9322 = vmatpush3.bf16.msra.mxu0 %v10306_v16 }
 0x171   : > { %9344 = vmatpush3.bf16.msra.mxu1 %v10307_v17  ;;  %9323 = vmatprep.subr.bf16.mxu0 %v10308_v18  ;;  %v8161_v18 = vcombine.low %v270_v15, %v270_v15 }
 0x172   : > { %9345 = vmatprep.subr.bf16.mxu1 %v10309_v19  ;;  %v8162_v19 = vcombine.high %v270_v15, %v270_v15 }
 0x174   : > { %9324 = vmatpush3.bf16.msra.mxu0 %v10310_v20  ;;  %v10356_v20 = vld [vmem:[%s10954_s10 + $0xb78] sm:$0xff]  }
 0x175   : > { %9346 = vmatpush3.bf16.msra.mxu1 %v10311_v21  ;;  %9325 = vmatprep.subr.bf16.mxu0 %v10312_v22  ;;  %v10357_v21 = vld [vmem:[%s10954_s10 + $0xbf8] sm:$0xff]  }
 0x176   : > { %9347 = vmatprep.subr.bf16.mxu1 %v10313_v23 }
 0x178   : > { %9326 = vmatpush3.bf16.msra.mxu0 %v10314_v24  ;;  %v10358_v24 = vld [vmem:[%s10954_s10 + $0xb38] sm:$0xff]  }
 0x179   : > { %9348 = vmatpush3.bf16.msra.mxu1 %v10315_v25  ;;  %9355 = vmatprep.subr.bf16.mxu0 %v10320_v33 }
 0x17a   : > { %9377 = vmatprep.subr.bf16.mxu1 %v10321_v35 }
 0x17b   : > { %v9063_v28 = vpop.f32.mrf.mxu0  ;;  %6986 = vmatmul.mubr.bf16.vlgmr.msra.gmra.mxu0 %v8155_v29 }
 0x17c   : > { %v9085_v32 = vpop.f32.mrf.mxu1  ;;  %7026 = vmatmul.mubr.bf16.vlgmr.msra.gmra.mxu1 %v8157_v31  ;;  %9356 = vmatpush3.bf16.msra.mxu0 %v10322_v37  ;;  %v10360_v31 = vld [vmem:[%s10954_s10 + $0xb70] sm:$0xff]  }
 0x17d   : > { %v9064_v36 = vpop.f32.mrf.mxu0  ;;  %9378 = vmatpush3.bf16.msra.mxu1 %v10323_v40  ;;  %9357 = vmatprep.subr.bf16.mxu0 %v10324_v45  ;;  %v10363_v37 = vld [vmem:[%s10954_s10 + $0xbb0] sm:$0xff]   ;;  %v10366_v40 = vld [vmem:[%s10954_s10 + $0xb28] sm:$0xff]   ;;  %v10371_v45 = vld [vmem:[%s10954_s10 + $0xba0] sm:$0xff]  }
 0x17e   : > { %v9065_v38 = vadd.f32 %v9064_v36, %v9063_v28  ;;  %v9086_v39 = vpop.f32.mrf.mxu1  ;;  %9379 = vmatprep.subr.bf16.mxu1 %v10325_v46  ;;  %7065 = vmatprep.mubr.bf16.mxu0 %v8160_v14  ;;  %v10362_v36 = vld [vmem:[%s10954_s10 + $0xb30] sm:$0xff]   ;;  %v10372_v46 = vld [vmem:[%s10954_s10 + $0xb58] sm:$0xff]  }
 0x17f   : > { %v9087_v41 = vadd.f32 %v9086_v39, %v9085_v32  ;;  %v9066_v42 = vpop.f32.mrf.mxu0  ;;  %7105 = vmatprep.mubr.bf16.mxu1 %v8162_v19  ;;  %v10361_v32 = vld [vmem:[%s10954_s10 + $0xbf0] sm:$0xff]   ;;  %v10365_v39 = vld [vmem:[%s10954_s10 + $0xbe8] sm:$0xff]  }
 0x180   : > { %v6508_v43 = vadd.f32 %v9065_v38, %v11299_v62  ;;  %v9088_v44 = vpop.f32.mrf.mxu1  ;;  %9358 = vmatpush3.bf16.msra.mxu0 %v10326_v49  ;;  %v10338_v62 = vld [vmem:[%s10954_s10 + $0xa18] sm:$0xff]   ;;  %v10364_v38 = vld [vmem:[%s10954_s10 + $0xb68] sm:$0xff]   ;;  %v10368_v42 = vld [vmem:[%s10954_s10 + $0xb60] sm:$0xff]  }
 0x181   : > { %v9067_v47 = vpop.f32.mrf.mxu0  ;;  %9380 = vmatpush3.bf16.msra.mxu1 %v10327_v51  ;;  %9359 = vmatprep.subr.bf16.mxu0 %v10328_v52  ;;  %v10370_v44 = vld [vmem:[%s10954_s10 + $0xb20] sm:$0xff]   ;;  %v10375_v49 = vld [vmem:[%s10954_s10 + $0xb98] sm:$0xff]   ;;  %v10377_v51 = vld [vmem:[%s10954_s10 + $0xbd0] sm:$0xff]  }
 0x182   : > { %v11336_v48 = vadd.f32 %v9087_v41, %v6508_v43  ;;  %v9089_v50 = vpop.f32.mrf.mxu1  ;;  %9381 = vmatprep.subr.bf16.mxu1 %v10329_v53  ;;  %v10367_v41 = vld [vmem:[%s10954_s10 + $0xba8] sm:$0xff]   ;;  %v10369_v43 = vld [vmem:[%s10954_s10 + $0xbe0] sm:$0xff]   ;;  %v10373_v47 = vld [vmem:[%s10954_s10 + $0xbd8] sm:$0xff]  }
 0x183   : > { %v10376_v50 = vld [vmem:[%s10954_s10 + $0xb50] sm:$0xff]  }
 0x184   : > { %9360 = vmatpush3.bf16.msra.mxu0 %v10330_v54  ;;  %v10378_v52 = vld [vmem:[%s10954_s10 + $0xb10] sm:$0xff]   ;;  %v10380_v54 = vld [vmem:[%s10954_s10 + $0xb48] sm:$0xff]  }
 0x185   : > { %9382 = vmatpush3.bf16.msra.mxu1 %v10331_v55  ;;  %9361 = vmatprep.subr.bf16.mxu0 %v10332_v56  ;;  %v10379_v53 = vld [vmem:[%s10954_s10 + $0xb90] sm:$0xff]   ;;  %v10381_v55 = vld [vmem:[%s10954_s10 + $0xbc8] sm:$0xff]  }
 0x186   : > { %9383 = vmatprep.subr.bf16.mxu1 %v10333_v57  ;;  %v10382_v56 = vld [vmem:[%s10954_s10 + $0xb08] sm:$0xff]  }
 0x187   : > { %v10383_v57 = vld [vmem:[%s10954_s10 + $0xb88] sm:$0xff]  }
 0x188   : > { %9362 = vmatpush3.bf16.msra.mxu0 %v10334_v58  ;;  %v10384_v58 = vld [vmem:[%s10954_s10 + $0xb40] sm:$0xff]  }
 0x189   : > { %9384 = vmatpush3.bf16.msra.mxu1 %v10335_v59  ;;  %9363 = vmatprep.subr.bf16.mxu0 %v10336_v60  ;;  %v10385_v59 = vld [vmem:[%s10954_s10 + $0xbc0] sm:$0xff]  }
 0x18a   : > { %9385 = vmatprep.subr.bf16.mxu1 %v10337_v61  ;;  %v10386_v60 = vld [vmem:[%s10954_s10 + $0xb00] sm:$0xff]  }
 0x18b   : > { %v10387_v61 = vld [vmem:[%s10954_s10 + $0xb80] sm:$0xff]  }
 0x18c   : > { %9364 = vmatpush3.bf16.msra.mxu0 %v10338_v62  ;;  %v271_v62 = vld [vmem:[%s10978_s5 + $0xb0] sm:$0xff] }
 0x18d   : > { %9386 = vmatpush3.bf16.msra.mxu1 %v10339_v63  ;;  %9365 = vmatprep.subr.bf16.mxu0 %v10340_v0  ;;  %v272_v63 = vld [vmem:[%s10978_s5 + $0xb8] sm:$0xff] }
 0x18e   : > { %9387 = vmatprep.subr.bf16.mxu1 %v10341_v1  ;;  %v8163_v1 = vcombine.low %v271_v62, %v271_v62 }
 0x190   : > { %9366 = vmatpush3.bf16.msra.mxu0 %v10342_v2  ;;  %v8164_v2 = vcombine.high %v271_v62, %v271_v62  ;;  %v10431_v62 = vld [vmem:[%s10954_s10 + $0xdb8] sm:$0xff]  }
 0x191   : > { %9388 = vmatpush3.bf16.msra.mxu1 %v10343_v3  ;;  %9367 = vmatprep.subr.bf16.mxu0 %v10344_v4  ;;  %v8165_v3 = vcombine.low %v272_v63, %v272_v63  ;;  %v8166_v4 = vcombine.high %v272_v63, %v272_v63 }
 0x192   : > { %9389 = vmatprep.subr.bf16.mxu1 %v10345_v5 }
 0x194   : > { %9368 = vmatpush3.bf16.msra.mxu0 %v10346_v6  ;;  %v10392_v6 = vld [vmem:[%s10954_s10 + $0xc78] sm:$0xff]  }
 0x195   : > { %9390 = vmatpush3.bf16.msra.mxu1 %v10347_v7  ;;  %9369 = vmatprep.subr.bf16.mxu0 %v10348_v8  ;;  %v10393_v7 = vld [vmem:[%s10954_s10 + $0xcf8] sm:$0xff]  }
 0x196   : > { %9391 = vmatprep.subr.bf16.mxu1 %v10349_v9  ;;  %v10394_v9 = vld [vmem:[%s10954_s10 + $0xc38] sm:$0xff]  }
 0x198   : > { %9370 = vmatpush3.bf16.msra.mxu0 %v10350_v10 }
 0x199   : > { %9392 = vmatpush3.bf16.msra.mxu1 %v10351_v11  ;;  %9399 = vmatprep.subr.bf16.mxu0 %v10356_v20 }
 0x19a   : > { %9421 = vmatprep.subr.bf16.mxu1 %v10357_v21  ;;  %v10398_v21 = vld [vmem:[%s10954_s10 + $0xc30] sm:$0xff]  }
 0x19b   : > { %v9107_v16 = vpop.f32.mrf.mxu0  ;;  %7066 = vmatmul.mubr.bf16.vlgmr.msra.gmra.mxu0 %v8159_v13 }
 0x19c   : > { %v9129_v17 = vpop.f32.mrf.mxu1  ;;  %7106 = vmatmul.mubr.bf16.vlgmr.msra.gmra.mxu1 %v8161_v18  ;;  %9400 = vmatpush3.bf16.msra.mxu0 %v10358_v24  ;;  %v10397_v18 = vld [vmem:[%s10954_s10 + $0xcf0] sm:$0xff]   ;;  %v10400_v24 = vld [vmem:[%s10954_s10 + $0xc68] sm:$0xff]  }
 0x19d   : > { %v9108_v22 = vpop.f32.mrf.mxu0  ;;  %9422 = vmatpush3.bf16.msra.mxu1 %v10359_v27  ;;  %9401 = vmatprep.subr.bf16.mxu0 %v10360_v31  ;;  %v10403_v27 = vld [vmem:[%s10954_s10 + $0xca8] sm:$0xff]   ;;  %v10407_v31 = vld [vmem:[%s10954_s10 + $0xca0] sm:$0xff]  }
 0x19e   : > { %v9130_v23 = vpop.f32.mrf.mxu1  ;;  %v9109_v25 = vadd.f32 %v9108_v22, %v9107_v16  ;;  %9423 = vmatprep.subr.bf16.mxu1 %v10361_v32  ;;  %7145 = vmatprep.mubr.bf16.mxu0 %v8164_v2  ;;  %v10408_v32 = vld [vmem:[%s10954_s10 + $0xc58] sm:$0xff]  }
 0x19f   : > { %v9131_v26 = vadd.f32 %v9130_v23, %v9129_v17  ;;  %v9110_v28 = vpop.f32.mrf.mxu0  ;;  %7185 = vmatprep.mubr.bf16.mxu1 %v8166_v4  ;;  %v10396_v17 = vld [vmem:[%s10954_s10 + $0xc70] sm:$0xff]  }
 0x1a0   : > { %v9132_v29 = vpop.f32.mrf.mxu1  ;;  %v6588_v30 = vadd.f32 %v9109_v25, %v11336_v48  ;;  %9402 = vmatpush3.bf16.msra.mxu0 %v10362_v36  ;;  %v10374_v48 = vld [vmem:[%s10954_s10 + $0xb18] sm:$0xff]   ;;  %v10399_v23 = vld [vmem:[%s10954_s10 + $0xcb0] sm:$0xff]   ;;  %v10401_v25 = vld [vmem:[%s10954_s10 + $0xce8] sm:$0xff]  }
 0x1a1   : > { %v9111_v33 = vpop.f32.mrf.mxu0  ;;  %9424 = vmatpush3.bf16.msra.mxu1 %v10363_v37  ;;  %9403 = vmatprep.subr.bf16.mxu0 %v10364_v38  ;;  %v10404_v28 = vld [vmem:[%s10954_s10 + $0xc60] sm:$0xff]   ;;  %v10412_v36 = vld [vmem:[%s10954_s10 + $0xc50] sm:$0xff]  }
 0x1a2   : > { %v9133_v34 = vpop.f32.mrf.mxu1  ;;  %v11373_v35 = vadd.f32 %v9131_v26, %v6588_v30  ;;  %9425 = vmatprep.subr.bf16.mxu1 %v10365_v39  ;;  %v10402_v26 = vld [vmem:[%s10954_s10 + $0xc28] sm:$0xff]   ;;  %v10405_v29 = vld [vmem:[%s10954_s10 + $0xce0] sm:$0xff]   ;;  %v10409_v33 = vld [vmem:[%s10954_s10 + $0xcd8] sm:$0xff]  }
 0x1a3   : > { %v10406_v30 = vld [vmem:[%s10954_s10 + $0xc20] sm:$0xff]   ;;  %v10410_v34 = vld [vmem:[%s10954_s10 + $0xc18] sm:$0xff]   ;;  %v10413_v37 = vld [vmem:[%s10954_s10 + $0xcd0] sm:$0xff]  }
 0x1a4   : > { %9404 = vmatpush3.bf16.msra.mxu0 %v10366_v40  ;;  %v10414_v38 = vld [vmem:[%s10954_s10 + $0xc10] sm:$0xff]   ;;  %v10416_v40 = vld [vmem:[%s10954_s10 + $0xc48] sm:$0xff]  }
 0x1a5   : > { %9426 = vmatpush3.bf16.msra.mxu1 %v10367_v41  ;;  %9405 = vmatprep.subr.bf16.mxu0 %v10368_v42  ;;  %v10415_v39 = vld [vmem:[%s10954_s10 + $0xc90] sm:$0xff]   ;;  %v10417_v41 = vld [vmem:[%s10954_s10 + $0xcc8] sm:$0xff]  }
 0x1a6   : > { %9427 = vmatprep.subr.bf16.mxu1 %v10369_v43  ;;  %v10418_v42 = vld [vmem:[%s10954_s10 + $0xc08] sm:$0xff]   ;;  %v10433_v4 = vld [vmem:[%s10954_s10 + $0xdf0] sm:$0xff]  }
 0x1a7   : > { %v10419_v43 = vld [vmem:[%s10954_s10 + $0xc88] sm:$0xff]  }
 0x1a8   : > { %9406 = vmatpush3.bf16.msra.mxu0 %v10370_v44  ;;  %v10420_v44 = vld [vmem:[%s10954_s10 + $0xc40] sm:$0xff]  }
 0x1a9   : > { %9428 = vmatpush3.bf16.msra.mxu1 %v10371_v45  ;;  %9407 = vmatprep.subr.bf16.mxu0 %v10372_v46  ;;  %v10421_v45 = vld [vmem:[%s10954_s10 + $0xcc0] sm:$0xff]  }
 0x1aa   : > { %9429 = vmatprep.subr.bf16.mxu1 %v10373_v47  ;;  %v10422_v46 = vld [vmem:[%s10954_s10 + $0xc00] sm:$0xff]  }
 0x1ab   : > { %v10423_v47 = vld [vmem:[%s10954_s10 + $0xc80] sm:$0xff]  }
 0x1ac   : > { %9408 = vmatpush3.bf16.msra.mxu0 %v10374_v48  ;;  %v273_v48 = vld [vmem:[%s10978_s5 + $0xc0] sm:$0xff] }
 0x1ad   : > { %9430 = vmatpush3.bf16.msra.mxu1 %v10375_v49  ;;  %9409 = vmatprep.subr.bf16.mxu0 %v10376_v50  ;;  %v274_v49 = vld [vmem:[%s10978_s5 + $0xc8] sm:$0xff] }
 0x1ae   : > { %9431 = vmatprep.subr.bf16.mxu1 %v10377_v51  ;;  %v8167_v51 = vcombine.low %v273_v48, %v273_v48 }
 0x1b0   : > { %9410 = vmatpush3.bf16.msra.mxu0 %v10378_v52  ;;  %v8168_v52 = vcombine.high %v273_v48, %v273_v48 }
 0x1b1   : > { %9432 = vmatpush3.bf16.msra.mxu1 %v10379_v53  ;;  %9411 = vmatprep.subr.bf16.mxu0 %v10380_v54  ;;  %v8169_v53 = vcombine.low %v274_v49, %v274_v49 }
 0x1b2   : > { %9433 = vmatprep.subr.bf16.mxu1 %v10381_v55  ;;  %v10428_v55 = vld [vmem:[%s10954_s10 + $0xd78] sm:$0xff]  }
 0x1b4   : > { %9412 = vmatpush3.bf16.msra.mxu0 %v10382_v56  ;;  %v8170_v56 = vcombine.high %v274_v49, %v274_v49  ;;  %v10467_v49 = vld [vmem:[%s10954_s10 + $0xeb8] sm:$0xff]  }
 0x1b5   : > { %9434 = vmatpush3.bf16.msra.mxu1 %v10383_v57  ;;  %9413 = vmatprep.subr.bf16.mxu0 %v10384_v58  ;;  %v10429_v57 = vld [vmem:[%s10954_s10 + $0xdf8] sm:$0xff]  }
 0x1b6   : > { %9435 = vmatprep.subr.bf16.mxu1 %v10385_v59  ;;  %v10430_v59 = vld [vmem:[%s10954_s10 + $0xd38] sm:$0xff]  }
 0x1b8   : > { %9414 = vmatpush3.bf16.msra.mxu0 %v10386_v60 }
 0x1b9   : > { %9436 = vmatpush3.bf16.msra.mxu1 %v10387_v61  ;;  %9443 = vmatprep.subr.bf16.mxu0 %v10392_v6 }
 0x1ba   : > { %9465 = vmatprep.subr.bf16.mxu1 %v10393_v7  ;;  %v10434_v7 = vld [vmem:[%s10954_s10 + $0xd30] sm:$0xff]  }
 0x1bb   : > { %v9151_v0 = vpop.f32.mrf.mxu0  ;;  %7146 = vmatmul.mubr.bf16.vlgmr.msra.gmra.mxu0 %v8163_v1 }
 0x1bc   : > { %v9173_v5 = vpop.f32.mrf.mxu1  ;;  %7186 = vmatmul.mubr.bf16.vlgmr.msra.gmra.mxu1 %v8165_v3  ;;  %9444 = vmatpush3.bf16.msra.mxu0 %v10394_v9  ;;  %v10432_v3 = vld [vmem:[%s10954_s10 + $0xd70] sm:$0xff]  }
 0x1bd   : > { %v9152_v8 = vpop.f32.mrf.mxu0  ;;  %9466 = vmatpush3.bf16.msra.mxu1 %v10395_v12  ;;  %9445 = vmatprep.subr.bf16.mxu0 %v10396_v17  ;;  %v10435_v9 = vld [vmem:[%s10954_s10 + $0xdb0] sm:$0xff]   ;;  %v10438_v12 = vld [vmem:[%s10954_s10 + $0xd28] sm:$0xff]   ;;  %v10443_v17 = vld [vmem:[%s10954_s10 + $0xda0] sm:$0xff]  }
 0x1be   : > { %v9153_v10 = vadd.f32 %v9152_v8, %v9151_v0  ;;  %v9174_v11 = vpop.f32.mrf.mxu1  ;;  %9467 = vmatprep.subr.bf16.mxu1 %v10397_v18  ;;  %7225 = vmatprep.mubr.bf16.mxu0 %v8168_v52  ;;  %v10444_v18 = vld [vmem:[%s10954_s10 + $0xd58] sm:$0xff]  }
 0x1bf   : > { %v9175_v13 = vadd.f32 %v9174_v11, %v9173_v5  ;;  %v9154_v14 = vpop.f32.mrf.mxu0  ;;  %7265 = vmatprep.mubr.bf16.mxu1 %v8170_v56  ;;  %v10437_v11 = vld [vmem:[%s10954_s10 + $0xde8] sm:$0xff]  }
 0x1c0   : > { %v6668_v15 = vadd.f32 %v9153_v10, %v11373_v35  ;;  %v9176_v16 = vpop.f32.mrf.mxu1  ;;  %9446 = vmatpush3.bf16.msra.mxu0 %v10398_v21  ;;  %v10411_v35 = vld [vmem:[%s10954_s10 + $0xc98] sm:$0xff]   ;;  %v10436_v10 = vld [vmem:[%s10954_s10 + $0xd68] sm:$0xff]   ;;  %v10440_v14 = vld [vmem:[%s10954_s10 + $0xd60] sm:$0xff]  }
 0x1c1   : > { %v9155_v19 = vpop.f32.mrf.mxu0  ;;  %9468 = vmatpush3.bf16.msra.mxu1 %v10399_v23  ;;  %9447 = vmatprep.subr.bf16.mxu0 %v10400_v24  ;;  %v10442_v16 = vld [vmem:[%s10954_s10 + $0xd20] sm:$0xff]   ;;  %v10447_v21 = vld [vmem:[%s10954_s10 + $0xd98] sm:$0xff]   ;;  %v10449_v23 = vld [vmem:[%s10954_s10 + $0xdd0] sm:$0xff]  }
 0x1c2   : > { %v11410_v20 = vadd.f32 %v9175_v13, %v6668_v15  ;;  %v9177_v22 = vpop.f32.mrf.mxu1  ;;  %9469 = vmatprep.subr.bf16.mxu1 %v10401_v25  ;;  %v10439_v13 = vld [vmem:[%s10954_s10 + $0xda8] sm:$0xff]   ;;  %v10441_v15 = vld [vmem:[%s10954_s10 + $0xde0] sm:$0xff]   ;;  %v10445_v19 = vld [vmem:[%s10954_s10 + $0xdd8] sm:$0xff]  }
 0x1c3   : > { %v10448_v22 = vld [vmem:[%s10954_s10 + $0xd50] sm:$0xff]  }
 0x1c4   : > { %9448 = vmatpush3.bf16.msra.mxu0 %v10402_v26  ;;  %v10450_v24 = vld [vmem:[%s10954_s10 + $0xd10] sm:$0xff]   ;;  %v10452_v26 = vld [vmem:[%s10954_s10 + $0xd48] sm:$0xff]  }
 0x1c5   : > { %9470 = vmatpush3.bf16.msra.mxu1 %v10403_v27  ;;  %9449 = vmatprep.subr.bf16.mxu0 %v10404_v28  ;;  %v10451_v25 = vld [vmem:[%s10954_s10 + $0xd90] sm:$0xff]   ;;  %v10453_v27 = vld [vmem:[%s10954_s10 + $0xdc8] sm:$0xff]  }
 0x1c6   : > { %9471 = vmatprep.subr.bf16.mxu1 %v10405_v29  ;;  %v10454_v28 = vld [vmem:[%s10954_s10 + $0xd08] sm:$0xff]  }
 0x1c7   : > { %v10455_v29 = vld [vmem:[%s10954_s10 + $0xd88] sm:$0xff]  }
 0x1c8   : > { %9450 = vmatpush3.bf16.msra.mxu0 %v10406_v30  ;;  %v10456_v30 = vld [vmem:[%s10954_s10 + $0xd40] sm:$0xff]  }
 0x1c9   : > { %9472 = vmatpush3.bf16.msra.mxu1 %v10407_v31  ;;  %9451 = vmatprep.subr.bf16.mxu0 %v10408_v32  ;;  %v10457_v31 = vld [vmem:[%s10954_s10 + $0xdc0] sm:$0xff]  }
 0x1ca   : > { %9473 = vmatprep.subr.bf16.mxu1 %v10409_v33  ;;  %v10458_v32 = vld [vmem:[%s10954_s10 + $0xd00] sm:$0xff]  }
 0x1cb   : > { %v10459_v33 = vld [vmem:[%s10954_s10 + $0xd80] sm:$0xff]  }
 0x1cc   : > { %9452 = vmatpush3.bf16.msra.mxu0 %v10410_v34  ;;  %v275_v34 = vld [vmem:[%s10978_s5 + $0xd0] sm:$0xff] }
 0x1cd   : > { %9474 = vmatpush3.bf16.msra.mxu1 %v10411_v35  ;;  %9453 = vmatprep.subr.bf16.mxu0 %v10412_v36  ;;  %v8171_v35 = vcombine.low %v275_v34, %v275_v34  ;;  %v8172_v36 = vcombine.high %v275_v34, %v275_v34  ;;  %v10503_v34 = vld [vmem:[%s10954_s10 + $0xfb8] sm:$0xff]  }
 0x1ce   : > { %9475 = vmatprep.subr.bf16.mxu1 %v10413_v37  ;;  %v276_v37 = vld [vmem:[%s10978_s5 + $0xd8] sm:$0xff] }
 0x1d0   : > { %9454 = vmatpush3.bf16.msra.mxu0 %v10414_v38 }
 0x1d1   : > { %9476 = vmatpush3.bf16.msra.mxu1 %v10415_v39  ;;  %9455 = vmatprep.subr.bf16.mxu0 %v10416_v40  ;;  %v8173_v40 = vcombine.low %v276_v37, %v276_v37 }
 0x1d2   : > { %9477 = vmatprep.subr.bf16.mxu1 %v10417_v41  ;;  %v8174_v41 = vcombine.high %v276_v37, %v276_v37 }
 0x1d4   : > { %9456 = vmatpush3.bf16.msra.mxu0 %v10418_v42  ;;  %v10464_v42 = vld [vmem:[%s10954_s10 + $0xe78] sm:$0xff]  }
 0x1d5   : > { %9478 = vmatpush3.bf16.msra.mxu1 %v10419_v43  ;;  %9457 = vmatprep.subr.bf16.mxu0 %v10420_v44  ;;  %v10465_v43 = vld [vmem:[%s10954_s10 + $0xef8] sm:$0xff]  }
 0x1d6   : > { %9479 = vmatprep.subr.bf16.mxu1 %v10421_v45 }
 0x1d8   : > { %9458 = vmatpush3.bf16.msra.mxu0 %v10422_v46  ;;  %v10466_v46 = vld [vmem:[%s10954_s10 + $0xe38] sm:$0xff]  }
 0x1d9   : > { %9480 = vmatpush3.bf16.msra.mxu1 %v10423_v47  ;;  %9487 = vmatprep.subr.bf16.mxu0 %v10428_v55 }
 0x1da   : > { %9509 = vmatprep.subr.bf16.mxu1 %v10429_v57 }
 0x1db   : > { %v9195_v50 = vpop.f32.mrf.mxu0  ;;  %7226 = vmatmul.mubr.bf16.vlgmr.msra.gmra.mxu0 %v8167_v51 }
 0x1dc   : > { %v9217_v54 = vpop.f32.mrf.mxu1  ;;  %7266 = vmatmul.mubr.bf16.vlgmr.msra.gmra.mxu1 %v8169_v53  ;;  %9488 = vmatpush3.bf16.msra.mxu0 %v10430_v59  ;;  %v10468_v53 = vld [vmem:[%s10954_s10 + $0xe70] sm:$0xff]  }
 0x1dd   : > { %v9196_v58 = vpop.f32.mrf.mxu0  ;;  %9510 = vmatpush3.bf16.msra.mxu1 %v10431_v62  ;;  %9489 = vmatprep.subr.bf16.mxu0 %v10432_v3  ;;  %v10471_v59 = vld [vmem:[%s10954_s10 + $0xeb0] sm:$0xff]   ;;  %v10474_v62 = vld [vmem:[%s10954_s10 + $0xe28] sm:$0xff]   ;;  %v10479_v3 = vld [vmem:[%s10954_s10 + $0xea0] sm:$0xff]  }
 0x1de   : > { %v9197_v60 = vadd.f32 %v9196_v58, %v9195_v50  ;;  %v9218_v61 = vpop.f32.mrf.mxu1  ;;  %9511 = vmatprep.subr.bf16.mxu1 %v10433_v4  ;;  %7305 = vmatprep.mubr.bf16.mxu0 %v8172_v36  ;;  %v10470_v58 = vld [vmem:[%s10954_s10 + $0xe30] sm:$0xff]   ;;  %v10480_v4 = vld [vmem:[%s10954_s10 + $0xe58] sm:$0xff]  }
 0x1df   : > { %v9219_v63 = vadd.f32 %v9218_v61, %v9217_v54  ;;  %v9198_v0 = vpop.f32.mrf.mxu0  ;;  %7345 = vmatprep.mubr.bf16.mxu1 %v8174_v41  ;;  %v10469_v54 = vld [vmem:[%s10954_s10 + $0xef0] sm:$0xff]   ;;  %v10473_v61 = vld [vmem:[%s10954_s10 + $0xee8] sm:$0xff]  }
 0x1e0   : > { %v6748_v1 = vadd.f32 %v9197_v60, %v11410_v20  ;;  %v9220_v2 = vpop.f32.mrf.mxu1  ;;  %9490 = vmatpush3.bf16.msra.mxu0 %v10434_v7  ;;  %v10446_v20 = vld [vmem:[%s10954_s10 + $0xd18] sm:$0xff]   ;;  %v10472_v60 = vld [vmem:[%s10954_s10 + $0xe68] sm:$0xff]   ;;  %v10476_v0 = vld [vmem:[%s10954_s10 + $0xe60] sm:$0xff]  }
 0x1e1   : > { %v9199_v5 = vpop.f32.mrf.mxu0  ;;  %9512 = vmatpush3.bf16.msra.mxu1 %v10435_v9  ;;  %9491 = vmatprep.subr.bf16.mxu0 %v10436_v10  ;;  %v10478_v2 = vld [vmem:[%s10954_s10 + $0xe20] sm:$0xff]   ;;  %v10483_v7 = vld [vmem:[%s10954_s10 + $0xe98] sm:$0xff]   ;;  %v10485_v9 = vld [vmem:[%s10954_s10 + $0xed0] sm:$0xff]  }
 0x1e2   : > { %v11447_v6 = vadd.f32 %v9219_v63, %v6748_v1  ;;  %v9221_v8 = vpop.f32.mrf.mxu1  ;;  %9513 = vmatprep.subr.bf16.mxu1 %v10437_v11  ;;  %v10475_v63 = vld [vmem:[%s10954_s10 + $0xea8] sm:$0xff]   ;;  %v10477_v1 = vld [vmem:[%s10954_s10 + $0xee0] sm:$0xff]   ;;  %v10481_v5 = vld [vmem:[%s10954_s10 + $0xed8] sm:$0xff]  }
 0x1e3   : > { %v10484_v8 = vld [vmem:[%s10954_s10 + $0xe50] sm:$0xff]  }
 0x1e4   : > { %9492 = vmatpush3.bf16.msra.mxu0 %v10438_v12  ;;  %v10486_v10 = vld [vmem:[%s10954_s10 + $0xe10] sm:$0xff]   ;;  %v10488_v12 = vld [vmem:[%s10954_s10 + $0xe48] sm:$0xff]  }
 0x1e5   : > { %9514 = vmatpush3.bf16.msra.mxu1 %v10439_v13  ;;  %9493 = vmatprep.subr.bf16.mxu0 %v10440_v14  ;;  %v10487_v11 = vld [vmem:[%s10954_s10 + $0xe90] sm:$0xff]   ;;  %v10489_v13 = vld [vmem:[%s10954_s10 + $0xec8] sm:$0xff]  }
 0x1e6   : > { %9515 = vmatprep.subr.bf16.mxu1 %v10441_v15  ;;  %v10490_v14 = vld [vmem:[%s10954_s10 + $0xe08] sm:$0xff]  }
 0x1e7   : > { %v10491_v15 = vld [vmem:[%s10954_s10 + $0xe88] sm:$0xff]  }
 0x1e8   : > { %9494 = vmatpush3.bf16.msra.mxu0 %v10442_v16  ;;  %v10492_v16 = vld [vmem:[%s10954_s10 + $0xe40] sm:$0xff]  }
 0x1e9   : > { %9516 = vmatpush3.bf16.msra.mxu1 %v10443_v17  ;;  %9495 = vmatprep.subr.bf16.mxu0 %v10444_v18  ;;  %v10493_v17 = vld [vmem:[%s10954_s10 + $0xec0] sm:$0xff]  }
 0x1ea   : > { %9517 = vmatprep.subr.bf16.mxu1 %v10445_v19  ;;  %v10494_v18 = vld [vmem:[%s10954_s10 + $0xe00] sm:$0xff]  }
 0x1eb   : > { %v10495_v19 = vld [vmem:[%s10954_s10 + $0xe80] sm:$0xff]  }
 0x1ec   : > { %9496 = vmatpush3.bf16.msra.mxu0 %v10446_v20  ;;  %v277_v20 = vld [vmem:[%s10978_s5 + $0xe0] sm:$0xff] }
 0x1ed   : > { %9518 = vmatpush3.bf16.msra.mxu1 %v10447_v21  ;;  %9497 = vmatprep.subr.bf16.mxu0 %v10448_v22  ;;  %v278_v21 = vld [vmem:[%s10978_s5 + $0xe8] sm:$0xff] }
 0x1ee   : > { %9519 = vmatprep.subr.bf16.mxu1 %v10449_v23  ;;  %v8175_v23 = vcombine.low %v277_v20, %v277_v20 }
 0x1f0   : > { %9498 = vmatpush3.bf16.msra.mxu0 %v10450_v24  ;;  %v8176_v24 = vcombine.high %v277_v20, %v277_v20  ;;  %v10539_v20 = vld [vmem:[%s10954_s10 + $0x10b8] sm:$0xff]  }
 0x1f1   : > { %9520 = vmatpush3.bf16.msra.mxu1 %v10451_v25  ;;  %9499 = vmatprep.subr.bf16.mxu0 %v10452_v26  ;;  %v8177_v25 = vcombine.low %v278_v21, %v278_v21  ;;  %v8178_v26 = vcombine.high %v278_v21, %v278_v21 }
 0x1f2   : > { %9521 = vmatprep.subr.bf16.mxu1 %v10453_v27 }
 0x1f4   : > { %9500 = vmatpush3.bf16.msra.mxu0 %v10454_v28  ;;  %v10500_v28 = vld [vmem:[%s10954_s10 + $0xf78] sm:$0xff]  }
 0x1f5   : > { %9522 = vmatpush3.bf16.msra.mxu1 %v10455_v29  ;;  %9501 = vmatprep.subr.bf16.mxu0 %v10456_v30  ;;  %v10501_v29 = vld [vmem:[%s10954_s10 + $0xff8] sm:$0xff]  }
 0x1f6   : > { %9523 = vmatprep.subr.bf16.mxu1 %v10457_v31  ;;  %v10502_v31 = vld [vmem:[%s10954_s10 + $0xf38] sm:$0xff]  }
 0x1f8   : > { %9502 = vmatpush3.bf16.msra.mxu0 %v10458_v32 }
 0x1f9   : > { %9524 = vmatpush3.bf16.msra.mxu1 %v10459_v33  ;;  %9531 = vmatprep.subr.bf16.mxu0 %v10464_v42 }
 0x1fa   : > { %9553 = vmatprep.subr.bf16.mxu1 %v10465_v43  ;;  %v10506_v43 = vld [vmem:[%s10954_s10 + $0xf30] sm:$0xff]  }
 0x1fb   : > { %v9239_v38 = vpop.f32.mrf.mxu0  ;;  %7306 = vmatmul.mubr.bf16.vlgmr.msra.gmra.mxu0 %v8171_v35 }
 0x1fc   : > { %v9261_v39 = vpop.f32.mrf.mxu1  ;;  %7346 = vmatmul.mubr.bf16.vlgmr.msra.gmra.mxu1 %v8173_v40  ;;  %9532 = vmatpush3.bf16.msra.mxu0 %v10466_v46  ;;  %v10505_v40 = vld [vmem:[%s10954_s10 + $0xff0] sm:$0xff]   ;;  %v10508_v46 = vld [vmem:[%s10954_s10 + $0xf68] sm:$0xff]  }
 0x1fd   : > { %v9240_v44 = vpop.f32.mrf.mxu0  ;;  %9554 = vmatpush3.bf16.msra.mxu1 %v10467_v49  ;;  %9533 = vmatprep.subr.bf16.mxu0 %v10468_v53  ;;  %v10511_v49 = vld [vmem:[%s10954_s10 + $0xfa8] sm:$0xff]   ;;  %v10515_v53 = vld [vmem:[%s10954_s10 + $0xfa0] sm:$0xff]  }
 0x1fe   : > { %v9262_v45 = vpop.f32.mrf.mxu1  ;;  %v9241_v47 = vadd.f32 %v9240_v44, %v9239_v38  ;;  %9555 = vmatprep.subr.bf16.mxu1 %v10469_v54  ;;  %7385 = vmatprep.mubr.bf16.mxu0 %v8176_v24  ;;  %v10516_v54 = vld [vmem:[%s10954_s10 + $0xf58] sm:$0xff]  }
 0x1ff   : > { %v9263_v48 = vadd.f32 %v9262_v45, %v9261_v39  ;;  %v9242_v50 = vpop.f32.mrf.mxu0  ;;  %7425 = vmatprep.mubr.bf16.mxu1 %v8178_v26  ;;  %v10504_v39 = vld [vmem:[%s10954_s10 + $0xf70] sm:$0xff]  }
 0x200   : > { %v9264_v51 = vpop.f32.mrf.mxu1  ;;  %v6828_v52 = vadd.f32 %v9241_v47, %v11447_v6  ;;  %9534 = vmatpush3.bf16.msra.mxu0 %v10470_v58  ;;  %v10482_v6 = vld [vmem:[%s10954_s10 + $0xe18] sm:$0xff]   ;;  %v10507_v45 = vld [vmem:[%s10954_s10 + $0xfb0] sm:$0xff]   ;;  %v10509_v47 = vld [vmem:[%s10954_s10 + $0xfe8] sm:$0xff]  }
 0x201   : > { %v9243_v55 = vpop.f32.mrf.mxu0  ;;  %9556 = vmatpush3.bf16.msra.mxu1 %v10471_v59  ;;  %9535 = vmatprep.subr.bf16.mxu0 %v10472_v60  ;;  %v10512_v50 = vld [vmem:[%s10954_s10 + $0xf60] sm:$0xff]   ;;  %v10520_v58 = vld [vmem:[%s10954_s10 + $0xf50] sm:$0xff]  }
 0x202   : > { %v9265_v56 = vpop.f32.mrf.mxu1  ;;  %v11484_v57 = vadd.f32 %v9263_v48, %v6828_v52  ;;  %9557 = vmatprep.subr.bf16.mxu1 %v10473_v61  ;;  %v10510_v48 = vld [vmem:[%s10954_s10 + $0xf28] sm:$0xff]   ;;  %v10513_v51 = vld [vmem:[%s10954_s10 + $0xfe0] sm:$0xff]   ;;  %v10517_v55 = vld [vmem:[%s10954_s10 + $0xfd8] sm:$0xff]  }
 0x203   : > { %v10514_v52 = vld [vmem:[%s10954_s10 + $0xf20] sm:$0xff]   ;;  %v10518_v56 = vld [vmem:[%s10954_s10 + $0xf18] sm:$0xff]   ;;  %v10521_v59 = vld [vmem:[%s10954_s10 + $0xfd0] sm:$0xff]  }
 0x204   : > { %9536 = vmatpush3.bf16.msra.mxu0 %v10474_v62  ;;  %v10522_v60 = vld [vmem:[%s10954_s10 + $0xf10] sm:$0xff]   ;;  %v10524_v62 = vld [vmem:[%s10954_s10 + $0xf48] sm:$0xff]  }
 0x205   : > { %9558 = vmatpush3.bf16.msra.mxu1 %v10475_v63  ;;  %9537 = vmatprep.subr.bf16.mxu0 %v10476_v0  ;;  %v10523_v61 = vld [vmem:[%s10954_s10 + $0xf90] sm:$0xff]   ;;  %v10525_v63 = vld [vmem:[%s10954_s10 + $0xfc8] sm:$0xff]  }
 0x206   : > { %9559 = vmatprep.subr.bf16.mxu1 %v10477_v1  ;;  %v10526_v0 = vld [vmem:[%s10954_s10 + $0xf08] sm:$0xff]   ;;  %v10541_v26 = vld [vmem:[%s10954_s10 + $0x10f0] sm:$0xff]  }
 0x207   : > { %v10527_v1 = vld [vmem:[%s10954_s10 + $0xf88] sm:$0xff]  }
 0x208   : > { %9538 = vmatpush3.bf16.msra.mxu0 %v10478_v2  ;;  %v10528_v2 = vld [vmem:[%s10954_s10 + $0xf40] sm:$0xff]  }
 0x209   : > { %9560 = vmatpush3.bf16.msra.mxu1 %v10479_v3  ;;  %9539 = vmatprep.subr.bf16.mxu0 %v10480_v4  ;;  %v10529_v3 = vld [vmem:[%s10954_s10 + $0xfc0] sm:$0xff]  }
 0x20a   : > { %9561 = vmatprep.subr.bf16.mxu1 %v10481_v5  ;;  %v10530_v4 = vld [vmem:[%s10954_s10 + $0xf00] sm:$0xff]  }
 0x20b   : > { %v10531_v5 = vld [vmem:[%s10954_s10 + $0xf80] sm:$0xff]  }
 0x20c   : > { %9540 = vmatpush3.bf16.msra.mxu0 %v10482_v6  ;;  %v279_v6 = vld [vmem:[%s10978_s5 + $0xf0] sm:$0xff] }
 0x20d   : > { %9562 = vmatpush3.bf16.msra.mxu1 %v10483_v7  ;;  %9541 = vmatprep.subr.bf16.mxu0 %v10484_v8  ;;  %v280_v7 = vld [vmem:[%s10978_s5 + $0xf8] sm:$0xff] }
 0x20e   : > { %9563 = vmatprep.subr.bf16.mxu1 %v10485_v9  ;;  %v8179_v9 = vcombine.low %v279_v6, %v279_v6 }
 0x210   : > { %9542 = vmatpush3.bf16.msra.mxu0 %v10486_v10  ;;  %v8180_v10 = vcombine.high %v279_v6, %v279_v6 }
 0x211   : > { %9564 = vmatpush3.bf16.msra.mxu1 %v10487_v11  ;;  %9543 = vmatprep.subr.bf16.mxu0 %v10488_v12  ;;  %v8181_v11 = vcombine.low %v280_v7, %v280_v7 }
 0x212   : > { %9565 = vmatprep.subr.bf16.mxu1 %v10489_v13  ;;  %v10536_v13 = vld [vmem:[%s10954_s10 + $0x1078] sm:$0xff]  }
 0x214   : > { %9544 = vmatpush3.bf16.msra.mxu0 %v10490_v14  ;;  %v8182_v14 = vcombine.high %v280_v7, %v280_v7  ;;  %v10575_v7 = vld [vmem:[%s10954_s10 + $0x11b8] sm:$0xff]  }
 0x215   : > { %9566 = vmatpush3.bf16.msra.mxu1 %v10491_v15  ;;  %9545 = vmatprep.subr.bf16.mxu0 %v10492_v16  ;;  %v10537_v15 = vld [vmem:[%s10954_s10 + $0x10f8] sm:$0xff]  }
 0x216   : > { %9567 = vmatprep.subr.bf16.mxu1 %v10493_v17  ;;  %v10538_v17 = vld [vmem:[%s10954_s10 + $0x1038] sm:$0xff]  }
 0x218   : > { %9546 = vmatpush3.bf16.msra.mxu0 %v10494_v18 }
 0x219   : > { %9568 = vmatpush3.bf16.msra.mxu1 %v10495_v19  ;;  %9575 = vmatprep.subr.bf16.mxu0 %v10500_v28 }
 0x21a   : > { %9597 = vmatprep.subr.bf16.mxu1 %v10501_v29  ;;  %v10542_v29 = vld [vmem:[%s10954_s10 + $0x1030] sm:$0xff]  }
 0x21b   : > { %v9283_v22 = vpop.f32.mrf.mxu0  ;;  %7386 = vmatmul.mubr.bf16.vlgmr.msra.gmra.mxu0 %v8175_v23 }
 0x21c   : > { %v9305_v27 = vpop.f32.mrf.mxu1  ;;  %7426 = vmatmul.mubr.bf16.vlgmr.msra.gmra.mxu1 %v8177_v25  ;;  %9576 = vmatpush3.bf16.msra.mxu0 %v10502_v31  ;;  %v10540_v25 = vld [vmem:[%s10954_s10 + $0x1070] sm:$0xff]  }
 0x21d   : > { %v9284_v30 = vpop.f32.mrf.mxu0  ;;  %9598 = vmatpush3.bf16.msra.mxu1 %v10503_v34  ;;  %9577 = vmatprep.subr.bf16.mxu0 %v10504_v39  ;;  %v10543_v31 = vld [vmem:[%s10954_s10 + $0x10b0] sm:$0xff]   ;;  %v10546_v34 = vld [vmem:[%s10954_s10 + $0x1028] sm:$0xff]   ;;  %v10551_v39 = vld [vmem:[%s10954_s10 + $0x10a0] sm:$0xff]  }
 0x21e   : > { %v9285_v32 = vadd.f32 %v9284_v30, %v9283_v22  ;;  %v9306_v33 = vpop.f32.mrf.mxu1  ;;  %9599 = vmatprep.subr.bf16.mxu1 %v10505_v40  ;;  %7465 = vmatprep.mubr.bf16.mxu0 %v8180_v10  ;;  %v10552_v40 = vld [vmem:[%s10954_s10 + $0x1058] sm:$0xff]  }
 0x21f   : > { %v9307_v35 = vadd.f32 %v9306_v33, %v9305_v27  ;;  %v9286_v36 = vpop.f32.mrf.mxu0  ;;  %7505 = vmatprep.mubr.bf16.mxu1 %v8182_v14  ;;  %v10545_v33 = vld [vmem:[%s10954_s10 + $0x10e8] sm:$0xff]  }
 0x220   : > { %v6908_v37 = vadd.f32 %v9285_v32, %v11484_v57  ;;  %v9308_v38 = vpop.f32.mrf.mxu1  ;;  %9578 = vmatpush3.bf16.msra.mxu0 %v10506_v43  ;;  %v10519_v57 = vld [vmem:[%s10954_s10 + $0xf98] sm:$0xff]   ;;  %v10544_v32 = vld [vmem:[%s10954_s10 + $0x1068] sm:$0xff]   ;;  %v10548_v36 = vld [vmem:[%s10954_s10 + $0x1060] sm:$0xff]  }
 0x221   : > { %v9287_v41 = vpop.f32.mrf.mxu0  ;;  %9600 = vmatpush3.bf16.msra.mxu1 %v10507_v45  ;;  %9579 = vmatprep.subr.bf16.mxu0 %v10508_v46  ;;  %v10550_v38 = vld [vmem:[%s10954_s10 + $0x1020] sm:$0xff]   ;;  %v10555_v43 = vld [vmem:[%s10954_s10 + $0x1098] sm:$0xff]   ;;  %v10557_v45 = vld [vmem:[%s10954_s10 + $0x10d0] sm:$0xff]  }
 0x222   : > { %v11521_v42 = vadd.f32 %v9307_v35, %v6908_v37  ;;  %v9309_v44 = vpop.f32.mrf.mxu1  ;;  %9601 = vmatprep.subr.bf16.mxu1 %v10509_v47  ;;  %v10547_v35 = vld [vmem:[%s10954_s10 + $0x10a8] sm:$0xff]   ;;  %v10549_v37 = vld [vmem:[%s10954_s10 + $0x10e0] sm:$0xff]   ;;  %v10553_v41 = vld [vmem:[%s10954_s10 + $0x10d8] sm:$0xff]  }
 0x223   : > { %v10556_v44 = vld [vmem:[%s10954_s10 + $0x1050] sm:$0xff]  }
 0x224   : > { %9580 = vmatpush3.bf16.msra.mxu0 %v10510_v48  ;;  %v10558_v46 = vld [vmem:[%s10954_s10 + $0x1010] sm:$0xff]   ;;  %v10560_v48 = vld [vmem:[%s10954_s10 + $0x1048] sm:$0xff]  }
 0x225   : > { %9602 = vmatpush3.bf16.msra.mxu1 %v10511_v49  ;;  %9581 = vmatprep.subr.bf16.mxu0 %v10512_v50  ;;  %v10559_v47 = vld [vmem:[%s10954_s10 + $0x1090] sm:$0xff]   ;;  %v10561_v49 = vld [vmem:[%s10954_s10 + $0x10c8] sm:$0xff]  }
 0x226   : > { %9603 = vmatprep.subr.bf16.mxu1 %v10513_v51  ;;  %v10562_v50 = vld [vmem:[%s10954_s10 + $0x1008] sm:$0xff]  }
 0x227   : > { %v10563_v51 = vld [vmem:[%s10954_s10 + $0x1088] sm:$0xff]  }
 0x228   : > { %9582 = vmatpush3.bf16.msra.mxu0 %v10514_v52  ;;  %v10564_v52 = vld [vmem:[%s10954_s10 + $0x1040] sm:$0xff]  }
 0x229   : > { %9604 = vmatpush3.bf16.msra.mxu1 %v10515_v53  ;;  %9583 = vmatprep.subr.bf16.mxu0 %v10516_v54  ;;  %v10565_v53 = vld [vmem:[%s10954_s10 + $0x10c0] sm:$0xff]  }
 0x22a   : > { %9605 = vmatprep.subr.bf16.mxu1 %v10517_v55  ;;  %v10566_v54 = vld [vmem:[%s10954_s10 + $0x1000] sm:$0xff]  }
 0x22b   : > { %v10567_v55 = vld [vmem:[%s10954_s10 + $0x1080] sm:$0xff]  }
 0x22c   : > { %9584 = vmatpush3.bf16.msra.mxu0 %v10518_v56  ;;  %v281_v56 = vld [vmem:[%s10978_s5 + $0x100] sm:$0xff] }
 0x22d   : > { %9606 = vmatpush3.bf16.msra.mxu1 %v10519_v57  ;;  %9585 = vmatprep.subr.bf16.mxu0 %v10520_v58  ;;  %v8183_v57 = vcombine.low %v281_v56, %v281_v56  ;;  %v8184_v58 = vcombine.high %v281_v56, %v281_v56  ;;  %v10611_v56 = vld [vmem:[%s10954_s10 + $0x12b8] sm:$0xff]  }
 0x22e   : > { %9607 = vmatprep.subr.bf16.mxu1 %v10521_v59  ;;  %v282_v59 = vld [vmem:[%s10978_s5 + $0x108] sm:$0xff] }
 0x230   : > { %9586 = vmatpush3.bf16.msra.mxu0 %v10522_v60 }
 0x231   : > { %9608 = vmatpush3.bf16.msra.mxu1 %v10523_v61  ;;  %9587 = vmatprep.subr.bf16.mxu0 %v10524_v62  ;;  %v8185_v62 = vcombine.low %v282_v59, %v282_v59 }
 0x232   : > { %9609 = vmatprep.subr.bf16.mxu1 %v10525_v63  ;;  %v8186_v63 = vcombine.high %v282_v59, %v282_v59 }
 0x234   : > { %9588 = vmatpush3.bf16.msra.mxu0 %v10526_v0  ;;  %v10572_v0 = vld [vmem:[%s10954_s10 + $0x1178] sm:$0xff]  }
 0x235   : > { %9610 = vmatpush3.bf16.msra.mxu1 %v10527_v1  ;;  %9589 = vmatprep.subr.bf16.mxu0 %v10528_v2  ;;  %v10573_v1 = vld [vmem:[%s10954_s10 + $0x11f8] sm:$0xff]  }
 0x236   : > { %9611 = vmatprep.subr.bf16.mxu1 %v10529_v3 }
 0x238   : > { %9590 = vmatpush3.bf16.msra.mxu0 %v10530_v4  ;;  %v10574_v4 = vld [vmem:[%s10954_s10 + $0x1138] sm:$0xff]  }
 0x239   : > { %9612 = vmatpush3.bf16.msra.mxu1 %v10531_v5  ;;  %9619 = vmatprep.subr.bf16.mxu0 %v10536_v13 }
 0x23a   : > { %9641 = vmatprep.subr.bf16.mxu1 %v10537_v15 }
 0x23b   : > { %v9327_v8 = vpop.f32.mrf.mxu0  ;;  %7466 = vmatmul.mubr.bf16.vlgmr.msra.gmra.mxu0 %v8179_v9 }
 0x23c   : > { %v9349_v12 = vpop.f32.mrf.mxu1  ;;  %7506 = vmatmul.mubr.bf16.vlgmr.msra.gmra.mxu1 %v8181_v11  ;;  %9620 = vmatpush3.bf16.msra.mxu0 %v10538_v17  ;;  %v10576_v11 = vld [vmem:[%s10954_s10 + $0x1170] sm:$0xff]  }
 0x23d   : > { %v9328_v16 = vpop.f32.mrf.mxu0  ;;  %9642 = vmatpush3.bf16.msra.mxu1 %v10539_v20  ;;  %9621 = vmatprep.subr.bf16.mxu0 %v10540_v25  ;;  %v10579_v17 = vld [vmem:[%s10954_s10 + $0x11b0] sm:$0xff]   ;;  %v10582_v20 = vld [vmem:[%s10954_s10 + $0x1128] sm:$0xff]   ;;  %v10587_v25 = vld [vmem:[%s10954_s10 + $0x11a0] sm:$0xff]  }
 0x23e   : > { %v9329_v18 = vadd.f32 %v9328_v16, %v9327_v8  ;;  %v9350_v19 = vpop.f32.mrf.mxu1  ;;  %9643 = vmatprep.subr.bf16.mxu1 %v10541_v26  ;;  %7545 = vmatprep.mubr.bf16.mxu0 %v8184_v58  ;;  %v10578_v16 = vld [vmem:[%s10954_s10 + $0x1130] sm:$0xff]   ;;  %v10588_v26 = vld [vmem:[%s10954_s10 + $0x1158] sm:$0xff]  }
 0x23f   : > { %v9351_v21 = vadd.f32 %v9350_v19, %v9349_v12  ;;  %v9330_v22 = vpop.f32.mrf.mxu0  ;;  %7585 = vmatprep.mubr.bf16.mxu1 %v8186_v63  ;;  %v10577_v12 = vld [vmem:[%s10954_s10 + $0x11f0] sm:$0xff]   ;;  %v10581_v19 = vld [vmem:[%s10954_s10 + $0x11e8] sm:$0xff]  }
 0x240   : > { %v6988_v23 = vadd.f32 %v9329_v18, %v11521_v42  ;;  %v9352_v24 = vpop.f32.mrf.mxu1  ;;  %9622 = vmatpush3.bf16.msra.mxu0 %v10542_v29  ;;  %v10554_v42 = vld [vmem:[%s10954_s10 + $0x1018] sm:$0xff]   ;;  %v10580_v18 = vld [vmem:[%s10954_s10 + $0x1168] sm:$0xff]   ;;  %v10584_v22 = vld [vmem:[%s10954_s10 + $0x1160] sm:$0xff]  }
 0x241   : > { %v9331_v27 = vpop.f32.mrf.mxu0  ;;  %9644 = vmatpush3.bf16.msra.mxu1 %v10543_v31  ;;  %9623 = vmatprep.subr.bf16.mxu0 %v10544_v32  ;;  %v10586_v24 = vld [vmem:[%s10954_s10 + $0x1120] sm:$0xff]   ;;  %v10591_v29 = vld [vmem:[%s10954_s10 + $0x1198] sm:$0xff]   ;;  %v10593_v31 = vld [vmem:[%s10954_s10 + $0x11d0] sm:$0xff]  }
 0x242   : > { %v11558_v28 = vadd.f32 %v9351_v21, %v6988_v23  ;;  %v9353_v30 = vpop.f32.mrf.mxu1  ;;  %9645 = vmatprep.subr.bf16.mxu1 %v10545_v33  ;;  %v10583_v21 = vld [vmem:[%s10954_s10 + $0x11a8] sm:$0xff]   ;;  %v10585_v23 = vld [vmem:[%s10954_s10 + $0x11e0] sm:$0xff]   ;;  %v10589_v27 = vld [vmem:[%s10954_s10 + $0x11d8] sm:$0xff]  }
 0x243   : > { %v10592_v30 = vld [vmem:[%s10954_s10 + $0x1150] sm:$0xff]  }
 0x244   : > { %9624 = vmatpush3.bf16.msra.mxu0 %v10546_v34  ;;  %v10594_v32 = vld [vmem:[%s10954_s10 + $0x1110] sm:$0xff]   ;;  %v10596_v34 = vld [vmem:[%s10954_s10 + $0x1148] sm:$0xff]  }
 0x245   : > { %9646 = vmatpush3.bf16.msra.mxu1 %v10547_v35  ;;  %9625 = vmatprep.subr.bf16.mxu0 %v10548_v36  ;;  %v10595_v33 = vld [vmem:[%s10954_s10 + $0x1190] sm:$0xff]   ;;  %v10597_v35 = vld [vmem:[%s10954_s10 + $0x11c8] sm:$0xff]  }
 0x246   : > { %9647 = vmatprep.subr.bf16.mxu1 %v10549_v37  ;;  %v10598_v36 = vld [vmem:[%s10954_s10 + $0x1108] sm:$0xff]  }
 0x247   : > { %v10599_v37 = vld [vmem:[%s10954_s10 + $0x1188] sm:$0xff]  }
 0x248   : > { %9626 = vmatpush3.bf16.msra.mxu0 %v10550_v38  ;;  %v10600_v38 = vld [vmem:[%s10954_s10 + $0x1140] sm:$0xff]  }
 0x249   : > { %9648 = vmatpush3.bf16.msra.mxu1 %v10551_v39  ;;  %9627 = vmatprep.subr.bf16.mxu0 %v10552_v40  ;;  %v10601_v39 = vld [vmem:[%s10954_s10 + $0x11c0] sm:$0xff]  }
 0x24a   : > { %9649 = vmatprep.subr.bf16.mxu1 %v10553_v41  ;;  %v10602_v40 = vld [vmem:[%s10954_s10 + $0x1100] sm:$0xff]  }
 0x24b   : > { %v10603_v41 = vld [vmem:[%s10954_s10 + $0x1180] sm:$0xff]  }
 0x24c   : > { %9628 = vmatpush3.bf16.msra.mxu0 %v10554_v42  ;;  %v283_v42 = vld [vmem:[%s10978_s5 + $0x110] sm:$0xff] }
 0x24d   : > { %9650 = vmatpush3.bf16.msra.mxu1 %v10555_v43  ;;  %9629 = vmatprep.subr.bf16.mxu0 %v10556_v44  ;;  %v284_v43 = vld [vmem:[%s10978_s5 + $0x118] sm:$0xff] }
 0x24e   : > { %9651 = vmatprep.subr.bf16.mxu1 %v10557_v45  ;;  %v8187_v45 = vcombine.low %v283_v42, %v283_v42 }
 0x250   : > { %9630 = vmatpush3.bf16.msra.mxu0 %v10558_v46  ;;  %v8188_v46 = vcombine.high %v283_v42, %v283_v42  ;;  %v10647_v42 = vld [vmem:[%s10954_s10 + $0x13b8] sm:$0xff]  }
 0x251   : > { %9652 = vmatpush3.bf16.msra.mxu1 %v10559_v47  ;;  %9631 = vmatprep.subr.bf16.mxu0 %v10560_v48  ;;  %v8189_v47 = vcombine.low %v284_v43, %v284_v43  ;;  %v8190_v48 = vcombine.high %v284_v43, %v284_v43 }
 0x252   : > { %9653 = vmatprep.subr.bf16.mxu1 %v10561_v49 }
 0x254   : > { %9632 = vmatpush3.bf16.msra.mxu0 %v10562_v50  ;;  %v10608_v50 = vld [vmem:[%s10954_s10 + $0x1278] sm:$0xff]  }
 0x255   : > { %9654 = vmatpush3.bf16.msra.mxu1 %v10563_v51  ;;  %9633 = vmatprep.subr.bf16.mxu0 %v10564_v52  ;;  %v10609_v51 = vld [vmem:[%s10954_s10 + $0x12f8] sm:$0xff]  }
 0x256   : > { %9655 = vmatprep.subr.bf16.mxu1 %v10565_v53  ;;  %v10610_v53 = vld [vmem:[%s10954_s10 + $0x1238] sm:$0xff]  }
 0x258   : > { %9634 = vmatpush3.bf16.msra.mxu0 %v10566_v54 }
 0x259   : > { %9656 = vmatpush3.bf16.msra.mxu1 %v10567_v55  ;;  %9663 = vmatprep.subr.bf16.mxu0 %v10572_v0 }
 0x25a   : > { %9685 = vmatprep.subr.bf16.mxu1 %v10573_v1  ;;  %v10614_v1 = vld [vmem:[%s10954_s10 + $0x1230] sm:$0xff]  }
 0x25b   : > { %v9371_v60 = vpop.f32.mrf.mxu0  ;;  %7546 = vmatmul.mubr.bf16.vlgmr.msra.gmra.mxu0 %v8183_v57 }
 0x25c   : > { %v9393_v61 = vpop.f32.mrf.mxu1  ;;  %7586 = vmatmul.mubr.bf16.vlgmr.msra.gmra.mxu1 %v8185_v62  ;;  %9664 = vmatpush3.bf16.msra.mxu0 %v10574_v4  ;;  %v10613_v62 = vld [vmem:[%s10954_s10 + $0x12f0] sm:$0xff]   ;;  %v10616_v4 = vld [vmem:[%s10954_s10 + $0x1268] sm:$0xff]  }
 0x25d   : > { %v9372_v2 = vpop.f32.mrf.mxu0  ;;  %9686 = vmatpush3.bf16.msra.mxu1 %v10575_v7  ;;  %9665 = vmatprep.subr.bf16.mxu0 %v10576_v11  ;;  %v10619_v7 = vld [vmem:[%s10954_s10 + $0x12a8] sm:$0xff]   ;;  %v10623_v11 = vld [vmem:[%s10954_s10 + $0x12a0] sm:$0xff]  }
 0x25e   : > { %v9394_v3 = vpop.f32.mrf.mxu1  ;;  %v9373_v5 = vadd.f32 %v9372_v2, %v9371_v60  ;;  %9687 = vmatprep.subr.bf16.mxu1 %v10577_v12  ;;  %7625 = vmatprep.mubr.bf16.mxu0 %v8188_v46  ;;  %v10624_v12 = vld [vmem:[%s10954_s10 + $0x1258] sm:$0xff]  }
 0x25f   : > { %v9395_v6 = vadd.f32 %v9394_v3, %v9393_v61  ;;  %v9374_v8 = vpop.f32.mrf.mxu0  ;;  %7665 = vmatprep.mubr.bf16.mxu1 %v8190_v48  ;;  %v10612_v61 = vld [vmem:[%s10954_s10 + $0x1270] sm:$0xff]  }
 0x260   : > { %v9396_v9 = vpop.f32.mrf.mxu1  ;;  %v7068_v10 = vadd.f32 %v9373_v5, %v11558_v28  ;;  %9666 = vmatpush3.bf16.msra.mxu0 %v10578_v16  ;;  %v10590_v28 = vld [vmem:[%s10954_s10 + $0x1118] sm:$0xff]   ;;  %v10615_v3 = vld [vmem:[%s10954_s10 + $0x12b0] sm:$0xff]   ;;  %v10617_v5 = vld [vmem:[%s10954_s10 + $0x12e8] sm:$0xff]  }
 0x261   : > { %v9375_v13 = vpop.f32.mrf.mxu0  ;;  %9688 = vmatpush3.bf16.msra.mxu1 %v10579_v17  ;;  %9667 = vmatprep.subr.bf16.mxu0 %v10580_v18  ;;  %v10620_v8 = vld [vmem:[%s10954_s10 + $0x1260] sm:$0xff]   ;;  %v10628_v16 = vld [vmem:[%s10954_s10 + $0x1250] sm:$0xff]  }
 0x262   : > { %v9397_v14 = vpop.f32.mrf.mxu1  ;;  %v11595_v15 = vadd.f32 %v9395_v6, %v7068_v10  ;;  %9689 = vmatprep.subr.bf16.mxu1 %v10581_v19  ;;  %v10618_v6 = vld [vmem:[%s10954_s10 + $0x1228] sm:$0xff]   ;;  %v10621_v9 = vld [vmem:[%s10954_s10 + $0x12e0] sm:$0xff]   ;;  %v10625_v13 = vld [vmem:[%s10954_s10 + $0x12d8] sm:$0xff]  }
 0x263   : > { %v10622_v10 = vld [vmem:[%s10954_s10 + $0x1220] sm:$0xff]   ;;  %v10626_v14 = vld [vmem:[%s10954_s10 + $0x1218] sm:$0xff]   ;;  %v10629_v17 = vld [vmem:[%s10954_s10 + $0x12d0] sm:$0xff]  }
 0x264   : > { %9668 = vmatpush3.bf16.msra.mxu0 %v10582_v20  ;;  %v10630_v18 = vld [vmem:[%s10954_s10 + $0x1210] sm:$0xff]   ;;  %v10632_v20 = vld [vmem:[%s10954_s10 + $0x1248] sm:$0xff]  }
 0x265   : > { %9690 = vmatpush3.bf16.msra.mxu1 %v10583_v21  ;;  %9669 = vmatprep.subr.bf16.mxu0 %v10584_v22  ;;  %v10631_v19 = vld [vmem:[%s10954_s10 + $0x1290] sm:$0xff]   ;;  %v10633_v21 = vld [vmem:[%s10954_s10 + $0x12c8] sm:$0xff]  }
 0x266   : > { %9691 = vmatprep.subr.bf16.mxu1 %v10585_v23  ;;  %v10634_v22 = vld [vmem:[%s10954_s10 + $0x1208] sm:$0xff]   ;;  %v10649_v48 = vld [vmem:[%s10954_s10 + $0x13f0] sm:$0xff]  }
 0x267   : > { %v10635_v23 = vld [vmem:[%s10954_s10 + $0x1288] sm:$0xff]  }
 0x268   : > { %9670 = vmatpush3.bf16.msra.mxu0 %v10586_v24  ;;  %v10636_v24 = vld [vmem:[%s10954_s10 + $0x1240] sm:$0xff]  }
 0x269   : > { %9692 = vmatpush3.bf16.msra.mxu1 %v10587_v25  ;;  %9671 = vmatprep.subr.bf16.mxu0 %v10588_v26  ;;  %v10637_v25 = vld [vmem:[%s10954_s10 + $0x12c0] sm:$0xff]  }
 0x26a   : > { %9693 = vmatprep.subr.bf16.mxu1 %v10589_v27  ;;  %v10638_v26 = vld [vmem:[%s10954_s10 + $0x1200] sm:$0xff]  }
 0x26b   : > { %v10639_v27 = vld [vmem:[%s10954_s10 + $0x1280] sm:$0xff]  }
 0x26c   : > { %9672 = vmatpush3.bf16.msra.mxu0 %v10590_v28  ;;  %v285_v28 = vld [vmem:[%s10978_s5 + $0x120] sm:$0xff] }
 0x26d   : > { %9694 = vmatpush3.bf16.msra.mxu1 %v10591_v29  ;;  %9673 = vmatprep.subr.bf16.mxu0 %v10592_v30  ;;  %v286_v29 = vld [vmem:[%s10978_s5 + $0x128] sm:$0xff] }
 0x26e   : > { %9695 = vmatprep.subr.bf16.mxu1 %v10593_v31  ;;  %v8191_v31 = vcombine.low %v285_v28, %v285_v28 }
 0x270   : > { %9674 = vmatpush3.bf16.msra.mxu0 %v10594_v32  ;;  %v8192_v32 = vcombine.high %v285_v28, %v285_v28 }
 0x271   : > { %9696 = vmatpush3.bf16.msra.mxu1 %v10595_v33  ;;  %9675 = vmatprep.subr.bf16.mxu0 %v10596_v34  ;;  %v8193_v33 = vcombine.low %v286_v29, %v286_v29 }
 0x272   : > { %9697 = vmatprep.subr.bf16.mxu1 %v10597_v35  ;;  %v10644_v35 = vld [vmem:[%s10954_s10 + $0x1378] sm:$0xff]  }
 0x274   : > { %9676 = vmatpush3.bf16.msra.mxu0 %v10598_v36  ;;  %v8194_v36 = vcombine.high %v286_v29, %v286_v29  ;;  %v10683_v29 = vld [vmem:[%s10954_s10 + $0x14b8] sm:$0xff]  }
 0x275   : > { %9698 = vmatpush3.bf16.msra.mxu1 %v10599_v37  ;;  %9677 = vmatprep.subr.bf16.mxu0 %v10600_v38  ;;  %v10645_v37 = vld [vmem:[%s10954_s10 + $0x13f8] sm:$0xff]  }
 0x276   : > { %9699 = vmatprep.subr.bf16.mxu1 %v10601_v39  ;;  %v10646_v39 = vld [vmem:[%s10954_s10 + $0x1338] sm:$0xff]  }
 0x278   : > { %9678 = vmatpush3.bf16.msra.mxu0 %v10602_v40 }
 0x279   : > { %9700 = vmatpush3.bf16.msra.mxu1 %v10603_v41  ;;  %9707 = vmatprep.subr.bf16.mxu0 %v10608_v50 }
 0x27a   : > { %9729 = vmatprep.subr.bf16.mxu1 %v10609_v51  ;;  %v10650_v51 = vld [vmem:[%s10954_s10 + $0x1330] sm:$0xff]  }
 0x27b   : > { %v9415_v44 = vpop.f32.mrf.mxu0  ;;  %7626 = vmatmul.mubr.bf16.vlgmr.msra.gmra.mxu0 %v8187_v45 }
 0x27c   : > { %v9437_v49 = vpop.f32.mrf.mxu1  ;;  %7666 = vmatmul.mubr.bf16.vlgmr.msra.gmra.mxu1 %v8189_v47  ;;  %9708 = vmatpush3.bf16.msra.mxu0 %v10610_v53  ;;  %v10648_v47 = vld [vmem:[%s10954_s10 + $0x1370] sm:$0xff]  }
 0x27d   : > { %v9416_v52 = vpop.f32.mrf.mxu0  ;;  %9730 = vmatpush3.bf16.msra.mxu1 %v10611_v56  ;;  %9709 = vmatprep.subr.bf16.mxu0 %v10612_v61  ;;  %v10651_v53 = vld [vmem:[%s10954_s10 + $0x13b0] sm:$0xff]   ;;  %v10654_v56 = vld [vmem:[%s10954_s10 + $0x1328] sm:$0xff]   ;;  %v10659_v61 = vld [vmem:[%s10954_s10 + $0x13a0] sm:$0xff]  }
 0x27e   : > { %v9417_v54 = vadd.f32 %v9416_v52, %v9415_v44  ;;  %v9438_v55 = vpop.f32.mrf.mxu1  ;;  %9731 = vmatprep.subr.bf16.mxu1 %v10613_v62  ;;  %7705 = vmatprep.mubr.bf16.mxu0 %v8192_v32  ;;  %v10660_v62 = vld [vmem:[%s10954_s10 + $0x1358] sm:$0xff]  }
 0x27f   : > { %v9439_v57 = vadd.f32 %v9438_v55, %v9437_v49  ;;  %v9418_v58 = vpop.f32.mrf.mxu0  ;;  %7745 = vmatprep.mubr.bf16.mxu1 %v8194_v36  ;;  %v10653_v55 = vld [vmem:[%s10954_s10 + $0x13e8] sm:$0xff]  }
 0x280   : > { %v7148_v59 = vadd.f32 %v9417_v54, %v11595_v15  ;;  %v9440_v60 = vpop.f32.mrf.mxu1  ;;  %9710 = vmatpush3.bf16.msra.mxu0 %v10614_v1  ;;  %v10627_v15 = vld [vmem:[%s10954_s10 + $0x1298] sm:$0xff]   ;;  %v10652_v54 = vld [vmem:[%s10954_s10 + $0x1368] sm:$0xff]   ;;  %v10656_v58 = vld [vmem:[%s10954_s10 + $0x1360] sm:$0xff]  }
 0x281   : > { %v9419_v63 = vpop.f32.mrf.mxu0  ;;  %9732 = vmatpush3.bf16.msra.mxu1 %v10615_v3  ;;  %9711 = vmatprep.subr.bf16.mxu0 %v10616_v4  ;;  %v10658_v60 = vld [vmem:[%s10954_s10 + $0x1320] sm:$0xff]   ;;  %v10663_v1 = vld [vmem:[%s10954_s10 + $0x1398] sm:$0xff]   ;;  %v10665_v3 = vld [vmem:[%s10954_s10 + $0x13d0] sm:$0xff]  }
 0x282   : > { %v11632_v0 = vadd.f32 %v9439_v57, %v7148_v59  ;;  %v9441_v2 = vpop.f32.mrf.mxu1  ;;  %9733 = vmatprep.subr.bf16.mxu1 %v10617_v5  ;;  %v10655_v57 = vld [vmem:[%s10954_s10 + $0x13a8] sm:$0xff]   ;;  %v10657_v59 = vld [vmem:[%s10954_s10 + $0x13e0] sm:$0xff]   ;;  %v10661_v63 = vld [vmem:[%s10954_s10 + $0x13d8] sm:$0xff]  }
 0x283   : > { %v10664_v2 = vld [vmem:[%s10954_s10 + $0x1350] sm:$0xff]  }
 0x284   : > { %9712 = vmatpush3.bf16.msra.mxu0 %v10618_v6  ;;  %v10666_v4 = vld [vmem:[%s10954_s10 + $0x1310] sm:$0xff]   ;;  %v10668_v6 = vld [vmem:[%s10954_s10 + $0x1348] sm:$0xff]  }
 0x285   : > { %9734 = vmatpush3.bf16.msra.mxu1 %v10619_v7  ;;  %9713 = vmatprep.subr.bf16.mxu0 %v10620_v8  ;;  %v10667_v5 = vld [vmem:[%s10954_s10 + $0x1390] sm:$0xff]   ;;  %v10669_v7 = vld [vmem:[%s10954_s10 + $0x13c8] sm:$0xff]  }
 0x286   : > { %9735 = vmatprep.subr.bf16.mxu1 %v10621_v9  ;;  %v10670_v8 = vld [vmem:[%s10954_s10 + $0x1308] sm:$0xff]  }
 0x287   : > { %v10671_v9 = vld [vmem:[%s10954_s10 + $0x1388] sm:$0xff]  }
 0x288   : > { %9714 = vmatpush3.bf16.msra.mxu0 %v10622_v10  ;;  %v10672_v10 = vld [vmem:[%s10954_s10 + $0x1340] sm:$0xff]  }
 0x289   : > { %9736 = vmatpush3.bf16.msra.mxu1 %v10623_v11  ;;  %9715 = vmatprep.subr.bf16.mxu0 %v10624_v12  ;;  %v10673_v11 = vld [vmem:[%s10954_s10 + $0x13c0] sm:$0xff]  }
 0x28a   : > { %9737 = vmatprep.subr.bf16.mxu1 %v10625_v13  ;;  %v10674_v12 = vld [vmem:[%s10954_s10 + $0x1300] sm:$0xff]  }
 0x28b   : > { %v10675_v13 = vld [vmem:[%s10954_s10 + $0x1380] sm:$0xff]  }
 0x28c   : > { %9716 = vmatpush3.bf16.msra.mxu0 %v10626_v14  ;;  %v287_v14 = vld [vmem:[%s10978_s5 + $0x130] sm:$0xff] }
 0x28d   : > { %9738 = vmatpush3.bf16.msra.mxu1 %v10627_v15  ;;  %9717 = vmatprep.subr.bf16.mxu0 %v10628_v16  ;;  %v8195_v15 = vcombine.low %v287_v14, %v287_v14  ;;  %v8196_v16 = vcombine.high %v287_v14, %v287_v14  ;;  %v10719_v14 = vld [vmem:[%s10954_s10 + $0x15b8] sm:$0xff]  }
 0x28e   : > { %9739 = vmatprep.subr.bf16.mxu1 %v10629_v17  ;;  %v288_v17 = vld [vmem:[%s10978_s5 + $0x138] sm:$0xff] }
 0x290   : > { %9718 = vmatpush3.bf16.msra.mxu0 %v10630_v18 }
 0x291   : > { %9740 = vmatpush3.bf16.msra.mxu1 %v10631_v19  ;;  %9719 = vmatprep.subr.bf16.mxu0 %v10632_v20  ;;  %v8197_v20 = vcombine.low %v288_v17, %v288_v17 }
 0x292   : > { %9741 = vmatprep.subr.bf16.mxu1 %v10633_v21  ;;  %v8198_v21 = vcombine.high %v288_v17, %v288_v17 }
 0x294   : > { %9720 = vmatpush3.bf16.msra.mxu0 %v10634_v22  ;;  %v10680_v22 = vld [vmem:[%s10954_s10 + $0x1478] sm:$0xff]  }
 0x295   : > { %9742 = vmatpush3.bf16.msra.mxu1 %v10635_v23  ;;  %9721 = vmatprep.subr.bf16.mxu0 %v10636_v24  ;;  %v10681_v23 = vld [vmem:[%s10954_s10 + $0x14f8] sm:$0xff]  }
 0x296   : > { %9743 = vmatprep.subr.bf16.mxu1 %v10637_v25 }
 0x298   : > { %9722 = vmatpush3.bf16.msra.mxu0 %v10638_v26  ;;  %v10682_v26 = vld [vmem:[%s10954_s10 + $0x1438] sm:$0xff]  }
 0x299   : > { %9744 = vmatpush3.bf16.msra.mxu1 %v10639_v27  ;;  %9751 = vmatprep.subr.bf16.mxu0 %v10644_v35 }
 0x29a   : > { %9773 = vmatprep.subr.bf16.mxu1 %v10645_v37 }
 0x29b   : > { %v9459_v30 = vpop.f32.mrf.mxu0  ;;  %7706 = vmatmul.mubr.bf16.vlgmr.msra.gmra.mxu0 %v8191_v31 }
 0x29c   : > { %v9481_v34 = vpop.f32.mrf.mxu1  ;;  %7746 = vmatmul.mubr.bf16.vlgmr.msra.gmra.mxu1 %v8193_v33  ;;  %9752 = vmatpush3.bf16.msra.mxu0 %v10646_v39  ;;  %v10684_v33 = vld [vmem:[%s10954_s10 + $0x1470] sm:$0xff]  }
 0x29d   : > { %v9460_v38 = vpop.f32.mrf.mxu0  ;;  %9774 = vmatpush3.bf16.msra.mxu1 %v10647_v42  ;;  %9753 = vmatprep.subr.bf16.mxu0 %v10648_v47  ;;  %v10687_v39 = vld [vmem:[%s10954_s10 + $0x14b0] sm:$0xff]   ;;  %v10690_v42 = vld [vmem:[%s10954_s10 + $0x1428] sm:$0xff]   ;;  %v10695_v47 = vld [vmem:[%s10954_s10 + $0x14a0] sm:$0xff]  }
 0x29e   : > { %v9461_v40 = vadd.f32 %v9460_v38, %v9459_v30  ;;  %v9482_v41 = vpop.f32.mrf.mxu1  ;;  %9775 = vmatprep.subr.bf16.mxu1 %v10649_v48  ;;  %7785 = vmatprep.mubr.bf16.mxu0 %v8196_v16  ;;  %v10686_v38 = vld [vmem:[%s10954_s10 + $0x1430] sm:$0xff]   ;;  %v10696_v48 = vld [vmem:[%s10954_s10 + $0x1458] sm:$0xff]  }
 0x29f   : > { %v9483_v43 = vadd.f32 %v9482_v41, %v9481_v34  ;;  %v9462_v44 = vpop.f32.mrf.mxu0  ;;  %7825 = vmatprep.mubr.bf16.mxu1 %v8198_v21  ;;  %v10685_v34 = vld [vmem:[%s10954_s10 + $0x14f0] sm:$0xff]   ;;  %v10689_v41 = vld [vmem:[%s10954_s10 + $0x14e8] sm:$0xff]  }
 0x2a0   : > { %v7228_v45 = vadd.f32 %v9461_v40, %v11632_v0  ;;  %v9484_v46 = vpop.f32.mrf.mxu1  ;;  %9754 = vmatpush3.bf16.msra.mxu0 %v10650_v51  ;;  %v10662_v0 = vld [vmem:[%s10954_s10 + $0x1318] sm:$0xff]   ;;  %v10688_v40 = vld [vmem:[%s10954_s10 + $0x1468] sm:$0xff]   ;;  %v10692_v44 = vld [vmem:[%s10954_s10 + $0x1460] sm:$0xff]  }
 0x2a1   : > { %v9463_v49 = vpop.f32.mrf.mxu0  ;;  %9776 = vmatpush3.bf16.msra.mxu1 %v10651_v53  ;;  %9755 = vmatprep.subr.bf16.mxu0 %v10652_v54  ;;  %v10694_v46 = vld [vmem:[%s10954_s10 + $0x1420] sm:$0xff]   ;;  %v10699_v51 = vld [vmem:[%s10954_s10 + $0x1498] sm:$0xff]   ;;  %v10701_v53 = vld [vmem:[%s10954_s10 + $0x14d0] sm:$0xff]  }
 0x2a2   : > { %v11669_v50 = vadd.f32 %v9483_v43, %v7228_v45  ;;  %v9485_v52 = vpop.f32.mrf.mxu1  ;;  %9777 = vmatprep.subr.bf16.mxu1 %v10653_v55  ;;  %v10691_v43 = vld [vmem:[%s10954_s10 + $0x14a8] sm:$0xff]   ;;  %v10693_v45 = vld [vmem:[%s10954_s10 + $0x14e0] sm:$0xff]   ;;  %v10697_v49 = vld [vmem:[%s10954_s10 + $0x14d8] sm:$0xff]  }
 0x2a3   : > { %v10700_v52 = vld [vmem:[%s10954_s10 + $0x1450] sm:$0xff]  }
 0x2a4   : > { %9756 = vmatpush3.bf16.msra.mxu0 %v10654_v56  ;;  %v10702_v54 = vld [vmem:[%s10954_s10 + $0x1410] sm:$0xff]   ;;  %v10704_v56 = vld [vmem:[%s10954_s10 + $0x1448] sm:$0xff]  }
 0x2a5   : > { %9778 = vmatpush3.bf16.msra.mxu1 %v10655_v57  ;;  %9757 = vmatprep.subr.bf16.mxu0 %v10656_v58  ;;  %v10703_v55 = vld [vmem:[%s10954_s10 + $0x1490] sm:$0xff]   ;;  %v10705_v57 = vld [vmem:[%s10954_s10 + $0x14c8] sm:$0xff]  }
 0x2a6   : > { %9779 = vmatprep.subr.bf16.mxu1 %v10657_v59  ;;  %v10706_v58 = vld [vmem:[%s10954_s10 + $0x1408] sm:$0xff]  }
 0x2a7   : > { %v10707_v59 = vld [vmem:[%s10954_s10 + $0x1488] sm:$0xff]  }
 0x2a8   : > { %9758 = vmatpush3.bf16.msra.mxu0 %v10658_v60  ;;  %v10708_v60 = vld [vmem:[%s10954_s10 + $0x1440] sm:$0xff]  }
 0x2a9   : > { %9780 = vmatpush3.bf16.msra.mxu1 %v10659_v61  ;;  %9759 = vmatprep.subr.bf16.mxu0 %v10660_v62  ;;  %v10709_v61 = vld [vmem:[%s10954_s10 + $0x14c0] sm:$0xff]  }
 0x2aa   : > { %9781 = vmatprep.subr.bf16.mxu1 %v10661_v63  ;;  %v10710_v62 = vld [vmem:[%s10954_s10 + $0x1400] sm:$0xff]  }
 0x2ab   : > { %v10711_v63 = vld [vmem:[%s10954_s10 + $0x1480] sm:$0xff]  }
 0x2ac   : > { %9760 = vmatpush3.bf16.msra.mxu0 %v10662_v0  ;;  %v289_v0 = vld [vmem:[%s10978_s5 + $0x140] sm:$0xff] }
 0x2ad   : > { %9782 = vmatpush3.bf16.msra.mxu1 %v10663_v1  ;;  %9761 = vmatprep.subr.bf16.mxu0 %v10664_v2  ;;  %v290_v1 = vld [vmem:[%s10978_s5 + $0x148] sm:$0xff] }
 0x2ae   : > { %9783 = vmatprep.subr.bf16.mxu1 %v10665_v3  ;;  %v8199_v3 = vcombine.low %v289_v0, %v289_v0 }
 0x2b0   : > { %9762 = vmatpush3.bf16.msra.mxu0 %v10666_v4  ;;  %v8200_v4 = vcombine.high %v289_v0, %v289_v0 }
 0x2b1   : > { %9784 = vmatpush3.bf16.msra.mxu1 %v10667_v5  ;;  %9763 = vmatprep.subr.bf16.mxu0 %v10668_v6  ;;  %v8201_v5 = vcombine.low %v290_v1, %v290_v1  ;;  %v8202_v6 = vcombine.high %v290_v1, %v290_v1 }
 0x2b2   : > { %9785 = vmatprep.subr.bf16.mxu1 %v10669_v7 }
 0x2b4   : > { %9764 = vmatpush3.bf16.msra.mxu0 %v10670_v8  ;;  %v10716_v8 = vld [vmem:[%s10954_s10 + $0x1578] sm:$0xff]  }
 0x2b5   : > { %9786 = vmatpush3.bf16.msra.mxu1 %v10671_v9  ;;  %9765 = vmatprep.subr.bf16.mxu0 %v10672_v10  ;;  %v10717_v9 = vld [vmem:[%s10954_s10 + $0x15f8] sm:$0xff]  }
 0x2b6   : > { %9787 = vmatprep.subr.bf16.mxu1 %v10673_v11  ;;  %v10718_v11 = vld [vmem:[%s10954_s10 + $0x1538] sm:$0xff]  }
 0x2b8   : > { %9766 = vmatpush3.bf16.msra.mxu0 %v10674_v12 }
 0x2b9   : > { %9788 = vmatpush3.bf16.msra.mxu1 %v10675_v13  ;;  %9795 = vmatprep.subr.bf16.mxu0 %v10680_v22 }
 0x2ba   : > { %9817 = vmatprep.subr.bf16.mxu1 %v10681_v23  ;;  %v10722_v23 = vld [vmem:[%s10954_s10 + $0x1530] sm:$0xff]  }
 0x2bb   : > { %v9503_v18 = vpop.f32.mrf.mxu0  ;;  %7786 = vmatmul.mubr.bf16.vlgmr.msra.gmra.mxu0 %v8195_v15 }
 0x2bc   : > { %v9525_v19 = vpop.f32.mrf.mxu1  ;;  %7826 = vmatmul.mubr.bf16.vlgmr.msra.gmra.mxu1 %v8197_v20  ;;  %9796 = vmatpush3.bf16.msra.mxu0 %v10682_v26  ;;  %v10721_v20 = vld [vmem:[%s10954_s10 + $0x15f0] sm:$0xff]   ;;  %v10724_v26 = vld [vmem:[%s10954_s10 + $0x1568] sm:$0xff]  }
 0x2bd   : > { %v9504_v24 = vpop.f32.mrf.mxu0  ;;  %9818 = vmatpush3.bf16.msra.mxu1 %v10683_v29  ;;  %9797 = vmatprep.subr.bf16.mxu0 %v10684_v33  ;;  %v10727_v29 = vld [vmem:[%s10954_s10 + $0x15a8] sm:$0xff]   ;;  %v10731_v33 = vld [vmem:[%s10954_s10 + $0x15a0] sm:$0xff]  }
 0x2be   : > { %v9526_v25 = vpop.f32.mrf.mxu1  ;;  %v9505_v27 = vadd.f32 %v9504_v24, %v9503_v18  ;;  %9819 = vmatprep.subr.bf16.mxu1 %v10685_v34  ;;  %7865 = vmatprep.mubr.bf16.mxu0 %v8200_v4  ;;  %v10732_v34 = vld [vmem:[%s10954_s10 + $0x1558] sm:$0xff]  }
 0x2bf   : > { %v9527_v28 = vadd.f32 %v9526_v25, %v9525_v19  ;;  %v9506_v30 = vpop.f32.mrf.mxu0  ;;  %7905 = vmatprep.mubr.bf16.mxu1 %v8202_v6  ;;  %v10720_v19 = vld [vmem:[%s10954_s10 + $0x1570] sm:$0xff]  }
 0x2c0   : > { %v9528_v31 = vpop.f32.mrf.mxu1  ;;  %v7308_v32 = vadd.f32 %v9505_v27, %v11669_v50  ;;  %9798 = vmatpush3.bf16.msra.mxu0 %v10686_v38  ;;  %v10698_v50 = vld [vmem:[%s10954_s10 + $0x1418] sm:$0xff]   ;;  %v10723_v25 = vld [vmem:[%s10954_s10 + $0x15b0] sm:$0xff]   ;;  %v10725_v27 = vld [vmem:[%s10954_s10 + $0x15e8] sm:$0xff]  }
 0x2c1   : > { %v9507_v35 = vpop.f32.mrf.mxu0  ;;  %9820 = vmatpush3.bf16.msra.mxu1 %v10687_v39  ;;  %9799 = vmatprep.subr.bf16.mxu0 %v10688_v40  ;;  %v10728_v30 = vld [vmem:[%s10954_s10 + $0x1560] sm:$0xff]   ;;  %v10736_v38 = vld [vmem:[%s10954_s10 + $0x1550] sm:$0xff]  }
 0x2c2   : > { %v9529_v36 = vpop.f32.mrf.mxu1  ;;  %v11706_v37 = vadd.f32 %v9527_v28, %v7308_v32  ;;  %9821 = vmatprep.subr.bf16.mxu1 %v10689_v41  ;;  %v10726_v28 = vld [vmem:[%s10954_s10 + $0x1528] sm:$0xff]   ;;  %v10729_v31 = vld [vmem:[%s10954_s10 + $0x15e0] sm:$0xff]   ;;  %v10733_v35 = vld [vmem:[%s10954_s10 + $0x15d8] sm:$0xff]  }
 0x2c3   : > { %v10730_v32 = vld [vmem:[%s10954_s10 + $0x1520] sm:$0xff]   ;;  %v10734_v36 = vld [vmem:[%s10954_s10 + $0x1518] sm:$0xff]   ;;  %v10737_v39 = vld [vmem:[%s10954_s10 + $0x15d0] sm:$0xff]  }
 0x2c4   : > { %9800 = vmatpush3.bf16.msra.mxu0 %v10690_v42  ;;  %v10738_v40 = vld [vmem:[%s10954_s10 + $0x1510] sm:$0xff]   ;;  %v10740_v42 = vld [vmem:[%s10954_s10 + $0x1548] sm:$0xff]  }
 0x2c5   : > { %9822 = vmatpush3.bf16.msra.mxu1 %v10691_v43  ;;  %9801 = vmatprep.subr.bf16.mxu0 %v10692_v44  ;;  %v10739_v41 = vld [vmem:[%s10954_s10 + $0x1590] sm:$0xff]   ;;  %v10741_v43 = vld [vmem:[%s10954_s10 + $0x15c8] sm:$0xff]  }
 0x2c6   : > { %9823 = vmatprep.subr.bf16.mxu1 %v10693_v45  ;;  %v10742_v44 = vld [vmem:[%s10954_s10 + $0x1508] sm:$0xff]  }
 0x2c7   : > { %v10743_v45 = vld [vmem:[%s10954_s10 + $0x1588] sm:$0xff]  }
 0x2c8   : > { %9802 = vmatpush3.bf16.msra.mxu0 %v10694_v46  ;;  %v10744_v46 = vld [vmem:[%s10954_s10 + $0x1540] sm:$0xff]  }
 0x2c9   : > { %9824 = vmatpush3.bf16.msra.mxu1 %v10695_v47  ;;  %9803 = vmatprep.subr.bf16.mxu0 %v10696_v48  ;;  %v10745_v47 = vld [vmem:[%s10954_s10 + $0x15c0] sm:$0xff]  }
 0x2ca   : > { %9825 = vmatprep.subr.bf16.mxu1 %v10697_v49  ;;  %v10746_v48 = vld [vmem:[%s10954_s10 + $0x1500] sm:$0xff]  }
 0x2cb   : > { %v10747_v49 = vld [vmem:[%s10954_s10 + $0x1580] sm:$0xff]  }
 0x2cc   : > { %9804 = vmatpush3.bf16.msra.mxu0 %v10698_v50  ;;  %v291_v50 = vld [vmem:[%s10978_s5 + $0x150] sm:$0xff] }
 0x2cd   : > { %9826 = vmatpush3.bf16.msra.mxu1 %v10699_v51  ;;  %9805 = vmatprep.subr.bf16.mxu0 %v10700_v52  ;;  %v292_v51 = vld [vmem:[%s10978_s5 + $0x158] sm:$0xff] }
 0x2ce   : > { %9827 = vmatprep.subr.bf16.mxu1 %v10701_v53  ;;  %v8203_v53 = vcombine.low %v291_v50, %v291_v50 }
 0x2d0   : > { %9806 = vmatpush3.bf16.msra.mxu0 %v10702_v54  ;;  %v8204_v54 = vcombine.high %v291_v50, %v291_v50 }
 0x2d1   : > { %9828 = vmatpush3.bf16.msra.mxu1 %v10703_v55  ;;  %9807 = vmatprep.subr.bf16.mxu0 %v10704_v56  ;;  %v8205_v55 = vcombine.low %v292_v51, %v292_v51 }
 0x2d2   : > { %9829 = vmatprep.subr.bf16.mxu1 %v10705_v57  ;;  %v8206_v57 = vcombine.high %v292_v51, %v292_v51 }
 0x2d4   : > { %9808 = vmatpush3.bf16.msra.mxu0 %v10706_v58 }
 0x2d5   : > { %9830 = vmatpush3.bf16.msra.mxu1 %v10707_v59  ;;  %9809 = vmatprep.subr.bf16.mxu0 %v10708_v60 }
 0x2d6   : > { %9831 = vmatprep.subr.bf16.mxu1 %v10709_v61 }
 0x2d8   : > { %9810 = vmatpush3.bf16.msra.mxu0 %v10710_v62 }
 0x2d9   : > { %9832 = vmatpush3.bf16.msra.mxu1 %v10711_v63  ;;  %9839 = vmatprep.subr.bf16.mxu0 %v10716_v8 }
 0x2da   : > { %9861 = vmatprep.subr.bf16.mxu1 %v10717_v9 }
 0x2db   : > { %v9547_v2 = vpop.f32.mrf.mxu0  ;;  %7866 = vmatmul.mubr.bf16.vlgmr.msra.gmra.mxu0 %v8199_v3 }
 0x2dc   : > { %v9569_v7 = vpop.f32.mrf.mxu1  ;;  %7906 = vmatmul.mubr.bf16.vlgmr.msra.gmra.mxu1 %v8201_v5  ;;  %9840 = vmatpush3.bf16.msra.mxu0 %v10718_v11 }
 0x2dd   : > { %v9548_v10 = vpop.f32.mrf.mxu0  ;;  %9862 = vmatpush3.bf16.msra.mxu1 %v10719_v14  ;;  %9841 = vmatprep.subr.bf16.mxu0 %v10720_v19 }
 0x2de   : > { %v9549_v12 = vadd.f32 %v9548_v10, %v9547_v2  ;;  %v9570_v13 = vpop.f32.mrf.mxu1  ;;  %9863 = vmatprep.subr.bf16.mxu1 %v10721_v20  ;;  %7945 = vmatprep.mubr.bf16.mxu0 %v8204_v54 }
 0x2df   : > { %v9571_v15 = vadd.f32 %v9570_v13, %v9569_v7  ;;  %v9550_v16 = vpop.f32.mrf.mxu0  ;;  %7985 = vmatprep.mubr.bf16.mxu1 %v8206_v57 }
 0x2e0   : > { %v7388_v17 = vadd.f32 %v9549_v12, %v11706_v37  ;;  %v9572_v18 = vpop.f32.mrf.mxu1  ;;  %9842 = vmatpush3.bf16.msra.mxu0 %v10722_v23  ;;  %v10735_v37 = vld [vmem:[%s10954_s10 + $0x1598] sm:$0xff]  }
 0x2e1   : > { %v9551_v21 = vpop.f32.mrf.mxu0  ;;  %9864 = vmatpush3.bf16.msra.mxu1 %v10723_v25  ;;  %9843 = vmatprep.subr.bf16.mxu0 %v10724_v26 }
 0x2e2   : > { %v11743_v22 = vadd.f32 %v9571_v15, %v7388_v17  ;;  %v9573_v24 = vpop.f32.mrf.mxu1  ;;  %9865 = vmatprep.subr.bf16.mxu1 %v10725_v27 }
 0x2e4   : > { %9844 = vmatpush3.bf16.msra.mxu0 %v10726_v28 }
 0x2e5   : > { %9866 = vmatpush3.bf16.msra.mxu1 %v10727_v29  ;;  %9845 = vmatprep.subr.bf16.mxu0 %v10728_v30 }
 0x2e6   : > { %9867 = vmatprep.subr.bf16.mxu1 %v10729_v31 }
 0x2e8   : > { %9846 = vmatpush3.bf16.msra.mxu0 %v10730_v32 }
 0x2e9   : > { %9868 = vmatpush3.bf16.msra.mxu1 %v10731_v33  ;;  %9847 = vmatprep.subr.bf16.mxu0 %v10732_v34 }
 0x2ea   : > { %9869 = vmatprep.subr.bf16.mxu1 %v10733_v35 }
 0x2ec   : > { %9848 = vmatpush3.bf16.msra.mxu0 %v10734_v36 }
 0x2ed   : > { %9870 = vmatpush3.bf16.msra.mxu1 %v10735_v37  ;;  %9849 = vmatprep.subr.bf16.mxu0 %v10736_v38 }
 0x2ee   : > { %9871 = vmatprep.subr.bf16.mxu1 %v10737_v39 }
 0x2f0   : > { %9850 = vmatpush3.bf16.msra.mxu0 %v10738_v40 }
 0x2f1   : > { %9872 = vmatpush3.bf16.msra.mxu1 %v10739_v41  ;;  %9851 = vmatprep.subr.bf16.mxu0 %v10740_v42 }
 0x2f2   : > { %9873 = vmatprep.subr.bf16.mxu1 %v10741_v43 }
 0x2f4   : > { %9852 = vmatpush3.bf16.msra.mxu0 %v10742_v44 }
 0x2f5   : > { %9874 = vmatpush3.bf16.msra.mxu1 %v10743_v45  ;;  %9853 = vmatprep.subr.bf16.mxu0 %v10744_v46 }
 0x2f6   : > { %9875 = vmatprep.subr.bf16.mxu1 %v10745_v47 }
 0x2f8   : > { %9854 = vmatpush3.bf16.msra.mxu0 %v10746_v48 }
 0x2f9   : > { %9876 = vmatpush3.bf16.msra.mxu1 %v10747_v49 }
 0x2fb   : > { %v9591_v52 = vpop.f32.mrf.mxu0  ;;  %7946 = vmatmul.mubr.bf16.vlgmr.msra.gmra.mxu0 %v8203_v53 }
 0x2fc   : > { %v9613_v56 = vpop.f32.mrf.mxu1  ;;  %7986 = vmatmul.mubr.bf16.vlgmr.msra.gmra.mxu1 %v8205_v55 }
 0x2fd   : > { %v9592_v58 = vpop.f32.mrf.mxu0 }
 0x2fe   : > { %v9593_v59 = vadd.f32 %v9592_v58, %v9591_v52  ;;  %v9614_v60 = vpop.f32.mrf.mxu1 }
 0x2ff   : > { %v9615_v61 = vadd.f32 %v9614_v60, %v9613_v56  ;;  %v9594_v62 = vpop.f32.mrf.mxu0 }
 0x300   : > { %v7468_v63 = vadd.f32 %v9593_v59, %v11743_v22  ;;  %v9616_v0 = vpop.f32.mrf.mxu1 }
 0x301   : > { %v9595_v1 = vpop.f32.mrf.mxu0 }
 0x302   : > { %v7508_v2 = vadd.f32 %v9615_v61, %v7468_v63  ;;  %v9617_v3 = vpop.f32.mrf.mxu1 }
 0x31b   : > { %v9635_v4 = vpop.f32.mrf.mxu0 }
 0x31c   : > { %v9657_v5 = vpop.f32.mrf.mxu1 }
 0x31d   : > { %v9636_v6 = vpop.f32.mrf.mxu0 }
 0x31e   : > { %v9658_v7 = vpop.f32.mrf.mxu1  ;;  %v9637_v8 = vadd.f32 %v9636_v6, %v9635_v4 }
 0x31f   : > { %v9659_v9 = vadd.f32 %v9658_v7, %v9657_v5  ;;  %v9638_v10 = vpop.f32.mrf.mxu0 }
 0x320   : > { %v9660_v11 = vpop.f32.mrf.mxu1  ;;  %v7548_v12 = vadd.f32 %v9637_v8, %v7508_v2 }
 0x321   : > { %v9639_v13 = vpop.f32.mrf.mxu0 }
 0x322   : > { %v9661_v14 = vpop.f32.mrf.mxu1  ;;  %v7588_v15 = vadd.f32 %v9659_v9, %v7548_v12  ;;  %v248_v9 = vld [vmem:[#allocation2] sm:$0xff] }
 0x33b   : > { %v9679_v16 = vpop.f32.mrf.mxu0 }
 0x33c   : > { %v9701_v17 = vpop.f32.mrf.mxu1 }
 0x33d   : > { %v9680_v18 = vpop.f32.mrf.mxu0 }
 0x33e   : > { %v9681_v19 = vadd.f32 %v9680_v18, %v9679_v16  ;;  %v9702_v20 = vpop.f32.mrf.mxu1 }
 0x33f   : > { %v9703_v21 = vadd.f32 %v9702_v20, %v9701_v17  ;;  %v9682_v22 = vpop.f32.mrf.mxu0 }
 0x340   : > { %v7628_v23 = vadd.f32 %v9681_v19, %v7588_v15  ;;  %v9704_v24 = vpop.f32.mrf.mxu1 }
 0x341   : > { %v9683_v25 = vpop.f32.mrf.mxu0 }
 0x342   : > { %v7668_v26 = vadd.f32 %v9703_v21, %v7628_v23  ;;  %v9705_v27 = vpop.f32.mrf.mxu1 }
 0x35b   : > { %v9723_v28 = vpop.f32.mrf.mxu0 }
 0x35c   : > { %v9745_v29 = vpop.f32.mrf.mxu1 }
 0x35d   : > { %v9724_v30 = vpop.f32.mrf.mxu0 }
 0x35e   : > { %v9725_v31 = vadd.f32 %v9724_v30, %v9723_v28  ;;  %v9746_v32 = vpop.f32.mrf.mxu1 }
 0x35f   : > { %v9747_v33 = vadd.f32 %v9746_v32, %v9745_v29  ;;  %v9726_v34 = vpop.f32.mrf.mxu0 }
 0x360   : > { %v7708_v35 = vadd.f32 %v9725_v31, %v7668_v26  ;;  %v9748_v36 = vpop.f32.mrf.mxu1 }
 0x361   : > { %v9727_v37 = vpop.f32.mrf.mxu0 }
 0x362   : > { %v7748_v38 = vadd.f32 %v9747_v33, %v7708_v35  ;;  %v9749_v39 = vpop.f32.mrf.mxu1 }
 0x37b   : > { %v9767_v40 = vpop.f32.mrf.mxu0 }
 0x37c   : > { %v9789_v41 = vpop.f32.mrf.mxu1 }
 0x37d   : > { %v9768_v42 = vpop.f32.mrf.mxu0 }
 0x37e   : > { %v9790_v43 = vpop.f32.mrf.mxu1  ;;  %v9769_v56 = vadd.f32 %v9768_v42, %v9767_v40 }
 0x37f   : > { %v9770_v44 = vpop.f32.mrf.mxu0  ;;  %v9791_v58 = vadd.f32 %v9790_v43, %v9789_v41 }
 0x380   : > { %v9792_v45 = vpop.f32.mrf.mxu1  ;;  %v7788_v57 = vadd.f32 %v9769_v56, %v7748_v38 }
 0x381   : > { %v9771_v46 = vpop.f32.mrf.mxu0 }
 0x382   : > { %v9793_v47 = vpop.f32.mrf.mxu1  ;;  %v7828_v60 = vadd.f32 %v9791_v58, %v7788_v57 }
 0x39b   : > { %v9811_v48 = vpop.f32.mrf.mxu0 }
 0x39c   : > { %v9833_v49 = vpop.f32.mrf.mxu1 }
 0x39d   : > { %v9812_v50 = vpop.f32.mrf.mxu0 }
 0x39e   : > { %v9834_v51 = vpop.f32.mrf.mxu1  ;;  %v9813_v59 = vadd.f32 %v9812_v50, %v9811_v48 }
 0x39f   : > { %v9814_v52 = vpop.f32.mrf.mxu0  ;;  %v9835_v62 = vadd.f32 %v9834_v51, %v9833_v49 }
 0x3a0   : > { %v9836_v53 = vpop.f32.mrf.mxu1  ;;  %v7868_v61 = vadd.f32 %v9813_v59, %v7828_v60 }
 0x3a1   : > { %v9815_v54 = vpop.f32.mrf.mxu0 }
 0x3a2   : > { %v9837_v55 = vpop.f32.mrf.mxu1  ;;  %v7908_v2 = vadd.f32 %v9835_v62, %v7868_v61 }
 0x3bb   : > { %v9855_v63 = vpop.f32.mrf.mxu0 }
 0x3bc   : > { %v9877_v0 = vpop.f32.mrf.mxu1 }
 0x3bd   : > { %v9856_v1 = vpop.f32.mrf.mxu0 }
 0x3be   : > { %v9857_v3 = vadd.f32 %v9856_v1, %v9855_v63  ;;  %v9878_v4 = vpop.f32.mrf.mxu1 }
 0x3bf   : > { %v9858_v5 = vpop.f32.mrf.mxu0  ;;  %v9879_v7 = vadd.f32 %v9878_v4, %v9877_v0 }
 0x3c0   : > { %v7948_v6 = vadd.f32 %v9857_v3, %v7908_v2  ;;  %v9880_v8 = vpop.f32.mrf.mxu1 }
 0x3c1   : > { %v9859_v10 = vpop.f32.mrf.mxu0 }
 0x3c2   : > { %v7988_v11 = vadd.f32 %v9879_v7, %v7948_v6  ;;  %v9881_v12 = vpop.f32.mrf.mxu1  ;;  %7998 = sbr.rel (%p8911_p11) target bundleno = 979 (0x3d3), region = 44 }
 0x3c4   : > { %v7993_v13 = vadd.f32 %v7988_v11, %v248_v9 }
 0x3c6   : > { %7994 = vst [vmem:[#allocation2] sm:$0xff] %v7993_v13 }
 0x3c7   : > { %v8912_v15 = vld [vmem:[%s237_s12] ss:$0 sm:$0xff] }
 0x3cd   : > { %v7999_v14 = vld [vmem:[#allocation2] sm:$0xff] }
 0x3ce   : > { %v8007_v16 = vadd.f32 %v8912_v15, %v7999_v14 }
 0x3d0   : > { %v8008_v17 = vmax.f32 %v8007_v16, 0.0 }
 0x3d2   : > { %8009 = vst [vmem:[%s10973_s23] sm:$0xff] %v8008_v17 }
 0x3d3 PF: > { %s16_s19 = sadd.s32 1, %s10846_s19   ;;  %s11811_s12 = smov %s10822_s13 }
 0x3d4   : > { %p13_p12 = scmp.ge.s32.totalorder %s16_s19, 6   ;;  %s11812_s13 = smov %s10826_s14 }
 0x3d5   : > { %s11813_s14 = smov %s10938_s4  ;;  %s11814_s15 = smov %s10838_s17 }
 0x3d6   : > { %s11815_s16 = smov %s10842_s18  ;;  %s11816_s17 = smov %s11819_s21 }
 0x3d7   : > { %s11817_s18 = smov %s11823_s22  ;;  %15 = sbr.rel (!%p13_p12) target bundleno = 5 (0x5), region = 86 }
 0x3dc   :  { %8029 = vsyncpa [#allocation4], 1 }
 0x3dd   :  { %8031 = vsyncpa [#allocation4 + $0x1], 1 }

</bundles_post_ra>
